<compile_context>
chip_gen: v5e
topology: v5e:2x2
jax: 0.10.0
libtpu: 0.0.40
codegen_flags: <defaults>
</compile_context>

<pallas_src>
import functools

import numpy as np
import jax
import jax.numpy as jnp
from jax.experimental import pallas as pl
from jax.experimental.pallas import tpu as pltpu


# ---------------------------------------------------------------------------
# Host-side (static-shape) helpers mirroring the PyTorch module utilities.
# ---------------------------------------------------------------------------
def get_window_size(x_size, window_size, shift_size=None):
    use_ws = list(window_size)
    use_ss = list(shift_size) if shift_size is not None else None
    for i in range(len(x_size)):
        if x_size[i] <= window_size[i]:
            use_ws[i] = x_size[i]
            if shift_size is not None:
                use_ss[i] = 0
    if shift_size is None:
        return tuple(use_ws)
    return tuple(use_ws), tuple(use_ss)


def window_partition(x, ws):
    """x: (B, D, H, W, C) -> (B*nW, prod(ws), C). Works for np and jnp arrays."""
    B, D, H, W, C = x.shape
    x = x.reshape(B, D // ws[0], ws[0], H // ws[1], ws[1], W // ws[2], ws[2], C)
    return x.transpose(0, 1, 3, 5, 2, 4, 6, 7).reshape(-1, ws[0] * ws[1] * ws[2], C)


def window_reverse(windows, ws, B, Dp, Hp, Wp):
    """windows: (B*nW, prod(ws), C) -> (B, Dp, Hp, Wp, C)."""
    x = windows.reshape(B, Dp // ws[0], Hp // ws[1], Wp // ws[2],
                        ws[0], ws[1], ws[2], -1)
    return x.transpose(0, 1, 4, 2, 5, 3, 6, 7).reshape(B, Dp, Hp, Wp, -1)


def compute_mask_np(Dp, Hp, Wp, window_size, shift_size):
    """Shifted-window attention mask, (nW, N, N) with 0 / -100 entries."""
    img_mask = np.zeros((1, Dp, Hp, Wp, 1), np.float32)
    cnt = 0
    for d in (slice(-window_size[0]), slice(-window_size[0], -shift_size[0]),
              slice(-shift_size[0], None)):
        for h in (slice(-window_size[1]), slice(-window_size[1], -shift_size[1]),
                  slice(-shift_size[1], None)):
            for w in (slice(-window_size[2]), slice(-window_size[2], -shift_size[2]),
                      slice(-shift_size[2], None)):
                img_mask[:, d, h, w, :] = cnt
                cnt += 1
    mask_windows = window_partition(img_mask, window_size).squeeze(-1)   # (nW, N)
    attn_mask = mask_windows[:, None, :] - mask_windows[:, :, None]      # (nW, N, N)
    return np.where(attn_mask != 0, np.float32(-100.0), np.float32(0.0))


def relative_position_index_np(window_size):
    coords = np.stack(np.meshgrid(np.arange(window_size[0]),
                                  np.arange(window_size[1]),
                                  np.arange(window_size[2]), indexing="ij"))
    coords_flatten = coords.reshape(3, -1)
    rel = coords_flatten[:, :, None] - coords_flatten[:, None, :]        # (3, N, N)
    rel = rel.transpose(1, 2, 0).astype(np.int64)                        # (N, N, 3)
    rel[:, :, 0] += window_size[0] - 1
    rel[:, :, 1] += window_size[1] - 1
    rel[:, :, 2] += window_size[2] - 1
    rel[:, :, 0] *= (2 * window_size[1] - 1) * (2 * window_size[2] - 1)
    rel[:, :, 1] *= 2 * window_size[2] - 1
    return rel.sum(-1).astype(np.int32)                                  # (N, N)


# ---------------------------------------------------------------------------
# Fused window-attention Pallas kernel.
#   per grid step (G windows):
#     qkv = x @ Wqkv (bf16 MXU, f32 acc, scale pre-folded)
#     for each head: softmax(q k^T + bias[h] (+ mask)) v  -> accumulate into
#                    y += pv_h @ Wproj[h*d:(h+1)*d]       (no concat)
#     out = y + b_proj
# ---------------------------------------------------------------------------
def _window_attn_kernel(*refs, heads, dim_head, has_mask):
    if has_mask:
        x_ref, wqkv_ref, wproj_ref, bproj_ref, bias_ref, mask_ref, o_ref = refs
    else:
        x_ref, wqkv_ref, wproj_ref, bproj_ref, bias_ref, o_ref = refs
        mask_ref = None

    G, N, C = x_ref.shape
    hidden = heads * dim_head
    dim_out = o_ref.shape[-1]
    d = dim_head

    # Fused QKV projection: bf16 operands on the MXU, f32 accumulation.
    x = x_ref[...].reshape(G * N, C)                                      # bf16
    qkv = jnp.dot(x, wqkv_ref[...], preferred_element_type=jnp.float32)   # f32
    qkv = qkv.astype(jnp.bfloat16).reshape(G, N, 3 * hidden)

    bias = bias_ref[...]                                  # (heads, N, N) f32, resident
    mask = mask_ref[...] if has_mask else None            # (G, N, N) f32 (shifted only)

    y = jnp.zeros((G * N, dim_out), jnp.float32)
    for h in range(heads):                                # static unroll over heads
        q = qkv[:, :, h * d:(h + 1) * d]                                  # (G, N, d)
        k = qkv[:, :, hidden + h * d: hidden + (h + 1) * d]               # (G, N, d)
        v = qkv[:, :, 2 * hidden + h * d: 2 * hidden + (h + 1) * d]       # (G, N, d)

        sim = jnp.einsum("gnd,gmd->gnm", q, k,
                         preferred_element_type=jnp.float32)              # (G, N, N) f32
        sim = sim + bias[h]
        if has_mask:
            sim = sim + mask
        sim = sim - jnp.max(sim, axis=-1, keepdims=True)
        p = jnp.exp(sim)
        p = p * pl.reciprocal(jnp.sum(p, axis=-1, keepdims=True), approx=True)

        pv = jnp.einsum("gnm,gmd->gnd", p.astype(jnp.bfloat16), v,
                        preferred_element_type=jnp.float32)               # (G, N, d)
        # Contract this head straight into its W_proj rows (no concat tensor).
        y = y + jnp.dot(pv.astype(jnp.bfloat16).reshape(G * N, d),
                        wproj_ref[h * d:(h + 1) * d, :],
                        preferred_element_type=jnp.float32)

    y = y + bproj_ref[...]
    o_ref[...] = y.reshape(G, N, dim_out).astype(o_ref.dtype)


def _pick_window_group(num_windows, N, C, itemsize=2, nW=None,
                       target_bytes=512 * 1024, min_grid=4):
    """Largest window group G (dividing num_windows, compatible with the mask
    period nW) whose x block stays under target_bytes, preferring a grid of
    >= min_grid steps and G*N a multiple of 256 (v6e/v7x MXU width)."""
    def compatible(g):
        if num_windows % g:
            return False
        if nW is not None and (nW % g != 0 and g % nW != 0):
            return False
        return True

    divisors = [g for g in range(1, num_windows + 1) if compatible(g)]
    feasible = [g for g in divisors
                if g * N * C * itemsize <= target_bytes] or [divisors[0]]
    cands = [g for g in feasible if num_windows // g >= min_grid] or feasible
    aligned = [g for g in cands if (g * N) % 256 == 0]
    return max(aligned or cands)


def window_attention_pallas(x_windows, attn_mask, rel_bias, w_qkv_t, w_proj_t,
                            b_proj, *, heads, dim_head):
    B_, N, C = x_windows.shape
    hidden = heads * dim_head
    dim_out = w_proj_t.shape[1]
    out_dtype = x_windows.dtype

    has_mask = attn_mask is not None
    nW = attn_mask.shape[0] if has_mask else None
    G = _pick_window_group(B_, N, C, itemsize=2, nW=nW)
    grid = (B_ // G,)

    in_specs = [
        pl.BlockSpec((G, N, C), lambda i: (i, 0, 0)),            # x windows (bf16)
        pl.BlockSpec((C, 3 * hidden), lambda i: (0, 0)),         # W_qkv (bf16, resident)
        pl.BlockSpec((hidden, dim_out), lambda i: (0, 0)),       # W_proj (bf16, resident)
        pl.BlockSpec((1, dim_out), lambda i: (0, 0)),            # b_proj (f32)
        pl.BlockSpec((heads, N, N), lambda i: (0, 0, 0)),        # rel-pos bias (resident)
    ]
    args = [x_windows.astype(jnp.bfloat16), w_qkv_t, w_proj_t,
            b_proj.reshape(1, dim_out).astype(jnp.float32),
            rel_bias.astype(jnp.float32)]

    if has_mask:
        mask = attn_mask.astype(jnp.float32)                     # compact (nW, N, N)
        if nW % G == 0:
            nper = nW // G
            in_specs.append(
                pl.BlockSpec((G, N, N), lambda i, nper=nper: (i % nper, 0, 0)))
        else:                                                    # nW | G (by the picker)
            mask = jnp.tile(mask, (G // nW, 1, 1))               # one-time, grid-resident
            in_specs.append(pl.BlockSpec((G, N, N), lambda i: (0, 0, 0)))
        args.append(mask)

    kernel = functools.partial(_window_attn_kernel, heads=heads,
                               dim_head=dim_head, has_mask=has_mask)
    return pl.pallas_call(
        kernel,
        out_shape=jax.ShapeDtypeStruct((B_, N, dim_out), out_dtype),
        grid=grid,
        in_specs=in_specs,
        out_specs=pl.BlockSpec((G, N, dim_out), lambda i: (i, 0, 0)),
        compiler_params=pltpu.CompilerParams(
            dimension_semantics=("parallel",),
            vmem_limit_bytes=48 << 20),
    )(*args)


# ---------------------------------------------------------------------------
# Pure-JAX f32 reference for the WindowAttention3D core (mirrors PyTorch).
# ---------------------------------------------------------------------------
def window_attention_ref(x_windows, attn_mask, w_qkv, w_proj, b_proj, rel_bias,
                         *, heads, dim_head, scale):
    B_, N, _ = x_windows.shape
    hidden = heads * dim_head
    qkv = x_windows @ w_qkv.T
    qkv = qkv.reshape(B_, N, 3, heads, dim_head).transpose(2, 0, 3, 1, 4)
    q, k, v = qkv[0], qkv[1], qkv[2]                     # (B_, heads, N, d)
    q = q * scale
    attn = jnp.einsum("bhnd,bhmd->bhnm", q, k)
    attn = attn + rel_bias[None]
    if attn_mask is not None:
        nW = attn_mask.shape[0]
        attn = attn.reshape(B_ // nW, nW, heads, N, N) + attn_mask[None, :, None]
        attn = attn.reshape(B_, heads, N, N)
    attn = jax.nn.softmax(attn, axis=-1)
    out = jnp.einsum("bhnm,bhmd->bhnd", attn, v)
    out = out.transpose(0, 2, 1, 3).reshape(B_, N, hidden)
    return out @ w_proj.T + b_proj


# ---------------------------------------------------------------------------
# STWAttentionLayer forward (window plumbing in plain JAX, attention in Pallas).
# ---------------------------------------------------------------------------
def stw_attention_forward(x, params, *, window_size, shift_size, heads, dim_head,
                          use_pallas=True):
    B, C, D, H, W = x.shape
    ws, ss = get_window_size((D, H, W), window_size, shift_size)

    xp = jnp.transpose(x, (0, 2, 3, 4, 1))               # b c d h w -> b d h w c
    pad_d1 = (ws[0] - D % ws[0]) % ws[0]
    pad_b = (ws[1] - H % ws[1]) % ws[1]
    pad_r = (ws[2] - W % ws[2]) % ws[2]
    xp = jnp.pad(xp, ((0, 0), (0, pad_d1), (0, pad_b), (0, pad_r), (0, 0)))
    _, Dp, Hp, Wp, _ = xp.shape

    if any(i > 0 for i in ss):
        shifted = jnp.roll(xp, shift=(-ss[0], -ss[1], -ss[2]), axis=(1, 2, 3))
        attn_mask = jnp.asarray(compute_mask_np(Dp, Hp, Wp, ws, ss))  # (nW, N, N)
    else:
        shifted = xp
        attn_mask = None

    x_windows = window_partition(shifted, ws)            # (B*nW, N, C)
    N = x_windows.shape[1]
    rel_bias = params["rel_bias"][:, :N, :N]              # precomputed (heads, N, N)

    if use_pallas:
        attn_windows = window_attention_pallas(
            x_windows, attn_mask, rel_bias, params["w_qkv_t"], params["w_proj_t"],
            params["b_proj"], heads=heads, dim_head=dim_head)
    else:
        attn_windows = window_attention_ref(
            x_windows, attn_mask, params["w_qkv"], params["w_proj"],
            params["b_proj"], rel_bias, heads=heads, dim_head=dim_head,
            scale=dim_head ** (-0.5))

    shifted = window_reverse(attn_windows, ws, B, Dp, Hp, Wp)
    if any(i > 0 for i in ss):
        xo = jnp.roll(shifted, shift=(ss[0], ss[1], ss[2]), axis=(1, 2, 3))
    else:
        xo = shifted
    xo = xo[:, :D, :H, :W, :]
    return jnp.transpose(xo, (0, 4, 1, 2, 3))            # b d h w c -> b c d h w


def prepare_params(key, dim, heads, dim_head, window_size):
    """Synthetic parameters (PyTorch layouts) plus kernel-ready copies produced
    once outside the hot path: scale folded into the Q columns of W_qkv^T
    BEFORE the bf16 cast, weights pre-transposed + cast to bf16, and the
    relative-position bias gathered once into (heads, N, N) f32."""
    hidden = heads * dim_head
    ks = jax.random.split(key, 4)
    w_qkv = jax.random.normal(ks[0], (3 * hidden, dim), jnp.float32) * 0.02
    w_proj = jax.random.normal(ks[1], (dim, hidden), jnp.float32) * 0.02
    b_proj = jax.random.normal(ks[2], (dim,), jnp.float32) * 0.02
    n_tab = ((2 * window_size[0] - 1) * (2 * window_size[1] - 1)
             * (2 * window_size[2] - 1))
    bias_table = jax.random.normal(ks[3], (n_tab, heads), jnp.float32) * 0.02
    rel_index = jnp.asarray(relative_position_index_np(window_size))

    scale = dim_head ** (-0.5)
    qscale = jnp.concatenate([jnp.full((hidden,), scale, jnp.float32),
                              jnp.ones((2 * hidden,), jnp.float32)])
    w_qkv_t = (w_qkv.T * qscale[None, :]).astype(jnp.bfloat16)   # (dim, 3*hidden)
    w_proj_t = w_proj.T.astype(jnp.bfloat16)                     # (hidden, dim)

    Nfull = window_size[0] * window_size[1] * window_size[2]
    rel_bias = bias_table[rel_index.reshape(-1)].reshape(Nfull, Nfull, heads)
    rel_bias = jnp.transpose(rel_bias, (2, 0, 1)).astype(jnp.float32)

    return dict(w_qkv=w_qkv, w_proj=w_proj, b_proj=b_proj, bias_table=bias_table,
                rel_index=rel_index, w_qkv_t=w_qkv_t, w_proj_t=w_proj_t,
                rel_bias=rel_bias)


if __name__ == "__main__":
    # Module defaults: heads=8, dim_head=32 -> dim must equal heads*dim_head=256
    # (the STW layer's post-attention view requires it). Small spatial dims.
    B, D, H, W = 2, 2, 8, 8
    heads, dim_head = 8, 32
    dim = heads * dim_head
    window_size = (2, 4, 4)

    key = jax.random.PRNGKey(0)
    kx, kp = jax.random.split(key)
    x = jax.random.normal(kx, (B, dim, D, H, W), jnp.float32)
    params = prepare_params(kp, dim, heads, dim_head, window_size)

    # Exercise both the non-shifted (no mask operand) and shifted-window paths.
    for shift_size in ((0, 0, 0), (1, 2, 2)):
        out = stw_attention_forward(x, params, window_size=window_size,
                                    shift_size=shift_size, heads=heads,
                                    dim_head=dim_head, use_pallas=True)
        out = jax.block_until_ready(out)
        ref = stw_attention_forward(x, params, window_size=window_size,
                                    shift_size=shift_size, heads=heads,
                                    dim_head=dim_head, use_pallas=False)
        # bf16 MXU operands + approx softmax reciprocal => looser tolerances
        # than the pure-f32 reference.
        np.testing.assert_allclose(np.asarray(out), np.asarray(ref),
                                   rtol=5e-2, atol=5e-3)

    print("KERNEL_OK")
</pallas_src>

<mosaic_0001>
module attributes {stable_mosaic.version = 11 : i64} {
  func.func @_window_attn_kernel(%arg0: i32, %arg1: memref<2x32x256xbf16, #tpu.memory_space<vmem>>, %arg2: memref<256x768xbf16, #tpu.memory_space<vmem>>, %arg3: memref<256x256xbf16, #tpu.memory_space<vmem>>, %arg4: memref<1x256xf32, #tpu.memory_space<vmem>>, %arg5: memref<8x32x32xf32, #tpu.memory_space<vmem>>, %arg6: memref<2x32x256xf32, #tpu.memory_space<vmem>>) attributes {dimension_semantics = [#tpu.dimension_semantics<parallel>], iteration_bounds = array<i64: 4>, scalar_prefetch = 0 : i64, scratch_operands = 0 : i64, tpu.core_type = #tpu.core_type<tc>, window_params = [{transform_indices = @transform_0, window_bounds = array<i64: 2, 32, 256>}, {pipeline_mode = #tpu.pipeline_mode<synchronous>, transform_indices = @transform_1, window_bounds = array<i64: 256, 768>}, {pipeline_mode = #tpu.pipeline_mode<synchronous>, transform_indices = @transform_2, window_bounds = array<i64: 256, 256>}, {pipeline_mode = #tpu.pipeline_mode<synchronous>, transform_indices = @transform_3, window_bounds = array<i64: 1, 256>}, {pipeline_mode = #tpu.pipeline_mode<synchronous>, transform_indices = @transform_4, window_bounds = array<i64: 8, 32, 32>}, {transform_indices = @transform_5, window_bounds = array<i64: 2, 32, 256>}]} {
    %c0 = arith.constant 0 : index
    %c0_0 = arith.constant 0 : index
    %c0_1 = arith.constant 0 : index
    %0 = vector.load %arg1[%c0, %c0_0, %c0_1] : memref<2x32x256xbf16, #tpu.memory_space<vmem>>, vector<2x32x256xbf16>
    %1 = vector.shape_cast %0 : vector<2x32x256xbf16> to vector<64x256xbf16>
    %c0_2 = arith.constant 0 : index
    %c0_3 = arith.constant 0 : index
    %2 = vector.load %arg2[%c0_2, %c0_3] : memref<256x768xbf16, #tpu.memory_space<vmem>>, vector<256x768xbf16>
    %cst = arith.constant dense<0.000000e+00> : vector<64x768xf32>
    %3 = tpu.matmul %1, %2, %cst {dimension_numbers = #tpu.dot_dimension_numbers<[1], [0], [0], [1], [0, 0, 1, 1], [], []>} : vector<64x256xbf16>, vector<256x768xbf16>, vector<64x768xf32> -> vector<64x768xf32>
    %4 = arith.truncf %3 : vector<64x768xf32> to vector<64x768xbf16>
    %5 = vector.shape_cast %4 : vector<64x768xbf16> to vector<2x32x768xbf16>
    %c0_4 = arith.constant 0 : index
    %c0_5 = arith.constant 0 : index
    %c0_6 = arith.constant 0 : index
    %6 = vector.load %arg5[%c0_4, %c0_5, %c0_6] : memref<8x32x32xf32, #tpu.memory_space<vmem>>, vector<8x32x32xf32>
    %cst_7 = arith.constant 0.000000e+00 : f32
    %7 = vector.broadcast %cst_7 : f32 to vector<64x256xf32>
    %8 = vector.extract_strided_slice %5 {offsets = [0, 0, 0], sizes = [2, 32, 32], strides = [1, 1, 1]} : vector<2x32x768xbf16> to vector<2x32x32xbf16>
    %9 = vector.extract_strided_slice %5 {offsets = [0, 0, 256], sizes = [2, 32, 32], strides = [1, 1, 1]} : vector<2x32x768xbf16> to vector<2x32x32xbf16>
    %10 = vector.extract_strided_slice %5 {offsets = [0, 0, 512], sizes = [2, 32, 32], strides = [1, 1, 1]} : vector<2x32x768xbf16> to vector<2x32x32xbf16>
    "tpu.trace_start"() <{level = 10 : i32, message = "gnd,gmd->gnm"}> : () -> ()
    %cst_8 = arith.constant dense<0.000000e+00> : vector<2x32x32xf32>
    %11 = tpu.matmul %8, %9, %cst_8 {dimension_numbers = #tpu.dot_dimension_numbers<[2], [2], [1], [1], [0, 0, 0, 1, 1, 1], [0], [0]>} : vector<2x32x32xbf16>, vector<2x32x32xbf16>, vector<2x32x32xf32> -> vector<2x32x32xf32>
    "tpu.trace_stop"() : () -> ()
    %12 = vector.extract_strided_slice %6 {offsets = [0, 0, 0], sizes = [1, 32, 32], strides = [1, 1, 1]} : vector<8x32x32xf32> to vector<1x32x32xf32>
    %13 = vector.shape_cast %12 : vector<1x32x32xf32> to vector<32x32xf32>
    %14 = vector.shape_cast %13 : vector<32x32xf32> to vector<1x32x32xf32>
    %15 = vector.broadcast %14 : vector<1x32x32xf32> to vector<2x32x32xf32>
    %16 = arith.addf %11, %15 : vector<2x32x32xf32>
    %cst_9 = arith.constant dense<0xFF800000> : vector<2x32xf32>
    %17 = vector.multi_reduction <maximumf>, %16, %cst_9 [2] : vector<2x32x32xf32> to vector<2x32xf32>
    %18 = vector.shape_cast %17 : vector<2x32xf32> to vector<2x32x1xf32>
    %19 = vector.broadcast %18 : vector<2x32x1xf32> to vector<2x32x32xf32>
    %20 = arith.subf %16, %19 : vector<2x32x32xf32>
    %21 = math.exp %20 : vector<2x32x32xf32>
    %cst_10 = arith.constant dense<0.000000e+00> : vector<2x32xf32>
    %22 = vector.multi_reduction <add>, %21, %cst_10 [2] : vector<2x32x32xf32> to vector<2x32xf32>
    %23 = vector.shape_cast %22 : vector<2x32xf32> to vector<2x32x1xf32>
    %24 = tpu.reciprocal %23 {approx = true} : vector<2x32x1xf32> -> vector<2x32x1xf32>
    %25 = vector.broadcast %24 : vector<2x32x1xf32> to vector<2x32x32xf32>
    %26 = arith.mulf %21, %25 : vector<2x32x32xf32>
    %27 = arith.truncf %26 : vector<2x32x32xf32> to vector<2x32x32xbf16>
    "tpu.trace_start"() <{level = 10 : i32, message = "gnm,gmd->gnd"}> : () -> ()
    %cst_11 = arith.constant dense<0.000000e+00> : vector<2x32x32xf32>
    %28 = tpu.matmul %27, %10, %cst_11 {dimension_numbers = #tpu.dot_dimension_numbers<[2], [1], [1], [2], [0, 0, 0, 1, 1, 2], [0], [0]>} : vector<2x32x32xbf16>, vector<2x32x32xbf16>, vector<2x32x32xf32> -> vector<2x32x32xf32>
    "tpu.trace_stop"() : () -> ()
    %29 = arith.truncf %28 : vector<2x32x32xf32> to vector<2x32x32xbf16>
    %30 = vector.shape_cast %29 : vector<2x32x32xbf16> to vector<64x32xbf16>
    %c0_12 = arith.constant 0 : index
    %c0_13 = arith.constant 0 : index
    %31 = vector.load %arg3[%c0_12, %c0_13] : memref<256x256xbf16, #tpu.memory_space<vmem>>, vector<32x256xbf16>
    %cst_14 = arith.constant dense<0.000000e+00> : vector<64x256xf32>
    %32 = tpu.matmul %30, %31, %cst_14 {dimension_numbers = #tpu.dot_dimension_numbers<[1], [0], [0], [1], [0, 0, 1, 1], [], []>} : vector<64x32xbf16>, vector<32x256xbf16>, vector<64x256xf32> -> vector<64x256xf32>
    %33 = arith.addf %7, %32 : vector<64x256xf32>
    %34 = vector.extract_strided_slice %5 {offsets = [0, 0, 32], sizes = [2, 32, 32], strides = [1, 1, 1]} : vector<2x32x768xbf16> to vector<2x32x32xbf16>
    %35 = vector.extract_strided_slice %5 {offsets = [0, 0, 288], sizes = [2, 32, 32], strides = [1, 1, 1]} : vector<2x32x768xbf16> to vector<2x32x32xbf16>
    %36 = vector.extract_strided_slice %5 {offsets = [0, 0, 544], sizes = [2, 32, 32], strides = [1, 1, 1]} : vector<2x32x768xbf16> to vector<2x32x32xbf16>
    "tpu.trace_start"() <{level = 10 : i32, message = "gnd,gmd->gnm"}> : () -> ()
    %cst_15 = arith.constant dense<0.000000e+00> : vector<2x32x32xf32>
    %37 = tpu.matmul %34, %35, %cst_15 {dimension_numbers = #tpu.dot_dimension_numbers<[2], [2], [1], [1], [0, 0, 0, 1, 1, 1], [0], [0]>} : vector<2x32x32xbf16>, vector<2x32x32xbf16>, vector<2x32x32xf32> -> vector<2x32x32xf32>
    "tpu.trace_stop"() : () -> ()
    %38 = vector.extract_strided_slice %6 {offsets = [1, 0, 0], sizes = [1, 32, 32], strides = [1, 1, 1]} : vector<8x32x32xf32> to vector<1x32x32xf32>
    %39 = vector.shape_cast %38 : vector<1x32x32xf32> to vector<32x32xf32>
    %40 = vector.shape_cast %39 : vector<32x32xf32> to vector<1x32x32xf32>
    %41 = vector.broadcast %40 : vector<1x32x32xf32> to vector<2x32x32xf32>
    %42 = arith.addf %37, %41 : vector<2x32x32xf32>
    %cst_16 = arith.constant dense<0xFF800000> : vector<2x32xf32>
    %43 = vector.multi_reduction <maximumf>, %42, %cst_16 [2] : vector<2x32x32xf32> to vector<2x32xf32>
    %44 = vector.shape_cast %43 : vector<2x32xf32> to vector<2x32x1xf32>
    %45 = vector.broadcast %44 : vector<2x32x1xf32> to vector<2x32x32xf32>
    %46 = arith.subf %42, %45 : vector<2x32x32xf32>
    %47 = math.exp %46 : vector<2x32x32xf32>
    %cst_17 = arith.constant dense<0.000000e+00> : vector<2x32xf32>
    %48 = vector.multi_reduction <add>, %47, %cst_17 [2] : vector<2x32x32xf32> to vector<2x32xf32>
    %49 = vector.shape_cast %48 : vector<2x32xf32> to vector<2x32x1xf32>
    %50 = tpu.reciprocal %49 {approx = true} : vector<2x32x1xf32> -> vector<2x32x1xf32>
    %51 = vector.broadcast %50 : vector<2x32x1xf32> to vector<2x32x32xf32>
    %52 = arith.mulf %47, %51 : vector<2x32x32xf32>
    %53 = arith.truncf %52 : vector<2x32x32xf32> to vector<2x32x32xbf16>
    "tpu.trace_start"() <{level = 10 : i32, message = "gnm,gmd->gnd"}> : () -> ()
    %cst_18 = arith.constant dense<0.000000e+00> : vector<2x32x32xf32>
    %54 = tpu.matmul %53, %36, %cst_18 {dimension_numbers = #tpu.dot_dimension_numbers<[2], [1], [1], [2], [0, 0, 0, 1, 1, 2], [0], [0]>} : vector<2x32x32xbf16>, vector<2x32x32xbf16>, vector<2x32x32xf32> -> vector<2x32x32xf32>
    "tpu.trace_stop"() : () -> ()
    %55 = arith.truncf %54 : vector<2x32x32xf32> to vector<2x32x32xbf16>
    %56 = vector.shape_cast %55 : vector<2x32x32xbf16> to vector<64x32xbf16>
    %c32 = arith.constant 32 : index
    %c0_19 = arith.constant 0 : index
    %57 = vector.load %arg3[%c32, %c0_19] : memref<256x256xbf16, #tpu.memory_space<vmem>>, vector<32x256xbf16>
    %cst_20 = arith.constant dense<0.000000e+00> : vector<64x256xf32>
    %58 = tpu.matmul %56, %57, %cst_20 {dimension_numbers = #tpu.dot_dimension_numbers<[1], [0], [0], [1], [0, 0, 1, 1], [], []>} : vector<64x32xbf16>, vector<32x256xbf16>, vector<64x256xf32> -> vector<64x256xf32>
    %59 = arith.addf %33, %58 : vector<64x256xf32>
    %60 = vector.extract_strided_slice %5 {offsets = [0, 0, 64], sizes = [2, 32, 32], strides = [1, 1, 1]} : vector<2x32x768xbf16> to vector<2x32x32xbf16>
    %61 = vector.extract_strided_slice %5 {offsets = [0, 0, 320], sizes = [2, 32, 32], strides = [1, 1, 1]} : vector<2x32x768xbf16> to vector<2x32x32xbf16>
    %62 = vector.extract_strided_slice %5 {offsets = [0, 0, 576], sizes = [2, 32, 32], strides = [1, 1, 1]} : vector<2x32x768xbf16> to vector<2x32x32xbf16>
    "tpu.trace_start"() <{level = 10 : i32, message = "gnd,gmd->gnm"}> : () -> ()
    %cst_21 = arith.constant dense<0.000000e+00> : vector<2x32x32xf32>
    %63 = tpu.matmul %60, %61, %cst_21 {dimension_numbers = #tpu.dot_dimension_numbers<[2], [2], [1], [1], [0, 0, 0, 1, 1, 1], [0], [0]>} : vector<2x32x32xbf16>, vector<2x32x32xbf16>, vector<2x32x32xf32> -> vector<2x32x32xf32>
    "tpu.trace_stop"() : () -> ()
    %64 = vector.extract_strided_slice %6 {offsets = [2, 0, 0], sizes = [1, 32, 32], strides = [1, 1, 1]} : vector<8x32x32xf32> to vector<1x32x32xf32>
    %65 = vector.shape_cast %64 : vector<1x32x32xf32> to vector<32x32xf32>
    %66 = vector.shape_cast %65 : vector<32x32xf32> to vector<1x32x32xf32>
    %67 = vector.broadcast %66 : vector<1x32x32xf32> to vector<2x32x32xf32>
    %68 = arith.addf %63, %67 : vector<2x32x32xf32>
    %cst_22 = arith.constant dense<0xFF800000> : vector<2x32xf32>
    %69 = vector.multi_reduction <maximumf>, %68, %cst_22 [2] : vector<2x32x32xf32> to vector<2x32xf32>
    %70 = vector.shape_cast %69 : vector<2x32xf32> to vector<2x32x1xf32>
    %71 = vector.broadcast %70 : vector<2x32x1xf32> to vector<2x32x32xf32>
    %72 = arith.subf %68, %71 : vector<2x32x32xf32>
    %73 = math.exp %72 : vector<2x32x32xf32>
    %cst_23 = arith.constant dense<0.000000e+00> : vector<2x32xf32>
    %74 = vector.multi_reduction <add>, %73, %cst_23 [2] : vector<2x32x32xf32> to vector<2x32xf32>
    %75 = vector.shape_cast %74 : vector<2x32xf32> to vector<2x32x1xf32>
    %76 = tpu.reciprocal %75 {approx = true} : vector<2x32x1xf32> -> vector<2x32x1xf32>
    %77 = vector.broadcast %76 : vector<2x32x1xf32> to vector<2x32x32xf32>
    %78 = arith.mulf %73, %77 : vector<2x32x32xf32>
    %79 = arith.truncf %78 : vector<2x32x32xf32> to vector<2x32x32xbf16>
    "tpu.trace_start"() <{level = 10 : i32, message = "gnm,gmd->gnd"}> : () -> ()
    %cst_24 = arith.constant dense<0.000000e+00> : vector<2x32x32xf32>
    %80 = tpu.matmul %79, %62, %cst_24 {dimension_numbers = #tpu.dot_dimension_numbers<[2], [1], [1], [2], [0, 0, 0, 1, 1, 2], [0], [0]>} : vector<2x32x32xbf16>, vector<2x32x32xbf16>, vector<2x32x32xf32> -> vector<2x32x32xf32>
    "tpu.trace_stop"() : () -> ()
    %81 = arith.truncf %80 : vector<2x32x32xf32> to vector<2x32x32xbf16>
    %82 = vector.shape_cast %81 : vector<2x32x32xbf16> to vector<64x32xbf16>
    %c64 = arith.constant 64 : index
    %c0_25 = arith.constant 0 : index
    %83 = vector.load %arg3[%c64, %c0_25] : memref<256x256xbf16, #tpu.memory_space<vmem>>, vector<32x256xbf16>
    %cst_26 = arith.constant dense<0.000000e+00> : vector<64x256xf32>
    %84 = tpu.matmul %82, %83, %cst_26 {dimension_numbers = #tpu.dot_dimension_numbers<[1], [0], [0], [1], [0, 0, 1, 1], [], []>} : vector<64x32xbf16>, vector<32x256xbf16>, vector<64x256xf32> -> vector<64x256xf32>
    %85 = arith.addf %59, %84 : vector<64x256xf32>
    %86 = vector.extract_strided_slice %5 {offsets = [0, 0, 96], sizes = [2, 32, 32], strides = [1, 1, 1]} : vector<2x32x768xbf16> to vector<2x32x32xbf16>
    %87 = vector.extract_strided_slice %5 {offsets = [0, 0, 352], sizes = [2, 32, 32], strides = [1, 1, 1]} : vector<2x32x768xbf16> to vector<2x32x32xbf16>
    %88 = vector.extract_strided_slice %5 {offsets = [0, 0, 608], sizes = [2, 32, 32], strides = [1, 1, 1]} : vector<2x32x768xbf16> to vector<2x32x32xbf16>
    "tpu.trace_start"() <{level = 10 : i32, message = "gnd,gmd->gnm"}> : () -> ()
    %cst_27 = arith.constant dense<0.000000e+00> : vector<2x32x32xf32>
    %89 = tpu.matmul %86, %87, %cst_27 {dimension_numbers = #tpu.dot_dimension_numbers<[2], [2], [1], [1], [0, 0, 0, 1, 1, 1], [0], [0]>} : vector<2x32x32xbf16>, vector<2x32x32xbf16>, vector<2x32x32xf32> -> vector<2x32x32xf32>
    "tpu.trace_stop"() : () -> ()
    %90 = vector.extract_strided_slice %6 {offsets = [3, 0, 0], sizes = [1, 32, 32], strides = [1, 1, 1]} : vector<8x32x32xf32> to vector<1x32x32xf32>
    %91 = vector.shape_cast %90 : vector<1x32x32xf32> to vector<32x32xf32>
    %92 = vector.shape_cast %91 : vector<32x32xf32> to vector<1x32x32xf32>
    %93 = vector.broadcast %92 : vector<1x32x32xf32> to vector<2x32x32xf32>
    %94 = arith.addf %89, %93 : vector<2x32x32xf32>
    %cst_28 = arith.constant dense<0xFF800000> : vector<2x32xf32>
    %95 = vector.multi_reduction <maximumf>, %94, %cst_28 [2] : vector<2x32x32xf32> to vector<2x32xf32>
    %96 = vector.shape_cast %95 : vector<2x32xf32> to vector<2x32x1xf32>
    %97 = vector.broadcast %96 : vector<2x32x1xf32> to vector<2x32x32xf32>
    %98 = arith.subf %94, %97 : vector<2x32x32xf32>
    %99 = math.exp %98 : vector<2x32x32xf32>
    %cst_29 = arith.constant dense<0.000000e+00> : vector<2x32xf32>
    %100 = vector.multi_reduction <add>, %99, %cst_29 [2] : vector<2x32x32xf32> to vector<2x32xf32>
    %101 = vector.shape_cast %100 : vector<2x32xf32> to vector<2x32x1xf32>
    %102 = tpu.reciprocal %101 {approx = true} : vector<2x32x1xf32> -> vector<2x32x1xf32>
    %103 = vector.broadcast %102 : vector<2x32x1xf32> to vector<2x32x32xf32>
    %104 = arith.mulf %99, %103 : vector<2x32x32xf32>
    %105 = arith.truncf %104 : vector<2x32x32xf32> to vector<2x32x32xbf16>
    "tpu.trace_start"() <{level = 10 : i32, message = "gnm,gmd->gnd"}> : () -> ()
    %cst_30 = arith.constant dense<0.000000e+00> : vector<2x32x32xf32>
    %106 = tpu.matmul %105, %88, %cst_30 {dimension_numbers = #tpu.dot_dimension_numbers<[2], [1], [1], [2], [0, 0, 0, 1, 1, 2], [0], [0]>} : vector<2x32x32xbf16>, vector<2x32x32xbf16>, vector<2x32x32xf32> -> vector<2x32x32xf32>
    "tpu.trace_stop"() : () -> ()
    %107 = arith.truncf %106 : vector<2x32x32xf32> to vector<2x32x32xbf16>
    %108 = vector.shape_cast %107 : vector<2x32x32xbf16> to vector<64x32xbf16>
    %c96 = arith.constant 96 : index
    %c0_31 = arith.constant 0 : index
    %109 = vector.load %arg3[%c96, %c0_31] : memref<256x256xbf16, #tpu.memory_space<vmem>>, vector<32x256xbf16>
    %cst_32 = arith.constant dense<0.000000e+00> : vector<64x256xf32>
    %110 = tpu.matmul %108, %109, %cst_32 {dimension_numbers = #tpu.dot_dimension_numbers<[1], [0], [0], [1], [0, 0, 1, 1], [], []>} : vector<64x32xbf16>, vector<32x256xbf16>, vector<64x256xf32> -> vector<64x256xf32>
    %111 = arith.addf %85, %110 : vector<64x256xf32>
    %112 = vector.extract_strided_slice %5 {offsets = [0, 0, 128], sizes = [2, 32, 32], strides = [1, 1, 1]} : vector<2x32x768xbf16> to vector<2x32x32xbf16>
    %113 = vector.extract_strided_slice %5 {offsets = [0, 0, 384], sizes = [2, 32, 32], strides = [1, 1, 1]} : vector<2x32x768xbf16> to vector<2x32x32xbf16>
    %114 = vector.extract_strided_slice %5 {offsets = [0, 0, 640], sizes = [2, 32, 32], strides = [1, 1, 1]} : vector<2x32x768xbf16> to vector<2x32x32xbf16>
    "tpu.trace_start"() <{level = 10 : i32, message = "gnd,gmd->gnm"}> : () -> ()
    %cst_33 = arith.constant dense<0.000000e+00> : vector<2x32x32xf32>
    %115 = tpu.matmul %112, %113, %cst_33 {dimension_numbers = #tpu.dot_dimension_numbers<[2], [2], [1], [1], [0, 0, 0, 1, 1, 1], [0], [0]>} : vector<2x32x32xbf16>, vector<2x32x32xbf16>, vector<2x32x32xf32> -> vector<2x32x32xf32>
    "tpu.trace_stop"() : () -> ()
    %116 = vector.extract_strided_slice %6 {offsets = [4, 0, 0], sizes = [1, 32, 32], strides = [1, 1, 1]} : vector<8x32x32xf32> to vector<1x32x32xf32>
    %117 = vector.shape_cast %116 : vector<1x32x32xf32> to vector<32x32xf32>
    %118 = vector.shape_cast %117 : vector<32x32xf32> to vector<1x32x32xf32>
    %119 = vector.broadcast %118 : vector<1x32x32xf32> to vector<2x32x32xf32>
    %120 = arith.addf %115, %119 : vector<2x32x32xf32>
    %cst_34 = arith.constant dense<0xFF800000> : vector<2x32xf32>
    %121 = vector.multi_reduction <maximumf>, %120, %cst_34 [2] : vector<2x32x32xf32> to vector<2x32xf32>
    %122 = vector.shape_cast %121 : vector<2x32xf32> to vector<2x32x1xf32>
    %123 = vector.broadcast %122 : vector<2x32x1xf32> to vector<2x32x32xf32>
    %124 = arith.subf %120, %123 : vector<2x32x32xf32>
    %125 = math.exp %124 : vector<2x32x32xf32>
    %cst_35 = arith.constant dense<0.000000e+00> : vector<2x32xf32>
    %126 = vector.multi_reduction <add>, %125, %cst_35 [2] : vector<2x32x32xf32> to vector<2x32xf32>
    %127 = vector.shape_cast %126 : vector<2x32xf32> to vector<2x32x1xf32>
    %128 = tpu.reciprocal %127 {approx = true} : vector<2x32x1xf32> -> vector<2x32x1xf32>
    %129 = vector.broadcast %128 : vector<2x32x1xf32> to vector<2x32x32xf32>
    %130 = arith.mulf %125, %129 : vector<2x32x32xf32>
    %131 = arith.truncf %130 : vector<2x32x32xf32> to vector<2x32x32xbf16>
    "tpu.trace_start"() <{level = 10 : i32, message = "gnm,gmd->gnd"}> : () -> ()
    %cst_36 = arith.constant dense<0.000000e+00> : vector<2x32x32xf32>
    %132 = tpu.matmul %131, %114, %cst_36 {dimension_numbers = #tpu.dot_dimension_numbers<[2], [1], [1], [2], [0, 0, 0, 1, 1, 2], [0], [0]>} : vector<2x32x32xbf16>, vector<2x32x32xbf16>, vector<2x32x32xf32> -> vector<2x32x32xf32>
    "tpu.trace_stop"() : () -> ()
    %133 = arith.truncf %132 : vector<2x32x32xf32> to vector<2x32x32xbf16>
    %134 = vector.shape_cast %133 : vector<2x32x32xbf16> to vector<64x32xbf16>
    %c128 = arith.constant 128 : index
    %c0_37 = arith.constant 0 : index
    %135 = vector.load %arg3[%c128, %c0_37] : memref<256x256xbf16, #tpu.memory_space<vmem>>, vector<32x256xbf16>
    %cst_38 = arith.constant dense<0.000000e+00> : vector<64x256xf32>
    %136 = tpu.matmul %134, %135, %cst_38 {dimension_numbers = #tpu.dot_dimension_numbers<[1], [0], [0], [1], [0, 0, 1, 1], [], []>} : vector<64x32xbf16>, vector<32x256xbf16>, vector<64x256xf32> -> vector<64x256xf32>
    %137 = arith.addf %111, %136 : vector<64x256xf32>
    %138 = vector.extract_strided_slice %5 {offsets = [0, 0, 160], sizes = [2, 32, 32], strides = [1, 1, 1]} : vector<2x32x768xbf16> to vector<2x32x32xbf16>
    %139 = vector.extract_strided_slice %5 {offsets = [0, 0, 416], sizes = [2, 32, 32], strides = [1, 1, 1]} : vector<2x32x768xbf16> to vector<2x32x32xbf16>
    %140 = vector.extract_strided_slice %5 {offsets = [0, 0, 672], sizes = [2, 32, 32], strides = [1, 1, 1]} : vector<2x32x768xbf16> to vector<2x32x32xbf16>
    "tpu.trace_start"() <{level = 10 : i32, message = "gnd,gmd->gnm"}> : () -> ()
    %cst_39 = arith.constant dense<0.000000e+00> : vector<2x32x32xf32>
    %141 = tpu.matmul %138, %139, %cst_39 {dimension_numbers = #tpu.dot_dimension_numbers<[2], [2], [1], [1], [0, 0, 0, 1, 1, 1], [0], [0]>} : vector<2x32x32xbf16>, vector<2x32x32xbf16>, vector<2x32x32xf32> -> vector<2x32x32xf32>
    "tpu.trace_stop"() : () -> ()
    %142 = vector.extract_strided_slice %6 {offsets = [5, 0, 0], sizes = [1, 32, 32], strides = [1, 1, 1]} : vector<8x32x32xf32> to vector<1x32x32xf32>
    %143 = vector.shape_cast %142 : vector<1x32x32xf32> to vector<32x32xf32>
    %144 = vector.shape_cast %143 : vector<32x32xf32> to vector<1x32x32xf32>
    %145 = vector.broadcast %144 : vector<1x32x32xf32> to vector<2x32x32xf32>
    %146 = arith.addf %141, %145 : vector<2x32x32xf32>
    %cst_40 = arith.constant dense<0xFF800000> : vector<2x32xf32>
    %147 = vector.multi_reduction <maximumf>, %146, %cst_40 [2] : vector<2x32x32xf32> to vector<2x32xf32>
    %148 = vector.shape_cast %147 : vector<2x32xf32> to vector<2x32x1xf32>
    %149 = vector.broadcast %148 : vector<2x32x1xf32> to vector<2x32x32xf32>
    %150 = arith.subf %146, %149 : vector<2x32x32xf32>
    %151 = math.exp %150 : vector<2x32x32xf32>
    %cst_41 = arith.constant dense<0.000000e+00> : vector<2x32xf32>
    %152 = vector.multi_reduction <add>, %151, %cst_41 [2] : vector<2x32x32xf32> to vector<2x32xf32>
    %153 = vector.shape_cast %152 : vector<2x32xf32> to vector<2x32x1xf32>
    %154 = tpu.reciprocal %153 {approx = true} : vector<2x32x1xf32> -> vector<2x32x1xf32>
    %155 = vector.broadcast %154 : vector<2x32x1xf32> to vector<2x32x32xf32>
    %156 = arith.mulf %151, %155 : vector<2x32x32xf32>
    %157 = arith.truncf %156 : vector<2x32x32xf32> to vector<2x32x32xbf16>
    "tpu.trace_start"() <{level = 10 : i32, message = "gnm,gmd->gnd"}> : () -> ()
    %cst_42 = arith.constant dense<0.000000e+00> : vector<2x32x32xf32>
    %158 = tpu.matmul %157, %140, %cst_42 {dimension_numbers = #tpu.dot_dimension_numbers<[2], [1], [1], [2], [0, 0, 0, 1, 1, 2], [0], [0]>} : vector<2x32x32xbf16>, vector<2x32x32xbf16>, vector<2x32x32xf32> -> vector<2x32x32xf32>
    "tpu.trace_stop"() : () -> ()
    %159 = arith.truncf %158 : vector<2x32x32xf32> to vector<2x32x32xbf16>
    %160 = vector.shape_cast %159 : vector<2x32x32xbf16> to vector<64x32xbf16>
    %c160 = arith.constant 160 : index
    %c0_43 = arith.constant 0 : index
    %161 = vector.load %arg3[%c160, %c0_43] : memref<256x256xbf16, #tpu.memory_space<vmem>>, vector<32x256xbf16>
    %cst_44 = arith.constant dense<0.000000e+00> : vector<64x256xf32>
    %162 = tpu.matmul %160, %161, %cst_44 {dimension_numbers = #tpu.dot_dimension_numbers<[1], [0], [0], [1], [0, 0, 1, 1], [], []>} : vector<64x32xbf16>, vector<32x256xbf16>, vector<64x256xf32> -> vector<64x256xf32>
    %163 = arith.addf %137, %162 : vector<64x256xf32>
    %164 = vector.extract_strided_slice %5 {offsets = [0, 0, 192], sizes = [2, 32, 32], strides = [1, 1, 1]} : vector<2x32x768xbf16> to vector<2x32x32xbf16>
    %165 = vector.extract_strided_slice %5 {offsets = [0, 0, 448], sizes = [2, 32, 32], strides = [1, 1, 1]} : vector<2x32x768xbf16> to vector<2x32x32xbf16>
    %166 = vector.extract_strided_slice %5 {offsets = [0, 0, 704], sizes = [2, 32, 32], strides = [1, 1, 1]} : vector<2x32x768xbf16> to vector<2x32x32xbf16>
    "tpu.trace_start"() <{level = 10 : i32, message = "gnd,gmd->gnm"}> : () -> ()
    %cst_45 = arith.constant dense<0.000000e+00> : vector<2x32x32xf32>
    %167 = tpu.matmul %164, %165, %cst_45 {dimension_numbers = #tpu.dot_dimension_numbers<[2], [2], [1], [1], [0, 0, 0, 1, 1, 1], [0], [0]>} : vector<2x32x32xbf16>, vector<2x32x32xbf16>, vector<2x32x32xf32> -> vector<2x32x32xf32>
    "tpu.trace_stop"() : () -> ()
    %168 = vector.extract_strided_slice %6 {offsets = [6, 0, 0], sizes = [1, 32, 32], strides = [1, 1, 1]} : vector<8x32x32xf32> to vector<1x32x32xf32>
    %169 = vector.shape_cast %168 : vector<1x32x32xf32> to vector<32x32xf32>
    %170 = vector.shape_cast %169 : vector<32x32xf32> to vector<1x32x32xf32>
    %171 = vector.broadcast %170 : vector<1x32x32xf32> to vector<2x32x32xf32>
    %172 = arith.addf %167, %171 : vector<2x32x32xf32>
    %cst_46 = arith.constant dense<0xFF800000> : vector<2x32xf32>
    %173 = vector.multi_reduction <maximumf>, %172, %cst_46 [2] : vector<2x32x32xf32> to vector<2x32xf32>
    %174 = vector.shape_cast %173 : vector<2x32xf32> to vector<2x32x1xf32>
    %175 = vector.broadcast %174 : vector<2x32x1xf32> to vector<2x32x32xf32>
    %176 = arith.subf %172, %175 : vector<2x32x32xf32>
    %177 = math.exp %176 : vector<2x32x32xf32>
    %cst_47 = arith.constant dense<0.000000e+00> : vector<2x32xf32>
    %178 = vector.multi_reduction <add>, %177, %cst_47 [2] : vector<2x32x32xf32> to vector<2x32xf32>
    %179 = vector.shape_cast %178 : vector<2x32xf32> to vector<2x32x1xf32>
    %180 = tpu.reciprocal %179 {approx = true} : vector<2x32x1xf32> -> vector<2x32x1xf32>
    %181 = vector.broadcast %180 : vector<2x32x1xf32> to vector<2x32x32xf32>
    %182 = arith.mulf %177, %181 : vector<2x32x32xf32>
    %183 = arith.truncf %182 : vector<2x32x32xf32> to vector<2x32x32xbf16>
    "tpu.trace_start"() <{level = 10 : i32, message = "gnm,gmd->gnd"}> : () -> ()
    %cst_48 = arith.constant dense<0.000000e+00> : vector<2x32x32xf32>
    %184 = tpu.matmul %183, %166, %cst_48 {dimension_numbers = #tpu.dot_dimension_numbers<[2], [1], [1], [2], [0, 0, 0, 1, 1, 2], [0], [0]>} : vector<2x32x32xbf16>, vector<2x32x32xbf16>, vector<2x32x32xf32> -> vector<2x32x32xf32>
    "tpu.trace_stop"() : () -> ()
    %185 = arith.truncf %184 : vector<2x32x32xf32> to vector<2x32x32xbf16>
    %186 = vector.shape_cast %185 : vector<2x32x32xbf16> to vector<64x32xbf16>
    %c192 = arith.constant 192 : index
    %c0_49 = arith.constant 0 : index
    %187 = vector.load %arg3[%c192, %c0_49] : memref<256x256xbf16, #tpu.memory_space<vmem>>, vector<32x256xbf16>
    %cst_50 = arith.constant dense<0.000000e+00> : vector<64x256xf32>
    %188 = tpu.matmul %186, %187, %cst_50 {dimension_numbers = #tpu.dot_dimension_numbers<[1], [0], [0], [1], [0, 0, 1, 1], [], []>} : vector<64x32xbf16>, vector<32x256xbf16>, vector<64x256xf32> -> vector<64x256xf32>
    %189 = arith.addf %163, %188 : vector<64x256xf32>
    %190 = vector.extract_strided_slice %5 {offsets = [0, 0, 224], sizes = [2, 32, 32], strides = [1, 1, 1]} : vector<2x32x768xbf16> to vector<2x32x32xbf16>
    %191 = vector.extract_strided_slice %5 {offsets = [0, 0, 480], sizes = [2, 32, 32], strides = [1, 1, 1]} : vector<2x32x768xbf16> to vector<2x32x32xbf16>
    %192 = vector.extract_strided_slice %5 {offsets = [0, 0, 736], sizes = [2, 32, 32], strides = [1, 1, 1]} : vector<2x32x768xbf16> to vector<2x32x32xbf16>
    "tpu.trace_start"() <{level = 10 : i32, message = "gnd,gmd->gnm"}> : () -> ()
    %cst_51 = arith.constant dense<0.000000e+00> : vector<2x32x32xf32>
    %193 = tpu.matmul %190, %191, %cst_51 {dimension_numbers = #tpu.dot_dimension_numbers<[2], [2], [1], [1], [0, 0, 0, 1, 1, 1], [0], [0]>} : vector<2x32x32xbf16>, vector<2x32x32xbf16>, vector<2x32x32xf32> -> vector<2x32x32xf32>
    "tpu.trace_stop"() : () -> ()
    %194 = vector.extract_strided_slice %6 {offsets = [7, 0, 0], sizes = [1, 32, 32], strides = [1, 1, 1]} : vector<8x32x32xf32> to vector<1x32x32xf32>
    %195 = vector.shape_cast %194 : vector<1x32x32xf32> to vector<32x32xf32>
    %196 = vector.shape_cast %195 : vector<32x32xf32> to vector<1x32x32xf32>
    %197 = vector.broadcast %196 : vector<1x32x32xf32> to vector<2x32x32xf32>
    %198 = arith.addf %193, %197 : vector<2x32x32xf32>
    %cst_52 = arith.constant dense<0xFF800000> : vector<2x32xf32>
    %199 = vector.multi_reduction <maximumf>, %198, %cst_52 [2] : vector<2x32x32xf32> to vector<2x32xf32>
    %200 = vector.shape_cast %199 : vector<2x32xf32> to vector<2x32x1xf32>
    %201 = vector.broadcast %200 : vector<2x32x1xf32> to vector<2x32x32xf32>
    %202 = arith.subf %198, %201 : vector<2x32x32xf32>
    %203 = math.exp %202 : vector<2x32x32xf32>
    %cst_53 = arith.constant dense<0.000000e+00> : vector<2x32xf32>
    %204 = vector.multi_reduction <add>, %203, %cst_53 [2] : vector<2x32x32xf32> to vector<2x32xf32>
    %205 = vector.shape_cast %204 : vector<2x32xf32> to vector<2x32x1xf32>
    %206 = tpu.reciprocal %205 {approx = true} : vector<2x32x1xf32> -> vector<2x32x1xf32>
    %207 = vector.broadcast %206 : vector<2x32x1xf32> to vector<2x32x32xf32>
    %208 = arith.mulf %203, %207 : vector<2x32x32xf32>
    %209 = arith.truncf %208 : vector<2x32x32xf32> to vector<2x32x32xbf16>
    "tpu.trace_start"() <{level = 10 : i32, message = "gnm,gmd->gnd"}> : () -> ()
    %cst_54 = arith.constant dense<0.000000e+00> : vector<2x32x32xf32>
    %210 = tpu.matmul %209, %192, %cst_54 {dimension_numbers = #tpu.dot_dimension_numbers<[2], [1], [1], [2], [0, 0, 0, 1, 1, 2], [0], [0]>} : vector<2x32x32xbf16>, vector<2x32x32xbf16>, vector<2x32x32xf32> -> vector<2x32x32xf32>
    "tpu.trace_stop"() : () -> ()
    %211 = arith.truncf %210 : vector<2x32x32xf32> to vector<2x32x32xbf16>
    %212 = vector.shape_cast %211 : vector<2x32x32xbf16> to vector<64x32xbf16>
    %c224 = arith.constant 224 : index
    %c0_55 = arith.constant 0 : index
    %213 = vector.load %arg3[%c224, %c0_55] : memref<256x256xbf16, #tpu.memory_space<vmem>>, vector<32x256xbf16>
    %cst_56 = arith.constant dense<0.000000e+00> : vector<64x256xf32>
    %214 = tpu.matmul %212, %213, %cst_56 {dimension_numbers = #tpu.dot_dimension_numbers<[1], [0], [0], [1], [0, 0, 1, 1], [], []>} : vector<64x32xbf16>, vector<32x256xbf16>, vector<64x256xf32> -> vector<64x256xf32>
    %215 = arith.addf %189, %214 : vector<64x256xf32>
    %c0_57 = arith.constant 0 : index
    %c0_58 = arith.constant 0 : index
    %216 = vector.load %arg4[%c0_57, %c0_58] : memref<1x256xf32, #tpu.memory_space<vmem>>, vector<1x256xf32>
    %217 = vector.broadcast %216 : vector<1x256xf32> to vector<64x256xf32>
    %218 = arith.addf %215, %217 : vector<64x256xf32>
    %219 = vector.shape_cast %218 : vector<64x256xf32> to vector<2x32x256xf32>
    %c0_59 = arith.constant 0 : index
    %c0_60 = arith.constant 0 : index
    %c0_61 = arith.constant 0 : index
    %220 = vector.load %arg6[%c0_59, %c0_60, %c0_61] : memref<2x32x256xf32, #tpu.memory_space<vmem>>, vector<2x32x256xf32>
    tpu.vector_store %arg6[%c0_59, %c0_60, %c0_61], %219 {strides = array<i32>} : memref<2x32x256xf32, #tpu.memory_space<vmem>>, vector<2x32x256xf32>,
    return
  }
  func.func @transform_0(%arg0: i32) -> (i32, i32, i32) {
    %c0_i32 = arith.constant 0 : i32
    %c0_i32_0 = arith.constant 0 : i32
    %c0_i32_1 = arith.constant 0 : i32
    return %arg0, %c0_i32, %c0_i32_0 : i32, i32, i32
  }
  func.func @transform_1(%arg0: i32) -> (i32, i32) {
    %c0_i32 = arith.constant 0 : i32
    %c0_i32_0 = arith.constant 0 : i32
    %c0_i32_1 = arith.constant 0 : i32
    return %c0_i32, %c0_i32_0 : i32, i32
  }
  func.func @transform_2(%arg0: i32) -> (i32, i32) {
    %c0_i32 = arith.constant 0 : i32
    %c0_i32_0 = arith.constant 0 : i32
    %c0_i32_1 = arith.constant 0 : i32
    return %c0_i32, %c0_i32_0 : i32, i32
  }
  func.func @transform_3(%arg0: i32) -> (i32, i32) {
    %c0_i32 = arith.constant 0 : i32
    %c0_i32_0 = arith.constant 0 : i32
    %c0_i32_1 = arith.constant 0 : i32
    return %c0_i32, %c0_i32_0 : i32, i32
  }
  func.func @transform_4(%arg0: i32) -> (i32, i32, i32) {
    %c0_i32 = arith.constant 0 : i32
    %c0_i32_0 = arith.constant 0 : i32
    %c0_i32_1 = arith.constant 0 : i32
    %c0_i32_2 = arith.constant 0 : i32
    return %c0_i32, %c0_i32_0, %c0_i32_1 : i32, i32, i32
  }
  func.func @transform_5(%arg0: i32) -> (i32, i32, i32) {
    %c0_i32 = arith.constant 0 : i32
    %c0_i32_0 = arith.constant 0 : i32
    %c0_i32_1 = arith.constant 0 : i32
    return %arg0, %c0_i32, %c0_i32_0 : i32, i32, i32
  }
}

</mosaic_0001>

<bundles_post_ra>
// kernel: tpu_custom_call.1
= control target key start
LH: loop header
LB: loop body
LE: loop exit
PB: predicated region body
PF: predicated region fallthrough
CT: control target
= control target key end

     0   :  { %10 = vsyncpa [#allocation3], 0  ;;  %s8088_s0 = inlined_call_operand.hbm [shape: bf16[8,32,256], index: 0, kind: input, shape index: {}]   ;;  %s8089_s1 = inlined_call_operand.hbm [shape: bf16[256,768], index: 1, kind: input, shape index: {}]   ;;  %s8090_s2 = inlined_call_operand.hbm [shape: bf16[256,256], index: 2, kind: input, shape index: {}]   ;;  %s8091_s3 = inlined_call_operand.vmem [shape: f32[1,256], index: 3, kind: input, shape index: {}]   ;;  %s8092_s4 = inlined_call_operand.hbm [shape: f32[8,32,32], index: 4, kind: input, shape index: {}]   ;;  %s8093_s5 = inlined_call_operand.hbm [shape: f32[8,32,256], index: 5, kind: output, shape index: {}]  }
   0x1   :  { %12 = vsyncpa [#allocation3 + $0x1], 0 }
   0x2   :  { %13 = vsyncpa [#allocation6], 0 }
   0x3   :  { %14 = vsyncpa [#allocation9], 0 }
   0x4   :  { %15 = vsyncpa [#allocation4], 0 }
   0x5   :  { %17 = vsyncpa [#allocation4 + $0x1], 0  ;;  %s6359_s18 = smov 0   ;;  %s6361_s19 = smov 0  }
   0x6   :  { %s6363_s20 = smov 0   ;;  %s6365_s21 = smov 0  }
   0x7 LB: > { %s6380_s22 = sadd.s32 4294967295, %s6315_s21   ;;  %s4929_s23 = sadd.s32 4294967294, %s6315_s21   ;;  %s6315_s21 = sphi %s6365_s21, %s8176_s21   ;;  %s6311_s20 = sphi %s6363_s20, %s8175_s20   ;;  %s6307_s19 = sphi %s6361_s19, %s8174_s19   ;;  %s6303_s18 = sphi %s6359_s18, %s8173_s18  }
   0x8   : > { %p43_p0 = scmp.ne.s32.totalorder %s6307_s19, %s6303_s18  ;;  %p44_p1 = scmp.eq.s32.totalorder %s6380_s22, 0 }
   0x9   : > { %p151_p2 = scmp.eq.s32.totalorder %s6380_s22, 3  ;;  %p157_p3 = scmp.eq.s32.totalorder %s4929_s23, 3 }
   0xa   : > { %p6389_p4 = por %p44_p1, %p43_p0  ;;  %p4930_p5 = scmp.ge.s32.totalorder %s6315_s21, 1 }
   0xb   : > { %p6394_p6 = por %p157_p3, %p43_p0  ;;  %p164_p7 = scmp.lt.s32.totalorder %s6315_s21, 5 }
   0xc   : > { %s175_s28 = sshll.u32 %s8089_s1, 4  ;;  %s6317_s30 = smov [#allocation5]   ;;  %s176_s28 = int_to_ptr.hbm [resolvable:$true] %s175_s28 }
   0xd   : > { %p6402_p8 = pnand %p4930_p5, %p164_p7  ;;  %s177_s6 = sshll.u32 %s6317_s30, 4  ;;  %s178_s6 = int_to_ptr.vmem [resolvable:$true] %s177_s6 }
   0xe   : > { %s189_s10 = sshll.u32 %s8090_s2, 4  ;;  %s6318_s11 = smov 384   ;;  %s190_s10 = int_to_ptr.hbm [resolvable:$true] %s189_s10 }
   0xf   : > { %p5795_p9 = pneg %p6402_p8  ;;  %s6319_s12 = smov 24  }
  0x10   : > { %s6320_s13 = smov [#allocation7]   ;;  %s8094_s15 = smov 128  }
  0x11   : > { %p6410_p10 = pnand %p5795_p9, %p44_p1  ;;  %s191_s14 = sshll.u32 %s6320_s13, 4  ;;  %s192_s14 = int_to_ptr.vmem [resolvable:$true] %s191_s14 }
  0x12   : > { %s6322_s16 = smov 8   ;;  %s206_s26 = sshll.u32 %s8092_s4, 4  ;;  %s207_s26 = int_to_ptr.hbm [resolvable:$true] %s206_s26 }
  0x13   : > { %5798 = dma.hbm_to_vmem [thread:$0]  (!%p6410_p10), %s176_s28, 12288, %s178_s6, [#allocation6], %s6318_s11, %s6318_s11, %s6319_s12  }
  0x14   : > { %5801 = dma.hbm_to_vmem [thread:$0]  (!%p6410_p10), %s190_s10, 4096, %s192_s14, [#allocation6], %s8094_s15, %s8094_s15, %s6322_s16  }
  0x15   : > { %s6323_s27 = smov [#allocation8]   ;;  %s6433_s30 = sadd.s32 1, %s6315_s21  }
  0x16   : > { %s208_s28 = sshll.u32 %s6323_s27, 4  ;;  %s27_s6 = ssub.s32 %s6315_s21, %s6433_s30  ;;  %s209_s28 = int_to_ptr.vmem [resolvable:$true] %s208_s28 }
  0x17   : > { %5804 = dma.hbm_to_vmem [thread:$0]  (!%p6410_p10), %s207_s26, 4096, %s209_s28, [#allocation9], %s8094_s15, %s8094_s15, %s6322_s16  }
  0x18   : > { %s30_s8 = sadd.s32 1, %s6311_s20  ;;  %p28_p11 = scmp.eq.s32.totalorder %s27_s6, 0 }
  0x19   : > { %p37_p12 = scmp.ne.s32.totalorder %s6311_s20, %s6307_s19  ;;  %p38_p13 = scmp.eq.s32.totalorder %s6315_s21, 0 }
  0x1a   : > { %s6442_s9 = scalar_select %p28_p11, %s6311_s20, %s30_s8  }
  0x1b   : > { %p6446_p0 = por %p151_p2, %p37_p12  ;;  %p5816_p3 = scmp.lt.s32.totalorder %s6315_s21, 4 }
  0x1c   : > { %s222_s7 = sand.u32 1, %s6311_s20   ;;  %s5624_s11 = sshll.u32 %s6315_s21, 6 }
  0x1d   : > { %p39_p5 = por %p38_p13, %p37_p12  ;;  %s4935_s12 = sshll.u32 %s222_s7, 6 }
  0x1e   : > { %s232_s17 = scalar_lea.hbm %s8088_s0, %s5624_s11  ;;  %s226_s26 = scalar_lea.vmem [#allocation2], %s4935_s12 }
  0x1f   : > { %s233_s23 = sshll.u32 %s232_s17, 4  ;;  %s235_s27 = sshll.u32 %s226_s26, 4  ;;  %s234_s23 = int_to_ptr.hbm [resolvable:$true] %s233_s23  ;;  %s236_s27 = int_to_ptr.vmem [resolvable:$true] %s235_s27 }
  0x20   : > { %p6456_p7 = pnand %p5816_p3, %p39_p5  ;;  %s223_s6 = scalar_lea.sflag [#allocation3], %s222_s7 }
  0x21   : > { %s6211_s8 = sshra.s32 %s234_s23, 4  ;;  %s6218_s12 = scalar_lea.hbm %s8088_s0, 256  ;;  %s6212_s8 = int_to_ptr.hbm [resolvable:$true] %s6211_s8 }
  0x22   : > { %s6213_s15 = scalar_lea.hbm %s6212_s8, 64  ;;  %p6215_p9 = pneg %p6456_p7 }
  0x23   : > { %p6214_p2 = scmp.ne.s32.totalorder %s6212_s8, %s6213_s15  ;;  %p6219_p12 = scmp.lt.s32.totalorder %s6212_s8, %s8088_s0 }
  0x24   : > { %p6220_p13 = scmp.lt.s32.totalorder %s6218_s12, %s6213_s15 }
  0x25   : > { %p6216_p10 = pnand %p6215_p9, %p6214_p2 }
  0x26   : > { %p6221_p3 = por %p6220_p13, %p6219_p12 }
  0x27   : > { %p6217_p11 = pneg %p6216_p10 }
  0x29   : > { %p6222_p5 = pnand %p6221_p3, %p6217_p11 }
  0x2b   : > { %6225 = shalt.err (!%p6222_p5)
}
  0x2c   : > { %s8105_s7 = smov 128   ;;  %247 = sbr.rel (%p6402_p8) target bundleno = 4447 (0x115f), region = 40 }
  0x2d   : > { %5808 = dma.hbm_to_vmem [thread:$0]  (!%p6456_p7), %s234_s23, 1024, %s236_s27, %s223_s6, %s8105_s7, %s8105_s7, %s6322_s16  }
  0x31   : > { %s6476_s26 = sand.u32 1, %s6307_s19  }
  0x32   : > { %s4940_s8 = sshll.u32 %s6476_s26, 6  ;;  %s250_s15 = scalar_lea.sflag [#allocation3], %s6476_s26 }
  0x33   : > { %s6480_s11 = scalar_lea.vmem [#allocation2], %s4940_s8 }
  0x34   : > { %6286 = dma.done.wait (%p6389_p4), %s250_s15, 1024  }
  0x35   : > { %6288 = vsyncadd (%p6389_p4), %s250_s15, 4294966272 }
  0x36   : > { %6290 = dma.done.wait (%p44_p1), [#allocation6], 16384  }
  0x37   : > { %6292 = vsyncadd (%p44_p1), [#allocation6], 4294950912 }
  0x38   : > { %6294 = dma.done.wait (%p44_p1), [#allocation9], 4096  }
  0x39   : > { %6296 = vsyncadd (%p44_p1), [#allocation9], 4294963200  ;;  %v5147_v0 = vld [vmem:[#allocation5 + $0x150] sm:$0xf]  ;;  %v5678_v1 = vld [vmem:[#allocation5 + $0x164] sm:$0xf0] }
  0x3a   : > { %v5339_v2 = vld [vmem:[#allocation5 + $0x2d0] sm:$0xf]  ;;  %v5148_v3 = vor.u32 %v5678_v1, %v5147_v0  ;;  %v5726_v4 = vld [vmem:[#allocation5 + $0x2e4] sm:$0xf0]  ;;  %v5123_v5 = vld [vmem:[#allocation5 + $0x120] sm:$0xf] }
  0x3b   : > { %v5672_v6 = vld [vmem:[#allocation5 + $0x134] sm:$0xf0]  ;;  %v5340_v7 = vor.u32 %v5726_v4, %v5339_v2  ;;  %v5315_v8 = vld [vmem:[#allocation5 + $0x2a0] sm:$0xf]  ;;  %v5099_v12 = vld [vmem:[#allocation5 + $0xf0] sm:$0xf] }
  0x3c   : > { %v5720_v9 = vld [vmem:[#allocation5 + $0x2b4] sm:$0xf0]  ;;  %5763 = vmatpush.bf16.msra.mxu2 %v5148_v3  ;;  %v5124_v10 = vor.u32 %v5672_v6, %v5123_v5  ;;  %923 = vmatpush.bf16.msra.mxu0 %v5148_v3  ;;  %v5666_v13 = vld [vmem:[#allocation5 + $0x104] sm:$0xf0]  ;;  %v5291_v14 = vld [vmem:[#allocation5 + $0x270] sm:$0xf] }
  0x3d   : > { %5771 = vmatpush.bf16.msra.mxu3 %v5340_v7  ;;  %v5316_v11 = vor.u32 %v5720_v9, %v5315_v8  ;;  %952 = vmatpush.bf16.msra.mxu1 %v5340_v7  ;;  %v5714_v15 = vld [vmem:[#allocation5 + $0x284] sm:$0xf0]  ;;  %v5100_v16 = vor.u32 %v5666_v13, %v5099_v12  ;;  %v5075_v18 = vld [vmem:[#allocation5 + $0xc0] sm:$0xf]  ;;  %v5660_v19 = vld [vmem:[#allocation5 + $0xd4] sm:$0xf0] }
  0x3e   : > { %v5292_v17 = vor.u32 %v5714_v15, %v5291_v14  ;;  %v5267_v20 = vld [vmem:[#allocation5 + $0x240] sm:$0xf]  ;;  %v5708_v21 = vld [vmem:[#allocation5 + $0x254] sm:$0xf0]  ;;  %v5076_v22 = vor.u32 %v5660_v19, %v5075_v18  ;;  %v5051_v24 = vld [vmem:[#allocation5 + $0x90] sm:$0xf] }
  0x3f   : > { %v5268_v23 = vor.u32 %v5708_v21, %v5267_v20  ;;  %v5654_v25 = vld [vmem:[#allocation5 + $0xa4] sm:$0xf0]  ;;  %v5243_v26 = vld [vmem:[#allocation5 + $0x210] sm:$0xf]  ;;  %v5027_v30 = vld [vmem:[#allocation5 + $0x60] sm:$0xf] }
  0x40   : > { %5764 = vmatpush.bf16.msra.mxu2 %v5124_v10  ;;  %924 = vmatpush.bf16.msra.mxu0 %v5124_v10  ;;  %v5702_v27 = vld [vmem:[#allocation5 + $0x224] sm:$0xf0]  ;;  %v5052_v28 = vor.u32 %v5654_v25, %v5051_v24  ;;  %v5648_v31 = vld [vmem:[#allocation5 + $0x74] sm:$0xf0]  ;;  %v5219_v32 = vld [vmem:[#allocation5 + $0x1e0] sm:$0xf] }
  0x41   : > { %5772 = vmatpush.bf16.msra.mxu3 %v5316_v11  ;;  %953 = vmatpush.bf16.msra.mxu1 %v5316_v11  ;;  %v5244_v29 = vor.u32 %v5702_v27, %v5243_v26  ;;  %v5696_v33 = vld [vmem:[#allocation5 + $0x1f4] sm:$0xf0]  ;;  %v5028_v34 = vor.u32 %v5648_v31, %v5027_v30  ;;  %v5003_v36 = vld [vmem:[#allocation5 + $0x30] sm:$0xf]  ;;  %v5642_v37 = vld [vmem:[#allocation5 + $0x44] sm:$0xf0] }
  0x42   : > { %v5220_v35 = vor.u32 %v5696_v33, %v5219_v32  ;;  %v5195_v38 = vld [vmem:[#allocation5 + $0x1b0] sm:$0xf]  ;;  %v5690_v39 = vld [vmem:[#allocation5 + $0x1c4] sm:$0xf0]  ;;  %v5004_v40 = vor.u32 %v5642_v37, %v5003_v36  ;;  %v4979_v42 = vld [vmem:[#allocation5] sm:$0xf] }
  0x43   : > { %v5196_v41 = vor.u32 %v5690_v39, %v5195_v38  ;;  %v5636_v43 = vld [vmem:[#allocation5 + $0x14] sm:$0xf0]  ;;  %v5171_v44 = vld [vmem:[#allocation5 + $0x180] sm:$0xf]  ;;  %v5675_v46 = vld [vmem:[#allocation5 + $0x154] sm:$0xf] }
  0x44   : > { %5765 = vmatpush.bf16.msra.mxu2 %v5100_v16  ;;  %925 = vmatpush.bf16.msra.mxu0 %v5100_v16  ;;  %v5684_v45 = vld [vmem:[#allocation5 + $0x194] sm:$0xf0]  ;;  %v5149_v47 = vld [vmem:[#allocation5 + $0x168] sm:$0xf0]  ;;  %v5723_v48 = vld [vmem:[#allocation5 + $0x2d4] sm:$0xf]  ;;  %v4980_v50 = vor.u32 %v5636_v43, %v4979_v42 }
  0x45   : > { %5773 = vmatpush.bf16.msra.mxu3 %v5292_v17  ;;  %954 = vmatpush.bf16.msra.mxu1 %v5292_v17  ;;  %v5341_v49 = vld [vmem:[#allocation5 + $0x2e8] sm:$0xf0]  ;;  %v4963_v51 = vld [vmem:[%s6480_s11 + $0x20] sm:$0xf]  ;;  %v5630_v52 = vld [vmem:[%s6480_s11 + $0x24] sm:$0xf0]  ;;  %v5172_v53 = vor.u32 %v5684_v45, %v5171_v44  ;;  %v5152_v56 = vor.u32 %v5675_v46, %v5149_v47 }
  0x46   : > { %v5629_v54 = vld [vmem:[%s6480_s11 + $0x24] sm:$0xf]  ;;  %v4965_v55 = vld [vmem:[%s6480_s11 + $0x28] sm:$0xf0]  ;;  %v5344_v58 = vor.u32 %v5723_v48, %v5341_v49  ;;  %v5125_v59 = vld [vmem:[#allocation5 + $0x138] sm:$0xf0]  ;;  %v6500_v62 = vor.u32 %v5630_v52, %v4963_v51 }
  0x47   : > { %v5669_v57 = vld [vmem:[#allocation5 + $0x124] sm:$0xf]  ;;  %v4947_v60 = vld [vmem:[%s6480_s11] sm:$0xf]  ;;  %v5626_v61 = vld [vmem:[%s6480_s11 + $0x4] sm:$0xf0]  ;;  %v6502_v1 = vor.u32 %v5629_v54, %v4965_v55 }
  0x48   : > { %5766 = vmatpush.bf16.msra.mxu2 %v5076_v22  ;;  %926 = vmatpush.bf16.msra.mxu0 %v5076_v22  ;;  %v5717_v63 = vld [vmem:[#allocation5 + $0x2a4] sm:$0xf]  ;;  %v5317_v0 = vld [vmem:[#allocation5 + $0x2b8] sm:$0xf0]  ;;  %v5128_v2 = vor.u32 %v5669_v57, %v5125_v59  ;;  %v6504_v3 = vor.u32 %v5626_v61, %v4947_v60  ;;  %v4949_v5 = vld [vmem:[%s6480_s11 + $0x8] sm:$0xf0] }
  0x49   : > { %5774 = vmatpush.bf16.msra.mxu3 %v5268_v23  ;;  %955 = vmatpush.bf16.msra.mxu1 %v5268_v23  ;;  %v5625_v4 = vld [vmem:[%s6480_s11 + $0x4] sm:$0xf]  ;;  %v5320_v6 = vor.u32 %v5717_v63, %v5317_v0  ;;  %v5663_v7 = vld [vmem:[#allocation5 + $0xf4] sm:$0xf]  ;;  %v5101_v8 = vld [vmem:[#allocation5 + $0x108] sm:$0xf0] }
  0x4a   : > { %v5711_v9 = vld [vmem:[#allocation5 + $0x274] sm:$0xf]  ;;  %v5293_v10 = vld [vmem:[#allocation5 + $0x288] sm:$0xf0]  ;;  %v6509_v11 = vor.u32 %v5625_v4, %v4949_v5  ;;  %v5104_v12 = vor.u32 %v5663_v7, %v5101_v8  ;;  %v5657_v14 = vld [vmem:[#allocation5 + $0xc4] sm:$0xf] }
  0x4b   : > { %v5296_v13 = vor.u32 %v5711_v9, %v5293_v10  ;;  %v5077_v15 = vld [vmem:[#allocation5 + $0xd8] sm:$0xf0]  ;;  %v5705_v16 = vld [vmem:[#allocation5 + $0x244] sm:$0xf]  ;;  %v5651_v20 = vld [vmem:[#allocation5 + $0x94] sm:$0xf] }
  0x4c   : > { %5767 = vmatpush.bf16.msra.mxu2 %v5052_v28  ;;  %927 = vmatpush.bf16.msra.mxu0 %v5052_v28  ;;  %v5269_v17 = vld [vmem:[#allocation5 + $0x258] sm:$0xf0]  ;;  %v5080_v18 = vor.u32 %v5657_v14, %v5077_v15  ;;  %v5053_v21 = vld [vmem:[#allocation5 + $0xa8] sm:$0xf0]  ;;  %v5699_v22 = vld [vmem:[#allocation5 + $0x214] sm:$0xf] }
  0x4d   : > { %5775 = vmatpush.bf16.msra.mxu3 %v5244_v29  ;;  %956 = vmatpush.bf16.msra.mxu1 %v5244_v29  ;;  %v5272_v19 = vor.u32 %v5705_v16, %v5269_v17  ;;  %v5245_v23 = vld [vmem:[#allocation5 + $0x228] sm:$0xf0]  ;;  %v4971_v24 = vld [vmem:[%s6480_s11 + $0x30] sm:$0xf]  ;;  %v5632_v25 = vld [vmem:[%s6480_s11 + $0x34] sm:$0xf0]  ;;  %v5056_v28 = vor.u32 %v5651_v20, %v5053_v21 }
  0x4e   : > { %v5631_v26 = vld [vmem:[%s6480_s11 + $0x34] sm:$0xf]  ;;  %v4973_v27 = vld [vmem:[%s6480_s11 + $0x38] sm:$0xf0]  ;;  %v5645_v29 = vld [vmem:[#allocation5 + $0x64] sm:$0xf]  ;;  %v5248_v30 = vor.u32 %v5699_v22, %v5245_v23 }
  0x4f   : > { %v5029_v31 = vld [vmem:[#allocation5 + $0x78] sm:$0xf0]  ;;  %v4955_v32 = vld [vmem:[%s6480_s11 + $0x10] sm:$0xf]  ;;  %v5628_v33 = vld [vmem:[%s6480_s11 + $0x14] sm:$0xf0]  ;;  %v6522_v37 = vor.u32 %v5631_v26, %v4973_v27 }
  0x50   : > { %5768 = vmatpush.bf16.msra.mxu2 %v5028_v34  ;;  %928 = vmatpush.bf16.msra.mxu0 %v5028_v34  ;;  %v6520_v34 = vor.u32 %v5632_v25, %v4971_v24  ;;  %v5221_v36 = vld [vmem:[#allocation5 + $0x1f8] sm:$0xf0]  ;;  %v5032_v38 = vor.u32 %v5645_v29, %v5029_v31  ;;  %v6524_v39 = vor.u32 %v5628_v33, %v4955_v32  ;;  %v5639_v43 = vld [vmem:[#allocation5 + $0x34] sm:$0xf]  ;;  %v5005_v44 = vld [vmem:[#allocation5 + $0x48] sm:$0xf0] }
  0x51   : > { %5776 = vmatpush.bf16.msra.mxu3 %v5220_v35  ;;  %957 = vmatpush.bf16.msra.mxu1 %v5220_v35  ;;  %v5693_v35 = vld [vmem:[#allocation5 + $0x1e4] sm:$0xf]  ;;  %v5687_v45 = vld [vmem:[#allocation5 + $0x1b4] sm:$0xf]  ;;  %v5197_v46 = vld [vmem:[#allocation5 + $0x1c8] sm:$0xf0]  ;;  %v5008_v49 = vor.u32 %v5639_v43, %v5005_v44 }
  0x52   : > { %v5224_v42 = vor.u32 %v5693_v35, %v5221_v36  ;;  %v5633_v48 = vld [vmem:[#allocation5 + $0x4] sm:$0xf]  ;;  %v5173_v52 = vld [vmem:[#allocation5 + $0x198] sm:$0xf0]  ;;  %v5157_v55 = vld [vmem:[#allocation5 + $0x170] sm:$0xf0] }
  0x53   : > { %v5681_v51 = vld [vmem:[#allocation5 + $0x184] sm:$0xf]  ;;  %v5676_v54 = vld [vmem:[#allocation5 + $0x15c] sm:$0xf]  ;;  %v5679_v57 = vld [vmem:[#allocation5 + $0x16c] sm:$0xf0] }
  0x54   : > { %5769 = vmatpush.bf16.msra.mxu2 %v5004_v40  ;;  %929 = vmatpush.bf16.msra.mxu0 %v5004_v40  ;;  %v5627_v40 = vld [vmem:[%s6480_s11 + $0x14] sm:$0xf]  ;;  %v5727_v59 = vld [vmem:[#allocation5 + $0x2ec] sm:$0xf0]  ;;  %v5724_v60 = vld [vmem:[#allocation5 + $0x2dc] sm:$0xf]  ;;  %v5176_v4 = vor.u32 %v5681_v51, %v5173_v52  ;;  %v5160_v5 = vor.u32 %v5676_v54, %v5157_v55 }
  0x55   : > { %5777 = vmatpush.bf16.msra.mxu3 %v5196_v41  ;;  %958 = vmatpush.bf16.msra.mxu1 %v5196_v41  ;;  %v4957_v41 = vld [vmem:[%s6480_s11 + $0x18] sm:$0xf0]  ;;  %v5349_v61 = vld [vmem:[#allocation5 + $0x2f0] sm:$0xf0]  ;;  %v5670_v7 = vld [vmem:[#allocation5 + $0x12c] sm:$0xf] }
  0x56   : > { %v6529_v47 = vor.u32 %v5627_v40, %v4957_v41  ;;  %v5133_v8 = vld [vmem:[#allocation5 + $0x140] sm:$0xf0]  ;;  %v5718_v9 = vld [vmem:[#allocation5 + $0x2ac] sm:$0xf]  ;;  %v5664_v14 = vld [vmem:[#allocation5 + $0xfc] sm:$0xf] }
  0x57   : > { %v5325_v10 = vld [vmem:[#allocation5 + $0x2c0] sm:$0xf0]  ;;  %v5109_v15 = vld [vmem:[#allocation5 + $0x110] sm:$0xf0]  ;;  %v5712_v16 = vld [vmem:[#allocation5 + $0x27c] sm:$0xf] }
  0x58   : > { %5770 = vmatpush.bf16.msra.mxu2 %v4980_v50  ;;  %930 = vmatpush.bf16.msra.mxu0 %v4980_v50  ;;  %v4981_v50 = vld [vmem:[#allocation5 + $0x18] sm:$0xf0]  ;;  %v5112_v17 = vor.u32 %v5664_v14, %v5109_v15  ;;  %v5673_v20 = vld [vmem:[#allocation5 + $0x13c] sm:$0xf0]  ;;  %v5323_v23 = vld [vmem:[#allocation5 + $0x2a8] sm:$0xf] }
  0x59   : > { %5778 = vmatpush.bf16.msra.mxu3 %v5172_v53  ;;  %959 = vmatpush.bf16.msra.mxu1 %v5172_v53  ;;  %v5200_v53 = vor.u32 %v5687_v45, %v5197_v46  ;;  %v5721_v24 = vld [vmem:[#allocation5 + $0x2bc] sm:$0xf0]  ;;  %v5107_v25 = vld [vmem:[#allocation5 + $0xf8] sm:$0xf]  ;;  %v5667_v27 = vld [vmem:[#allocation5 + $0x10c] sm:$0xf0] }
  0x5a   : > { %v5324_v26 = vor.u32 %v5721_v24, %v5323_v23  ;;  %v5715_v29 = vld [vmem:[#allocation5 + $0x28c] sm:$0xf0]  ;;  %v5658_v31 = vld [vmem:[#allocation5 + $0xcc] sm:$0xf]  ;;  %v5085_v32 = vld [vmem:[#allocation5 + $0xe0] sm:$0xf0] }
  0x5b   : > { %941 = vmatmul.bf16.vlgmr.msra.gmra.mxu2 %v6500_v62  ;;  %931 = vmatmul.bf16.vlgmr.msra.gmra.mxu0 %v6504_v3  ;;  %v5706_v33 = vld [vmem:[#allocation5 + $0x24c] sm:$0xf]  ;;  %v5088_v36 = vor.u32 %v5658_v31, %v5085_v32  ;;  %v5083_v40 = vld [vmem:[#allocation5 + $0xc8] sm:$0xf]  ;;  %v5661_v41 = vld [vmem:[#allocation5 + $0xdc] sm:$0xf0] }
  0x5c   : > { %981 = vmatpush.bf16.msrb.mxu2 %v5152_v56  ;;  %970 = vmatmul.bf16.vlgmr.msra.gmra.mxu3 %v6502_v1  ;;  %v5155_v56 = vld [vmem:[#allocation5 + $0x158] sm:$0xf]  ;;  %v5275_v43 = vld [vmem:[#allocation5 + $0x248] sm:$0xf]  ;;  %v5709_v44 = vld [vmem:[#allocation5 + $0x25c] sm:$0xf0]  ;;  %v5084_v45 = vor.u32 %v5661_v41, %v5083_v40 }
  0x5d   : > { %1010 = vmatpush.bf16.msrb.mxu3 %v5344_v58  ;;  %960 = vmatmul.bf16.vlgmr.msra.gmra.mxu1 %v6509_v11  ;;  %v5347_v58 = vld [vmem:[#allocation5 + $0x2d8] sm:$0xf]  ;;  %v5156_v63 = vor.u32 %v5679_v57, %v5155_v56  ;;  %v5276_v46 = vor.u32 %v5709_v44, %v5275_v43  ;;  %v5703_v51 = vld [vmem:[#allocation5 + $0x22c] sm:$0xf0]  ;;  %v5652_v54 = vld [vmem:[#allocation5 + $0x9c] sm:$0xf] }
  0x5e   : > { %v5348_v0 = vor.u32 %v5727_v59, %v5347_v58  ;;  %v5061_v55 = vld [vmem:[#allocation5 + $0xb0] sm:$0xf0]  ;;  %v5700_v56 = vld [vmem:[#allocation5 + $0x21c] sm:$0xf]  ;;  %v5203_v14 = vld [vmem:[#allocation5 + $0x1b8] sm:$0xf] }
  0x5f   : > { %1039 = vmatpush.bf16.msrb.mxu0 %v5156_v63  ;;  %v5064_v57 = vor.u32 %v5652_v54, %v5061_v55  ;;  %v5253_v58 = vld [vmem:[#allocation5 + $0x230] sm:$0xf0]  ;;  %v5227_v63 = vld [vmem:[#allocation5 + $0x1e8] sm:$0xf]  ;;  %v5691_v15 = vld [vmem:[#allocation5 + $0x1cc] sm:$0xf0] }
  0x60   : > { %982 = vmatpush.bf16.msrb.mxu2 %v5128_v2  ;;  %v4984_v2 = vor.u32 %v5633_v48, %v4981_v50  ;;  %1068 = vmatpush.bf16.msrb.mxu1 %v5348_v0  ;;  %v5059_v48 = vld [vmem:[#allocation5 + $0x98] sm:$0xf]  ;;  %v5256_v59 = vor.u32 %v5700_v56, %v5253_v58  ;;  %v4987_v23 = vld [vmem:[#allocation5 + $0x8] sm:$0xf]  ;;  %v5637_v24 = vld [vmem:[#allocation5 + $0x1c] sm:$0xf0] }
  0x61   : > { %1011 = vmatpush.bf16.msrb.mxu3 %v5320_v6  ;;  %v5352_v6 = vor.u32 %v5724_v60, %v5349_v61  ;;  %v5251_v50 = vld [vmem:[#allocation5 + $0x218] sm:$0xf]  ;;  %v5035_v60 = vld [vmem:[#allocation5 + $0x68] sm:$0xf]  ;;  %v5649_v61 = vld [vmem:[#allocation5 + $0x7c] sm:$0xf0]  ;;  %v4988_v32 = vor.u32 %v5637_v24, %v4987_v23 }
  0x62   : > { %v5036_v0 = vor.u32 %v5649_v61, %v5035_v60  ;;  %v5181_v31 = vld [vmem:[#allocation5 + $0x1a0] sm:$0xf0]  ;;  %v5668_v58 = vld [vmem:[#allocation5 + $0x114] sm:$0xf0]  ;;  %v5091_v61 = vld [vmem:[#allocation5 + $0xd0] sm:$0xf] }
  0x63   : > { %v5357_v24 = vld [vmem:[#allocation5 + $0x2f8] sm:$0xf0]  ;;  %s6324_s24 = smov 96   ;;  %vm1347_vm0 = vcmask 261120   ;;  %s6325_s29 = smov 64  }
  0x64   : > { %983 = vmatpush.bf16.msrb.mxu2 %v5104_v12  ;;  %v5136_v12 = vor.u32 %v5670_v7, %v5133_v8  ;;  %1069 = vmatpush.bf16.msrb.mxu1 %v5324_v26  ;;  %v5694_v8 = vld [vmem:[#allocation5 + $0x1ec] sm:$0xf]  ;;  %v5179_v26 = vld [vmem:[#allocation5 + $0x188] sm:$0xf]  ;;  %s6326_s16 = smov 32   ;;  %s4944_s28 = sshll.u32 %s6476_s26, 7 }
  0x65   : > { %1012 = vmatpush.bf16.msrb.mxu3 %v5296_v13  ;;  %v5328_v13 = vor.u32 %v5718_v9, %v5325_v10  ;;  %v5229_v9 = vld [vmem:[#allocation5 + $0x200] sm:$0xf0]  ;;  %v5011_v10 = vld [vmem:[#allocation5 + $0x38] sm:$0xf]  ;;  %s7997_s6 = scalar_lea.vmem [#allocation10], %s4944_s28  ;;  %s5762_s13 = sshll.u32 %s6380_s22, 7 }
  0x66   : > { %s4823_s17 = scalar_lea.hbm %s8093_s5, %s5762_s13  ;;  %s4824_s22 = sshll.u32 %s7997_s6, 4  ;;  %s4825_s22 = int_to_ptr.vmem [resolvable:$true] %s4824_s22 }
  0x67   : > { %s4826_s7 = sshll.u32 %s4823_s17, 4  ;;  %s4811_s8 = scalar_lea.sflag [#allocation4], %s6476_s26  ;;  %s4827_s7 = int_to_ptr.hbm [resolvable:$true] %s4826_s7 }
  0x68   : > { %984 = vmatpush.bf16.msrb.mxu2 %v5080_v18  ;;  %v5301_v18 = vld [vmem:[#allocation5 + $0x290] sm:$0xf0]  ;;  %s6255_s15 = sshra.s32 %s4827_s7, 4  ;;  %s6256_s15 = int_to_ptr.hbm [resolvable:$true] %s6255_s15 }
  0x69   : > { %1013 = vmatpush.bf16.msrb.mxu3 %v5272_v19  ;;  %v5131_v19 = vld [vmem:[#allocation5 + $0x128] sm:$0xf]  ;;  %v5304_v21 = vor.u32 %v5712_v16, %v5301_v18  ;;  %v5013_v18 = vld [vmem:[#allocation5 + $0x50] sm:$0xf0]  ;;  %s6257_s11 = scalar_lea.hbm %s6256_s15, 128  ;;  %p6262_p7 = scmp.lt.s32.totalorder %s6256_s15, %s8093_s5 }
  0x6a   : > { %v5132_v22 = vor.u32 %v5673_v20, %v5131_v19  ;;  %v5688_v19 = vld [vmem:[#allocation5 + $0x1bc] sm:$0xf]  ;;  %v5204_v20 = vor.u32 %v5691_v15, %v5203_v14  ;;  %p6258_p1 = scmp.ne.s32.totalorder %s6256_s15, %s6257_s11 }
  0x6b   : > { %946 = vmatmul.bf16.gmra.mxu2 %v6520_v34  ;;  %936 = vmatmul.bf16.gmra.mxu0 %v6524_v39 }
  0x6c   : > { %985 = vmatpush.bf16.msrb.mxu2 %v5056_v28  ;;  %975 = vmatmul.bf16.gmra.mxu3 %v6522_v37  ;;  %v5299_v28 = vld [vmem:[#allocation5 + $0x278] sm:$0xf]  ;;  %p6259_p4 = pnand %p6258_p1, %p6446_p0 }
  0x6d   : > { %1014 = vmatpush.bf16.msrb.mxu3 %v5248_v30  ;;  %965 = vmatmul.bf16.gmra.mxu1 %v6529_v47  ;;  %v5108_v30 = vor.u32 %v5667_v27, %v5107_v25  ;;  %v5300_v35 = vor.u32 %v5715_v29, %v5299_v28  ;;  %v5685_v27 = vld [vmem:[#allocation5 + $0x19c] sm:$0xf0]  ;;  %v5634_v28 = vld [vmem:[#allocation5 + $0xc] sm:$0xf]  ;;  %v4989_v29 = vld [vmem:[#allocation5 + $0x20] sm:$0xf0] }
  0x6e   : > { %1040 = vmatpush.bf16.msrb.mxu0 %v5132_v22  ;;  %v5205_v22 = vld [vmem:[#allocation5 + $0x1d0] sm:$0xf0]  ;;  %p6260_p8 = pneg %p6259_p4 }
  0x6f   : > { %1070 = vmatpush.bf16.msrb.mxu1 %v5300_v35  ;;  %v5208_v25 = vor.u32 %v5688_v19, %v5205_v22  ;;  %v4992_v35 = vor.u32 %v5634_v28, %v4989_v29  ;;  %v5644_v22 = vld [vmem:[#allocation5 + $0x54] sm:$0xf0] }
  0x70   : > { %986 = vmatpush.bf16.msrb.mxu2 %v5032_v38  ;;  %v5277_v38 = vld [vmem:[#allocation5 + $0x260] sm:$0xf0] }
  0x71   : > { %1015 = vmatpush.bf16.msrb.mxu3 %v5224_v42  ;;  %v5280_v42 = vor.u32 %v5706_v33, %v5277_v38  ;;  %v5180_v33 = vor.u32 %v5685_v27, %v5179_v26 }
  0x72   : > { %1041 = vmatpush.bf16.msrb.mxu0 %v5108_v30  ;;  %v5682_v30 = vld [vmem:[#allocation5 + $0x18c] sm:$0xf] }
  0x73   : > { %1071 = vmatpush.bf16.msrb.mxu1 %v5276_v46  ;;  %v5680_v46 = vld [vmem:[#allocation5 + $0x174] sm:$0xf0] }
  0x74   : > { %987 = vmatpush.bf16.msrb.mxu2 %v5008_v49  ;;  %v5655_v49 = vld [vmem:[#allocation5 + $0xac] sm:$0xf0] }
  0x75   : > { %1016 = vmatpush.bf16.msrb.mxu3 %v5200_v53  ;;  %v5060_v52 = vor.u32 %v5655_v49, %v5059_v48  ;;  %v5252_v53 = vor.u32 %v5703_v51, %v5251_v50  ;;  %v5139_v51 = vld [vmem:[#allocation5 + $0x130] sm:$0xf] }
  0x76   : > { %1042 = vmatpush.bf16.msrb.mxu0 %v5084_v45  ;;  %v5163_v45 = vld [vmem:[#allocation5 + $0x160] sm:$0xf] }
  0x77   : > { %1072 = vmatpush.bf16.msrb.mxu1 %v5252_v53  ;;  %v5164_v49 = vor.u32 %v5680_v46, %v5163_v45  ;;  %v5333_v45 = vld [vmem:[#allocation5 + $0x2c8] sm:$0xf0] }
  0x78   : > { %988 = vmatpush.bf16.msrb.mxu2 %v4984_v2  ;;  %v5697_v2 = vld [vmem:[#allocation5 + $0x1fc] sm:$0xf0] }
  0x79   : > { %1017 = vmatpush.bf16.msrb.mxu3 %v5176_v4  ;;  %v5646_v4 = vld [vmem:[#allocation5 + $0x6c] sm:$0xf] }
  0x7a   : > { %1043 = vmatpush.bf16.msrb.mxu0 %v5060_v52  ;;  %v5674_v52 = vld [vmem:[#allocation5 + $0x144] sm:$0xf0] }
  0x7b   : > { %989 = vmatmul.bf16.vlgmr.msrb.gmra.mxu2 %v6504_v3  ;;  %v5140_v53 = vor.u32 %v5674_v52, %v5139_v51  ;;  %v5728_v51 = vld [vmem:[#allocation5 + $0x2f4] sm:$0xf0] }
  0x7c   : > { %1097 = vmatpush.bf16.msra.mxu2 %v5160_v5  ;;  %1018 = vmatmul.bf16.vlgmr.msrb.gmra.mxu3 %v6509_v11  ;;  %v5037_v5 = vld [vmem:[#allocation5 + $0x80] sm:$0xf0] }
  0x7d   : > { %1126 = vmatpush.bf16.msra.mxu3 %v5352_v6  ;;  %v5228_v6 = vor.u32 %v5697_v2, %v5227_v63  ;;  %v5040_v7 = vor.u32 %v5646_v4, %v5037_v5  ;;  %v5662_v63 = vld [vmem:[#allocation5 + $0xe4] sm:$0xf0]  ;;  %v5067_v5 = vld [vmem:[#allocation5 + $0xa0] sm:$0xf] }
  0x7e   : > { %1044 = vmatpush.bf16.msrb.mxu0 %v5036_v0  ;;  %v5092_v0 = vor.u32 %v5662_v63, %v5091_v61 }
  0x7f   : > { %1073 = vmatpush.bf16.msrb.mxu1 %v5228_v6  ;;  %v5656_v6 = vld [vmem:[#allocation5 + $0xb4] sm:$0xf0] }
  0x80   : > { %1098 = vmatpush.bf16.msra.mxu2 %v5136_v12  ;;  %v5232_v12 = vor.u32 %v5694_v8, %v5229_v9  ;;  %v5068_v9 = vor.u32 %v5656_v6, %v5067_v5  ;;  %v5331_v5 = vld [vmem:[#allocation5 + $0x2b0] sm:$0xf]  ;;  %v5722_v6 = vld [vmem:[#allocation5 + $0x2c4] sm:$0xf0] }
  0x81   : > { %1127 = vmatpush.bf16.msra.mxu3 %v5328_v13  ;;  %v5643_v13 = vld [vmem:[#allocation5 + $0x4c] sm:$0xf0] }
  0x82   : > { %v5012_v16 = vor.u32 %v5643_v13, %v5011_v10  ;;  %v5043_v10 = vld [vmem:[#allocation5 + $0x70] sm:$0xf] }
  0x83   : > { %1074 = vmatpush.bf16.msrb.mxu1 %v5204_v20 }
  0x84   : > { %1099 = vmatpush.bf16.msra.mxu2 %v5112_v17  ;;  %v5640_v17 = vld [vmem:[#allocation5 + $0x3c] sm:$0xf]  ;;  %1045 = vmatpush.bf16.msrb.mxu0 %v5012_v16  ;;  %v5677_v16 = vld [vmem:[#allocation5 + $0x164] sm:$0xf] }
  0x85   : > { %1128 = vmatpush.bf16.msra.mxu3 %v5304_v21  ;;  %v5016_v21 = vor.u32 %v5640_v17, %v5013_v18  ;;  %v5165_v17 = vld [vmem:[#allocation5 + $0x178] sm:$0xf0]  ;;  %v5725_v18 = vld [vmem:[#allocation5 + $0x2e4] sm:$0xf] }
  0x86   : > { %v5168_v23 = vor.u32 %v5677_v16, %v5165_v17  ;;  %v5360_v27 = vor.u32 %v5725_v18, %v5357_v24  ;;  %v5307_v17 = vld [vmem:[#allocation5 + $0x280] sm:$0xf]  ;;  %v5716_v18 = vld [vmem:[#allocation5 + $0x294] sm:$0xf0]  ;;  %v5701_v24 = vld [vmem:[#allocation5 + $0x224] sm:$0xf] }
  0x87   : > { %1075 = vmatpush.bf16.msrb.mxu1 %v5180_v33  ;;  %v5141_v33 = vld [vmem:[#allocation5 + $0x148] sm:$0xf0] }
  0x88   : > { %1100 = vmatpush.bf16.msra.mxu2 %v5088_v36  ;;  %v5184_v36 = vor.u32 %v5682_v30, %v5181_v31  ;;  %1046 = vmatpush.bf16.msrb.mxu0 %v4988_v32  ;;  %v5671_v32 = vld [vmem:[#allocation5 + $0x134] sm:$0xf] }
  0x89   : > { %1129 = vmatpush.bf16.msra.mxu3 %v5280_v42 }
  0x8a   : > { %1076 = vmatmul.bf16.vlgmr.msrb.gmra.mxu1 %v6509_v11 }
  0x8b   : > { %994 = vmatmul.bf16.gmra.mxu2 %v6524_v39  ;;  %1047 = vmatmul.bf16.vlgmr.msrb.gmra.mxu0 %v6504_v3 }
  0x8c   : > { %1023 = vmatmul.bf16.gmra.mxu3 %v6529_v47  ;;  %1101 = vmatpush.bf16.msra.mxu2 %v5064_v57  ;;  %v5115_v57 = vld [vmem:[#allocation5 + $0x100] sm:$0xf] }
  0x8d   : > { %1130 = vmatpush.bf16.msra.mxu3 %v5256_v59  ;;  %1155 = vmatpush.bf16.msra.mxu0 %v5164_v49  ;;  %v5116_v60 = vor.u32 %v5668_v58, %v5115_v57  ;;  %v5355_v49 = vld [vmem:[#allocation5 + $0x2e0] sm:$0xf]  ;;  %v5117_v57 = vld [vmem:[#allocation5 + $0x118] sm:$0xf0]  ;;  %v5713_v58 = vld [vmem:[#allocation5 + $0x284] sm:$0xf] }
  0x90   : > { %1102 = vmatpush.bf16.msra.mxu2 %v5040_v7 }
  0x91   : > { %1131 = vmatpush.bf16.msra.mxu3 %v5232_v12  ;;  %1156 = vmatpush.bf16.msra.mxu0 %v5140_v53  ;;  %v5650_v12 = vld [vmem:[#allocation5 + $0x84] sm:$0xf0] }
  0x92   : > { %v5044_v13 = vor.u32 %v5650_v12, %v5043_v10  ;;  %v5707_v10 = vld [vmem:[#allocation5 + $0x254] sm:$0xf] }
  0x94   : > { %1103 = vmatpush.bf16.msra.mxu2 %v5016_v21  ;;  %v5019_v21 = vld [vmem:[#allocation5 + $0x40] sm:$0xf] }
  0x95   : > { %1132 = vmatpush.bf16.msra.mxu3 %v5208_v25  ;;  %1157 = vmatpush.bf16.msra.mxu0 %v5116_v60  ;;  %v5020_v26 = vor.u32 %v5644_v22, %v5019_v21  ;;  %v5308_v21 = vor.u32 %v5716_v18, %v5307_v17  ;;  %v5653_v22 = vld [vmem:[#allocation5 + $0xa4] sm:$0xf] }
  0x98   : > { %1104 = vmatpush.bf16.msra.mxu2 %v4992_v35  ;;  %v5719_v35 = vld [vmem:[#allocation5 + $0x2b4] sm:$0xf] }
  0x99   : > { %1133 = vmatpush.bf16.msra.mxu3 %v5184_v36  ;;  %1158 = vmatpush.bf16.msra.mxu0 %v5092_v0  ;;  %v5309_v0 = vld [vmem:[#allocation5 + $0x298] sm:$0xf0] }
  0x9a   : > { %1081 = vmatmul.bf16.gmra.mxu1 %v6529_v47 }
  0x9b   : > { %999 = vmatmul.bf16.gmra.mxu2 %v6500_v62  ;;  %1052 = vmatmul.bf16.gmra.mxu0 %v6524_v39 }
  0x9c   : > { %1028 = vmatmul.bf16.gmra.mxu3 %v6502_v1  ;;  %1213 = vmatpush.bf16.msrb.mxu2 %v5168_v23  ;;  %v5069_v23 = vld [vmem:[#allocation5 + $0xb8] sm:$0xf0] }
  0x9d   : > { %1159 = vmatpush.bf16.msra.mxu0 %v5068_v9  ;;  %1242 = vmatpush.bf16.msrb.mxu3 %v5360_v27  ;;  %v5093_v9 = vld [vmem:[#allocation5 + $0xe8] sm:$0xf0]  ;;  %v5072_v27 = vor.u32 %v5653_v22, %v5069_v23  ;;  %v5692_v22 = vld [vmem:[#allocation5 + $0x1d4] sm:$0xf0] }
  0xa1   : > { %1160 = vmatpush.bf16.msra.mxu0 %v5044_v13  ;;  %v5285_v13 = vld [vmem:[#allocation5 + $0x268] sm:$0xf0] }
  0xa2   : > { %v5288_v16 = vor.u32 %v5707_v10, %v5285_v13  ;;  %v5698_v10 = vld [vmem:[#allocation5 + $0x204] sm:$0xf0] }
  0xa5   : > { %1161 = vmatpush.bf16.msra.mxu0 %v5020_v26 }
  0xaa   : > { %1086 = vmatmul.bf16.gmra.mxu1 %v6502_v1 }
  0xab   : > { %1004 = vmatmul.bf16.gmra.mxu2 %v6520_v34  ;;  %1057 = vmatmul.bf16.gmra.mxu0 %v6500_v62 }
  0xac   : > { %1033 = vmatmul.bf16.gmra.mxu3 %v6522_v37 }
  0xba   : > { %1091 = vmatmul.bf16.gmra.mxu1 %v6522_v37 }
  0xbb   : > { %1105 = vmatmul.bf16.vlgmr.msra.gmra.mxu2 %v6504_v3  ;;  %1062 = vmatmul.bf16.gmra.mxu0 %v6520_v34 }
  0xbc   : > { %1134 = vmatmul.bf16.vlgmr.msra.gmra.mxu3 %v6509_v11 }
  0xcb   : > { %1110 = vmatmul.bf16.gmra.mxu2 %v6524_v39 }
  0xcc   : > { %1139 = vmatmul.bf16.gmra.mxu3 %v6529_v47 }
  0xd8   : > { %v932_v54 = vpop.f32.mrf.mxu0 }
  0xda   : > { %v961_v55 = vpop.f32.mrf.mxu1 }
  0xdb   : > { %1115 = vmatmul.bf16.gmra.mxu2 %v6500_v62  ;;  %v962_v14 = vadd.f32 %v961_v55, %v932_v54  ;;  %v5356_v54 = vor.u32 %v5728_v51, %v5355_v49  ;;  %v5665_v55 = vld [vmem:[#allocation5 + $0x104] sm:$0xf]  ;;  %v5237_v51 = vld [vmem:[#allocation5 + $0x208] sm:$0xf0] }
  0xdc   : > { %1144 = vmatmul.bf16.gmra.mxu3 %v6502_v1  ;;  %v5120_v63 = vor.u32 %v5665_v55, %v5117_v57 }
  0xdd   : > { %1184 = vmatpush.bf16.msra.mxu1 %v5356_v54  ;;  %v5704_v54 = vld [vmem:[#allocation5 + $0x234] sm:$0xf0] }
  0xde   : > { %v942_v38 = vpop.f32.mrf.mxu2 }
  0xdf   : > { %v971_v40 = vpop.f32.mrf.mxu3 }
  0xe0   : > { %v6556_v41 = vadd.f32 %v971_v40, %v942_v38  ;;  %v934_v4 = vpop.f32.mrf.mxu0  ;;  %v4995_v38 = vld [vmem:[#allocation5 + $0x10] sm:$0xf]  ;;  %v5638_v40 = vld [vmem:[#allocation5 + $0x24] sm:$0xf0] }
  0xe1   : > { %v4996_v46 = vor.u32 %v5638_v40, %v4995_v38  ;;  %v5710_v38 = vld [vmem:[#allocation5 + $0x264] sm:$0xf0] }
  0xe2   : > { %v963_v8 = vpop.f32.mrf.mxu1 }
  0xe3   : > { %v964_v19 = vadd.f32 %v963_v8, %v934_v4  ;;  %1162 = vmatpush.bf16.msra.mxu0 %v4996_v46  ;;  %v5312_v4 = vor.u32 %v5713_v58, %v5309_v0  ;;  %v5659_v8 = vld [vmem:[#allocation5 + $0xd4] sm:$0xf]  ;;  %v5689_v0 = vld [vmem:[#allocation5 + $0x1c4] sm:$0xf] }
  0xe4   : > { %v5096_v12 = vor.u32 %v5659_v8, %v5093_v9  ;;  %v5695_v46 = vld [vmem:[#allocation5 + $0x1f4] sm:$0xf]  ;;  %v5235_v9 = vld [vmem:[#allocation5 + $0x1f0] sm:$0xf] }
  0xe5   : > { %v5236_v13 = vor.u32 %v5698_v10, %v5235_v9 }
  0xe6   : > { %v6558_v42 = vpop.f32.mrf.mxu2  ;;  %1163 = vmatmul.bf16.vlgmr.msra.gmra.mxu0 %v6504_v3 }
  0xe7   : > { %v6560_v43 = vpop.f32.mrf.mxu3 }
  0xe8   : > { %v937_v30 = vpop.f32.mrf.mxu0 }
  0xea   : > { %v966_v31 = vpop.f32.mrf.mxu1 }
  0xeb   : > { %1120 = vmatmul.bf16.gmra.mxu2 %v6520_v34 }
  0xec   : > { %1149 = vmatmul.bf16.gmra.mxu3 %v6522_v37 }
  0xee   : > { %v947_v44 = vpop.f32.mrf.mxu2 }
  0xef   : > { %v976_v48 = vpop.f32.mrf.mxu3 }
  0xf0   : > { %v6564_v50 = vadd.f32 %v976_v48, %v947_v44  ;;  %v5144_v44 = vor.u32 %v5671_v32, %v5141_v33  ;;  %v5336_v48 = vor.u32 %v5719_v35, %v5333_v45  ;;  %v5283_v35 = vld [vmem:[#allocation5 + $0x250] sm:$0xf]  ;;  %v5045_v45 = vld [vmem:[#allocation5 + $0x88] sm:$0xf0] }
  0xf2   : > { %1214 = vmatpush.bf16.msrb.mxu2 %v5144_v44  ;;  %1243 = vmatpush.bf16.msrb.mxu3 %v5336_v48 }
  0xf6   : > { %v6566_v56 = vpop.f32.mrf.mxu2  ;;  %1215 = vmatpush.bf16.msrb.mxu2 %v5120_v63  ;;  %1244 = vmatpush.bf16.msrb.mxu3 %v5312_v4  ;;  %v5021_v63 = vld [vmem:[#allocation5 + $0x58] sm:$0xf0] }
  0xf7   : > { %v6568_v59 = vpop.f32.mrf.mxu3  ;;  %1168 = vmatmul.bf16.gmra.mxu0 %v6524_v39 }
  0xfa   : > { %1216 = vmatpush.bf16.msrb.mxu2 %v5096_v12  ;;  %1245 = vmatpush.bf16.msrb.mxu3 %v5288_v16  ;;  %v5683_v16 = vld [vmem:[#allocation5 + $0x194] sm:$0xf] }
  0xfe   : > { %v990_v2 = vpop.f32.mrf.mxu2  ;;  %1217 = vmatpush.bf16.msrb.mxu2 %v5072_v27  ;;  %v5686_v27 = vld [vmem:[#allocation5 + $0x1a4] sm:$0xf0] }
  0xff   : > { %v1019_v7 = vpop.f32.mrf.mxu3 }
 0x100   : > { %v1020_v15 = vadd.f32 %v1019_v7, %v990_v2  ;;  %v5332_v7 = vor.u32 %v5722_v6, %v5331_v5  ;;  %v5213_v6 = vld [vmem:[#allocation5 + $0x1d8] sm:$0xf0] }
 0x101   : > { %v5216_v8 = vor.u32 %v5689_v0, %v5213_v6 }
 0x102   : > { %v6570_v28 = vpack.c.bf16 %v1020_v15, %v962_v14  ;;  %1185 = vmatpush.bf16.msra.mxu1 %v5332_v7  ;;  %v939_v14 = vpop.f32.mrf.mxu0  ;;  %v968_v15 = vpop.f32.mrf.mxu1 }
 0x104   : > { %v1331_v52 = vunpack.c.l.b16 %v6570_v28 }
 0x106   : > { %v992_v20 = vpop.f32.mrf.mxu2  ;;  %1186 = vmatpush.bf16.msra.mxu1 %v5308_v21  ;;  %v5211_v21 = vld [vmem:[#allocation5 + $0x1c0] sm:$0xf] }
 0x107   : > { %v1021_v25 = vpop.f32.mrf.mxu3  ;;  %v5212_v23 = vor.u32 %v5692_v22, %v5211_v21  ;;  %1173 = vmatmul.bf16.gmra.mxu0 %v6500_v62 }
 0x108   : > { %v1022_v29 = vadd.f32 %v1021_v25, %v992_v20  ;;  %v969_v25 = vadd.f32 %v968_v15, %v939_v14  ;;  %v5635_v14 = vld [vmem:[#allocation5 + $0x14] sm:$0xf]  ;;  %v4997_v15 = vld [vmem:[#allocation5 + $0x28] sm:$0xf0] }
 0x109   : > { %v5000_v18 = vor.u32 %v5635_v14, %v4997_v15 }
 0x10a   : > { %v6572_v36 = vpack.c.bf16 %v1022_v29, %v964_v19  ;;  %v967_v19 = vadd.f32 %v966_v31, %v937_v30  ;;  %v5261_v29 = vld [vmem:[#allocation5 + $0x238] sm:$0xf0]  ;;  %v5284_v30 = vor.u32 %v5710_v38, %v5283_v35  ;;  %v5647_v31 = vld [vmem:[#allocation5 + $0x74] sm:$0xf]  ;;  %v1077_v35 = vpop.f32.mrf.mxu1 }
 0x10b   : > { %v5264_v33 = vor.u32 %v5701_v24, %v5261_v29  ;;  %v5048_v49 = vor.u32 %v5647_v31, %v5045_v45  ;;  %v979_v31 = vadd.f32 %v6568_v59, %v6566_v56 }
 0x10c   : > { %v1332_v53 = vunpack.c.l.b16 %v6572_v36  ;;  %1187 = vmatpush.bf16.msra.mxu1 %v5284_v30 }
 0x10d   : > { %1246 = vmatpush.bf16.msrb.mxu3 %v5264_v33  ;;  %1218 = vmatpush.bf16.msrb.mxu2 %v5048_v49 }
 0x10e   : > { %v995_v60 = vpop.f32.mrf.mxu2  ;;  %v6576_v61 = vpack.c.b16 %v1332_v53, %v1331_v52  ;;  %v5240_v52 = vor.u32 %v5695_v46, %v5237_v51  ;;  %v5259_v53 = vld [vmem:[#allocation5 + $0x220] sm:$0xf] }
 0x10f   : > { %v1024_v2 = vpop.f32.mrf.mxu3  ;;  %v5260_v58 = vor.u32 %v5704_v54, %v5259_v53 }
 0x110   : > { %1632 = vrot.lane.b32.xlu1 %v6576_v61, %s6324_s24  ;;  %v1025_v20 = vadd.f32 %v1024_v2, %v995_v60  ;;  %v5641_v60 = vld [vmem:[#allocation5 + $0x44] sm:$0xf] }
 0x111   : > { %1247 = vmatpush.bf16.msrb.mxu3 %v5240_v52  ;;  %1188 = vmatpush.bf16.msra.mxu1 %v5260_v58  ;;  %v5024_v5 = vor.u32 %v5641_v60, %v5021_v63 }
 0x112   : > { %v6581_v40 = vpack.c.bf16 %v1025_v20, %v967_v19  ;;  %v5189_v19 = vld [vmem:[#allocation5 + $0x1a8] sm:$0xf0] }
 0x113   : > { %1219 = vmatpush.bf16.msrb.mxu2 %v5024_v5  ;;  %v5192_v20 = vor.u32 %v5683_v16, %v5189_v19 }
 0x114   : > { %v1333_v55 = vunpack.c.l.b16 %v6581_v40 }
 0x115   : > { %1248 = vmatpush.bf16.msrb.mxu3 %v5216_v8  ;;  %1189 = vmatpush.bf16.msra.mxu1 %v5236_v13 }
 0x116   : > { %v997_v26 = vpop.f32.mrf.mxu2 }
 0x117   : > { %v1026_v32 = vpop.f32.mrf.mxu3  ;;  %1220 = vmatpush.bf16.msrb.mxu2 %v5000_v18  ;;  %1178 = vmatmul.bf16.gmra.mxu0 %v6520_v34 }
 0x118   : > { %v1027_v44 = vadd.f32 %v1026_v32, %v997_v26  ;;  %v5187_v26 = vld [vmem:[#allocation5 + $0x190] sm:$0xf]  ;;  %v1048_v32 = vpop.f32.mrf.mxu0 }
 0x119   : > { %1249 = vmatpush.bf16.msrb.mxu3 %v5192_v20  ;;  %1190 = vmatpush.bf16.msra.mxu1 %v5212_v23 }
 0x11a   : > { %v6583_v48 = vpack.c.bf16 %v1027_v44, %v969_v25  ;;  %1221 = vmatmul.bf16.vlgmr.msrb.gmra.mxu2 %v6504_v3 }
 0x11c   : > { %v1334_v57 = vunpack.c.l.b16 %v6583_v48  ;;  %1250 = vmatmul.bf16.vlgmr.msrb.gmra.mxu3 %v6509_v11 }
 0x11e   : > { %v1000_v2 = vpop.f32.mrf.mxu2  ;;  %v6587_v4 = vpack.c.b16 %v1334_v57, %v1333_v55 }
 0x11f   : > { %v1029_v7 = vpop.f32.mrf.mxu3 }
 0x120   : > { %v1030_v12 = vadd.f32 %v1029_v7, %v1000_v2  ;;  %1634 = vrot.lane.b32.xlu1 %v6587_v4, %s6324_s24  ;;  %v1050_v46 = vpop.f32.mrf.mxu0 }
 0x122   : > { %v6593_v17 = vpack.c.bf16 %v1030_v12, %v6556_v41  ;;  %v5188_v41 = vor.u32 %v5686_v27, %v5187_v26 }
 0x124   : > { %1191 = vmatpush.bf16.msra.mxu1 %v5188_v41 }
 0x126   : > { %v6595_v24 = vpop.f32.mrf.mxu2 }
 0x127   : > { %v6597_v25 = vpop.f32.mrf.mxu3  ;;  %1192 = vmatmul.bf16.vlgmr.msra.gmra.mxu1 %v6509_v11  ;;  %v1079_v11 = vpop.f32.mrf.mxu1 }
 0x128   : > { %v1080_v13 = vadd.f32 %v1079_v11, %v1050_v46 }
 0x12a   : > { %1226 = vmatmul.bf16.gmra.mxu2 %v6524_v39  ;;  %v1053_v39 = vpop.f32.mrf.mxu0 }
 0x12c   : > { %1255 = vmatmul.bf16.gmra.mxu3 %v6529_v47 }
 0x12e   : > { %v1005_v29 = vpop.f32.mrf.mxu2 }
 0x12f   : > { %v1034_v33 = vpop.f32.mrf.mxu3  ;;  %v1082_v59 = vpop.f32.mrf.mxu1 }
 0x130   : > { %v1035_v38 = vadd.f32 %v1034_v33, %v1005_v29  ;;  %v1083_v63 = vadd.f32 %v1082_v59, %v1053_v39  ;;  %v974_v29 = vadd.f32 %v6560_v43, %v6558_v42 }
 0x132   : > { %v6606_v3 = vpack.c.bf16 %v1035_v38, %v6564_v50  ;;  %v1055_v57 = vpop.f32.mrf.mxu0 }
 0x134   : > { %8106 = vst [vmem:[#allocation15_spill] sm:$0xff] %v6606_v3  ;;  %v1385_v51 = vunpack.c.l.b16 %v6606_v3 }
 0x136   : > { %v1007_v44 = vpop.f32.mrf.mxu2 }
 0x137   : > { %v1036_v30 = vpop.f32.mrf.mxu3  ;;  %1197 = vmatmul.bf16.gmra.mxu1 %v6529_v47  ;;  %v1084_v58 = vpop.f32.mrf.mxu1 }
 0x138   : > { %v1037_v45 = vadd.f32 %v1036_v30, %v1007_v44  ;;  %v1085_v7 = vadd.f32 %v1084_v58, %v1055_v57 }
 0x13a   : > { %v6610_v49 = vpack.c.bf16 %v1037_v45, %v979_v31  ;;  %1231 = vmatmul.bf16.gmra.mxu2 %v6500_v62  ;;  %v1058_v2 = vpop.f32.mrf.mxu0  ;;  %v1078_v62 = vadd.f32 %v1077_v35, %v1048_v32  ;;  %v1383_v31 = vunpack.c.l.b16 %v6593_v17 }
 0x13c   : > { %8107 = vst [vmem:[#allocation16_spill] sm:$0xff] %v6610_v49  ;;  %v1386_v52 = vunpack.c.l.b16 %v6610_v49  ;;  %1260 = vmatmul.bf16.gmra.mxu3 %v6502_v1 }
 0x13e   : > { %v1106_v53 = vpop.f32.mrf.mxu2  ;;  %v6615_v56 = vpack.c.b16 %v1386_v52, %v1385_v51 }
 0x13f   : > { %v1135_v50 = vpop.f32.mrf.mxu3  ;;  %v1087_v5 = vpop.f32.mrf.mxu1 }
 0x140   : > { %1673 = vrot.lane.b32.xlu1 %v6615_v56, %s6324_s24 }
 0x146   : > { %v1108_v54 = vpop.f32.mrf.mxu2 }
 0x147   : > { %v1137_v55 = vpop.f32.mrf.mxu3  ;;  %1202 = vmatmul.bf16.gmra.mxu1 %v6502_v1  ;;  %v1136_v1 = vadd.f32 %v1135_v50, %v1106_v53  ;;  %v1089_v23 = vpop.f32.mrf.mxu1  ;;  %v1088_v53 = vadd.f32 %v1087_v5, %v1058_v2 }
 0x148   : > { %v1138_v9 = vadd.f32 %v1137_v55, %v1108_v54 }
 0x149   : > { %v6634_v19 = vpack.c.bf16 %v1136_v1, %v1078_v62 }
 0x14a   : > { %1236 = vmatmul.bf16.gmra.mxu2 %v6520_v34  ;;  %v6629_v15 = vpack.c.bf16 %v1138_v9, %v1080_v13  ;;  %v1060_v34 = vpop.f32.mrf.mxu0 }
 0x14b   : > { %v1341_v41 = vunpack.c.l.b16 %v6634_v19  ;;  %v1090_v50 = vadd.f32 %v1089_v23, %v1060_v34 }
 0x14c   : > { %1265 = vmatmul.bf16.gmra.mxu3 %v6522_v37  ;;  %v1342_v27 = vunpack.c.l.b16 %v6629_v15 }
 0x14e   : > { %v1111_v47 = vpop.f32.mrf.mxu2  ;;  %v6648_v32 = vpack.c.b16 %v1342_v27, %v1341_v41 }
 0x14f   : > { %v1140_v60 = vpop.f32.mrf.mxu3 }
 0x150   : > { %v1141_v0 = vadd.f32 %v1140_v60, %v1111_v47  ;;  %v1355_v44 = vsel %vm1347_vm0, %v6648_v32, 0 }
 0x152   : > { %v6623_v10 = vpack.c.bf16 %v1141_v0, %v1083_v63  ;;  %v1063_v30 = vpop.f32.mrf.mxu0 }
 0x154   : > { %v1343_v16 = vunpack.c.l.b16 %v6623_v10 }
 0x156   : > { %v1113_v6 = vpop.f32.mrf.mxu2 }
 0x157   : > { %v1142_v8 = vpop.f32.mrf.mxu3  ;;  %1207 = vmatmul.bf16.gmra.mxu1 %v6522_v37  ;;  %v1032_v37 = vadd.f32 %v6597_v25, %v6595_v24  ;;  %v1092_v24 = vpop.f32.mrf.mxu1 }
 0x158   : > { %v1143_v12 = vadd.f32 %v1142_v8, %v1113_v6  ;;  %v1093_v46 = vadd.f32 %v1092_v24, %v1063_v30 }
 0x159   : > { %v6650_v33 = vpack.c.bf16 %v1032_v37, %v974_v29 }
 0x15a   : > { %v6627_v14 = vpack.c.bf16 %v1143_v12, %v1085_v7  ;;  %v1065_v51 = vpop.f32.mrf.mxu0 }
 0x15b   : > { %v1384_v25 = vunpack.c.l.b16 %v6650_v33 }
 0x15c   : > { %v1344_v18 = vunpack.c.l.b16 %v6627_v14 }
 0x15d   : > { %v6658_v43 = vpack.c.b16 %v1384_v25, %v1383_v31 }
 0x15e   : > { %v1116_v20 = vpop.f32.mrf.mxu2  ;;  %v6636_v21 = vpack.c.b16 %v1344_v18, %v1343_v16 }
 0x15f   : > { %v1145_v22 = vpop.f32.mrf.mxu3  ;;  %v1094_v52 = vpop.f32.mrf.mxu1 }
 0x160   : > { %1638 = vrot.lane.b32.xlu0 %v6636_v21, %s6324_s24  ;;  %v1358_v26 = vsel %vm1347_vm0, %v6636_v21, 0  ;;  %v1146_v39 = vadd.f32 %v1145_v22, %v1116_v20  ;;  %v1095_v55 = vadd.f32 %v1094_v52, %v1065_v51 }
 0x161   : > { %1366 = vmatpush.bf16.xpose.msrb.mxu0 %v1358_v26 }
 0x162   : > { %v6666_v60 = vpack.c.bf16 %v1146_v39, %v1088_v53 }
 0x163   : > { %v1164_v13 = vpop.f32.mrf.mxu0 }
 0x164   : > { %v1393_v5 = vunpack.c.l.b16 %v6666_v60 }
 0x166   : > { %v1118_v35 = vpop.f32.mrf.mxu2 }
 0x167   : > { %v1147_v38 = vpop.f32.mrf.mxu3 }
 0x168   : > { %1636 = vrot.lane.b32.xlu0 %v6648_v32, %s6324_s24  ;;  %v1148_v59 = vadd.f32 %v1147_v38, %v1118_v35 }
 0x169   : > { %1367 = vmatpush.bf16.xpose.msrb.mxu0 %v1355_v44 }
 0x16a   : > { %v6668_v63 = vpack.c.bf16 %v1148_v59, %v1090_v50 }
 0x16b   : > { %v1166_v1 = vpop.f32.mrf.mxu0 }
 0x16c   : > { %v1394_v8 = vunpack.c.l.b16 %v6668_v63 }
 0x16e   : > { %v1121_v42 = vpop.f32.mrf.mxu2  ;;  %v6684_v12 = vpack.c.b16 %v1394_v8, %v1393_v5 }
 0x16f   : > { %v1150_v45 = vpop.f32.mrf.mxu3 }
 0x170   : > { %1671 = vrot.lane.b32.xlu0 %v6658_v43, %s6324_s24  ;;  %5361 = vmatmul.msk.bf16.vlgmr.msrb.gmra.mxu0 %vm1347_vm0, %v6576_v61  ;;  %v1151_v11 = vadd.f32 %v1150_v45, %v1121_v42  ;;  %v1406_v62 = vsel %vm1347_vm0, %v6684_v12, 0 }
 0x172   : > { %v6664_v54 = vpack.c.bf16 %v1151_v11, %v1093_v46 }
 0x174   : > { %v1395_v6 = vunpack.c.l.b16 %v6664_v54  ;;  %v1169_v34 = vpop.f32.mrf.mxu0 }
 0x176   : > { %v1123_v57 = vpop.f32.mrf.mxu2 }
 0x177   : > { %v1152_v58 = vpop.f32.mrf.mxu3 }
 0x178   : > { %v1153_v47 = vadd.f32 %v1152_v58, %v1123_v57 }
 0x17a   : > { %v6670_v0 = vpack.c.bf16 %v1153_v47, %v1095_v55 }
 0x17c   : > { %v1396_v7 = vunpack.c.l.b16 %v6670_v0  ;;  %v1171_v27 = vpop.f32.mrf.mxu0 }
 0x17e   : > { %v6674_v2 = vpack.c.b16 %v1396_v7, %v1395_v6 }
 0x180   : > { %1677 = vrot.lane.b32.xlu2 %v6674_v2, %s6324_s24  ;;  %5362 = vmatmul.msk.bf16.gmra.mxu0 %vm1347_vm0, %v6587_v4  ;;  %v1409_v9 = vsel %vm1347_vm0, %v6674_v2, 0 }
 0x181   : > { %1417 = vmatpush.bf16.xpose.msrb.mxu1 %v1409_v9 }
 0x184   : > { %v1174_v51 = vpop.f32.mrf.mxu0 }
 0x188   : > { %1675 = vrot.lane.b32.xlu2 %v6684_v12, %s6324_s24 }
 0x189   : > { %1418 = vmatpush.bf16.xpose.msrb.mxu1 %v1406_v62 }
 0x18c   : > { %v1176_v9 = vpop.f32.mrf.mxu0 }
 0x190   : > { %5363 = vmatmul.msk.bf16.vlgmr.msrb.gmra.mxu1 %vm1347_vm0, %v6658_v43 }
 0x19d   : > { %v1222_v18 = vpop.f32.mrf.mxu2 }
 0x19f   : > { %v1251_v20 = vpop.f32.mrf.mxu3 }
 0x1a0   : > { %5364 = vmatmul.msk.bf16.gmra.mxu1 %vm1347_vm0, %v6615_v56  ;;  %v1252_v30 = vadd.f32 %v1251_v20, %v1222_v18  ;;  %v1179_v20 = vpop.f32.mrf.mxu0 }
 0x1a4   : > { %v1193_v16 = vpop.f32.mrf.mxu1 }
 0x1a5   : > { %v1224_v23 = vpop.f32.mrf.mxu2  ;;  %v1194_v44 = vadd.f32 %v1193_v16, %v1164_v13 }
 0x1a7   : > { %v1253_v26 = vpop.f32.mrf.mxu3  ;;  %v6698_v50 = vpack.c.bf16 %v1252_v30, %v1194_v44 }
 0x1a8   : > { %v1254_v31 = vadd.f32 %v1253_v26, %v1224_v23  ;;  %v1181_v30 = vpop.f32.mrf.mxu0 }
 0x1a9   : > { %v1540_v7 = vunpack.c.l.b16 %v6698_v50 }
 0x1ac   : > { %v1195_v22 = vpop.f32.mrf.mxu1 }
 0x1ad   : > { %v1227_v41 = vpop.f32.mrf.mxu2  ;;  %v1196_v25 = vadd.f32 %v1195_v22, %v1166_v1 }
 0x1af   : > { %v1256_v29 = vpop.f32.mrf.mxu3  ;;  %v6700_v39 = vpack.c.bf16 %v1254_v31, %v1196_v25 }
 0x1b0   : > { %v1257_v38 = vadd.f32 %v1256_v29, %v1227_v41 }
 0x1b1   : > { %v1541_v5 = vunpack.c.l.b16 %v6700_v39 }
 0x1b3   : > { %v6709_v8 = vpack.c.b16 %v1541_v5, %v1540_v7 }
 0x1b4   : > { %v1198_v37 = vpop.f32.mrf.mxu1 }
 0x1b5   : > { %v1199_v35 = vadd.f32 %v1198_v37, %v1169_v34  ;;  %v1229_v46 = vpop.f32.mrf.mxu2 }
 0x1b7   : > { %v6694_v42 = vpack.c.bf16 %v1257_v38, %v1199_v35  ;;  %v1258_v11 = vpop.f32.mrf.mxu3  ;;  %v1633_v38 = vpop.permute.xlu1 %1632 }
 0x1b8   : > { %v1259_v52 = vadd.f32 %v1258_v11, %v1229_v46 }
 0x1b9   : > { %v1542_v59 = vunpack.c.l.b16 %v6694_v42 }
 0x1bc   : > { %v1200_v24 = vpop.f32.mrf.mxu1 }
 0x1bd   : > { %v1201_v45 = vadd.f32 %v1200_v24, %v1171_v27  ;;  %v1232_v47 = vpop.f32.mrf.mxu2 }
 0x1bf   : > { %v6696_v53 = vpack.c.bf16 %v1259_v52, %v1201_v45  ;;  %v1261_v6 = vpop.f32.mrf.mxu3 }
 0x1c0   : > { %v1262_v25 = vadd.f32 %v1261_v6, %v1232_v47 }
 0x1c1   : > { %v1543_v55 = vunpack.c.l.b16 %v6696_v53 }
 0x1c3   : > { %v6704_v58 = vpack.c.b16 %v1543_v55, %v1542_v59 }
 0x1c4   : > { %v1203_v57 = vpop.f32.mrf.mxu1 }
 0x1c5   : > { %1560 = vmatpush.bf16.msra.mxu2 %v6704_v58  ;;  %v1234_v16 = vpop.f32.mrf.mxu2  ;;  %v1204_v24 = vadd.f32 %v1203_v57, %v1174_v51 }
 0x1c7   : > { %v1263_v18 = vpop.f32.mrf.mxu3 }
 0x1c8   : > { %v1264_v46 = vadd.f32 %v1263_v18, %v1234_v16 }
 0x1c9   : > { %1561 = vmatpush.bf16.msra.mxu2 %v6709_v8 }
 0x1cc   : > { %v1205_v13 = vpop.f32.mrf.mxu1 }
 0x1cd   : > { %v1237_v37 = vpop.f32.mrf.mxu2  ;;  %v1206_v45 = vadd.f32 %v1205_v13, %v1176_v9  ;;  %v1295_v9 = vld [vmem:[#allocation8] sm:$0xff] }
 0x1cf   : > { %v1266_v41 = vpop.f32.mrf.mxu3 }
 0x1d0   : > { %v1267_v35 = vadd.f32 %v1266_v41, %v1237_v37 }
 0x1d2   : > { %v1639_v62 = vpop.permute.xlu0 %1638 }
 0x1d3   : > { %v1650_v1 = vsel %vm1347_vm0, %v1639_v62, 0  ;;  %v6719_v62 = vpack.c.bf16 %v1262_v25, %v1204_v24  ;;  %v1298_v25 = vld [vmem:[#allocation8 + $0x18] sm:$0xff] }
 0x1d4   : > { %1658 = vmatpush.bf16.xpose.msra.mxu0 %v1650_v1  ;;  %v1208_v27 = vpop.f32.mrf.mxu1  ;;  %v6721_v1 = vpack.c.bf16 %v1264_v46, %v1206_v45 }
 0x1d5   : > { %v1209_v29 = vadd.f32 %v1208_v27, %v1179_v20  ;;  %v1239_v59 = vpop.f32.mrf.mxu2  ;;  %v1587_v16 = vunpack.c.l.b16 %v6719_v62  ;;  %v1296_v27 = vld [vmem:[#allocation8 + $0x8] sm:$0xff] }
 0x1d6   : > { %v1588_v18 = vunpack.c.l.b16 %v6721_v1 }
 0x1d7   : > { %v6717_v11 = vpack.c.bf16 %v1267_v35, %v1209_v29  ;;  %v1268_v7 = vpop.f32.mrf.mxu3 }
 0x1d8   : > { %v1269_v5 = vadd.f32 %v1268_v7, %v1239_v59 }
 0x1d9   : > { %v1589_v57 = vunpack.c.l.b16 %v6717_v11 }
 0x1da   : > { %v1678_v34 = vpop.permute.xlu2 %1677  ;;  %v1637_v22 = vpop.permute.xlu0 %1636 }
 0x1db   : > { %v1689_v23 = vsel %vm1347_vm0, %v1678_v34, 0  ;;  %v1647_v26 = vsel %vm1347_vm0, %v1637_v22, 0  ;;  %v6733_v34 = vpack.c.b16 %v1588_v18, %v1587_v16 }
 0x1dc   : > { %1659 = vmatpush.bf16.xpose.msra.mxu0 %v1647_v26  ;;  %1697 = vmatpush.bf16.xpose.msra.mxu1 %v1689_v23  ;;  %v1210_v52 = vpop.f32.mrf.mxu1  ;;  %v1635_v26 = vpop.permute.xlu1 %1634 }
 0x1dd   : > { %v1211_v55 = vadd.f32 %v1210_v52, %v1181_v30 }
 0x1df   : > { %v6723_v51 = vpack.c.bf16 %v1269_v5, %v1211_v55 }
 0x1e1   : > { %v1590_v47 = vunpack.c.l.b16 %v6723_v51 }
 0x1e2   : > { %v1676_v44 = vpop.permute.xlu2 %1675  ;;  %v1672_v6 = vpop.permute.xlu0 %1671 }
 0x1e3   : > { %5369 = vmatmul.msk.bf16.vlgmr.msra.gmra.mxu0 %vm1347_vm0, %v1633_v38  ;;  %v1686_v31 = vsel %vm1347_vm0, %v1676_v44, 0  ;;  %v6728_v13 = vpack.c.b16 %v1590_v47, %v1589_v57  ;;  %v1297_v38 = vld [vmem:[#allocation8 + $0x10] sm:$0xff] }
 0x1e4   : > { %1698 = vmatpush.bf16.xpose.msra.mxu1 %v1686_v31  ;;  %v1674_v35 = vpop.permute.xlu1 %1673 }
 0x1e5   : > { %1607 = vmatpush.bf16.msra.mxu3 %v6728_v13 }
 0x1e9   : > { %1608 = vmatpush.bf16.msra.mxu3 %v6733_v34 }
 0x1eb   : > { %5371 = vmatmul.msk.bf16.vlgmr.msra.gmra.mxu1 %vm1347_vm0, %v1672_v6 }
 0x1ed   : > { %v1369_v20 = vpop.f32.mrf.mxu0 }
 0x1ee   : > { %v1370_v22 = vadd.f32 %v1369_v20, %v1295_v9 }
 0x1f0   : > { %v1430_v23 = vsel %vm1347_vm0, %v1370_v22, -inf }
 0x1f1   : > { %1431 = vmax.xlane.f32.xlu2 %v1430_v23  ;;  %v1299_v23 = vld [vmem:[#allocation8 + $0x20] sm:$0xff] }
 0x1f3   : > { %5370 = vmatmul.msk.bf16.gmra.mxu0 %vm1347_vm0, %v1635_v26 }
 0x1f5   : > { %v1371_v37 = vpop.f32.mrf.mxu0 }
 0x1f6   : > { %v1372_v41 = vadd.f32 %v1371_v37, %v1296_v27 }
 0x1f8   : > { %v1433_v29 = vsel %vm1347_vm0, %v1372_v41, -inf }
 0x1f9   : > { %1434 = vmax.xlane.f32.xlu0 %v1433_v29 }
 0x1fb   : > { %5372 = vmatmul.msk.bf16.gmra.mxu1 %vm1347_vm0, %v1674_v35 }
 0x1fd   : > { %v1374_v44 = vpop.f32.mrf.mxu0 }
 0x1fe   : > { %v1375_v30 = vadd.f32 %v1374_v44, %v1297_v38 }
 0x200   : > { %v1436_v24 = vsel %vm1347_vm0, %v1375_v30, -inf }
 0x201   : > { %1437 = vmax.xlane.f32.xlu1 %v1436_v24 }
 0x205   : > { %v1376_v31 = vpop.f32.mrf.mxu0 }
 0x206   : > { %v6741_v45 = vadd.f32 %v1376_v31, %v1298_v25 }
 0x208   : > { %v1439_v46 = vsel %vm1347_vm0, %v6741_v45, -inf }
 0x209   : > { %1440 = vmax.xlane.f32.xlu2 %v1439_v46 }
 0x20d   : > { %v1420_v52 = vpop.f32.mrf.mxu1 }
 0x20e   : > { %v6745_v59 = vadd.f32 %v1420_v52, %v1295_v9 }
 0x210   : > { %v1442_v55 = vsel %vm1347_vm0, %v6745_v59, -inf }
 0x211   : > { %1443 = vmax.xlane.f32.xlu2 %v1442_v55 }
 0x215   : > { %v1422_v7 = vpop.f32.mrf.mxu1 }
 0x216   : > { %v6749_v5 = vadd.f32 %v1422_v7, %v1296_v27  ;;  %v1301_v7 = vld [vmem:[#allocation8 + $0x30] sm:$0xff] }
 0x218   : > { %v1445_v57 = vsel %vm1347_vm0, %v6749_v5, -inf }
 0x219   : > { %1446 = vmax.xlane.f32.xlu0 %v1445_v57 }
 0x21d   : > { %v1425_v47 = vpop.f32.mrf.mxu1 }
 0x21e   : > { %v6753_v6 = vadd.f32 %v1425_v47, %v1297_v38  ;;  %v1300_v38 = vld [vmem:[#allocation8 + $0x28] sm:$0xff] }
 0x220   : > { %v1448_v16 = vsel %vm1347_vm0, %v6753_v6, -inf }
 0x221   : > { %1449 = vmax.xlane.f32.xlu0 %v1448_v16 }
 0x225   : > { %v1427_v9 = vpop.f32.mrf.mxu1 }
 0x226   : > { %v6757_v18 = vadd.f32 %v1427_v9, %v1298_v25 }
 0x228   : > { %v1451_v20 = vsel %vm1347_vm0, %v6757_v18, -inf }
 0x229   : > { %1452 = vmax.xlane.f32.xlu1 %v1451_v20 }
 0x260   : > { %v1661_v26 = vpop.f32.mrf.mxu0 }
 0x261   : > { %v6761_v27 = vadd.f32 %v1661_v26, %v1299_v23 }
 0x263   : > { %v1710_v37 = vsel %vm1347_vm0, %v6761_v27, -inf }
 0x264   : > { %1711 = vmax.xlane.f32.xlu1 %v1710_v37  ;;  %v1432_v29 = vpop.xlane.xlu2 %1431 }
 0x265   : > { %v1454_v35 = vsub.f32 %v1370_v22, %v1432_v29 }
 0x267   : > { %v1462_v44 = vmul.f32 1.442695, %v1454_v35  ;;  %v1302_v35 = vld [vmem:[#allocation8 + $0x38] sm:$0xff] }
 0x268   : > { %v1663_v24 = vpop.f32.mrf.mxu0  ;;  %v1700_v31 = vpop.f32.mrf.mxu1 }
 0x269   : > { %5865 = vpow2.f32 %v1462_v44  ;;  %v6765_v25 = vadd.f32 %v1663_v24, %v1300_v38 }
 0x26b   : > { %v1713_v46 = vsel %vm1347_vm0, %v6765_v25, -inf }
 0x26c   : > { %v1435_v52 = vpop.xlane.xlu0 %1434  ;;  %1714 = vmax.xlane.f32.xlu2 %v1713_v46 }
 0x26d   : > { %v1455_v55 = vsub.f32 %v1372_v41, %v1435_v52 }
 0x26f   : > { %v6769_v57 = vpop.eup %5865  ;;  %v1464_v47 = vmul.f32 1.442695, %v1455_v55 }
 0x270   : > { %v1666_v16 = vpop.f32.mrf.mxu0  ;;  %v1702_v9 = vpop.f32.mrf.mxu1  ;;  %v1478_v22 = vsel %vm1347_vm0, %v6769_v57, 0.0 }
 0x271   : > { %v6773_v20 = vadd.f32 %v1666_v16, %v1301_v7  ;;  %1479 = vadd.xlane.f32.xlu1 %v1478_v22  ;;  %5867 = vpow2.f32 %v1464_v47  ;;  %v6777_v37 = vadd.f32 %v1702_v9, %v1300_v38 }
 0x273   : > { %v1716_v26 = vsel %vm1347_vm0, %v6773_v20, -inf  ;;  %v1725_v52 = vsel %vm1347_vm0, %v6777_v37, -inf }
 0x274   : > { %v1438_v29 = vpop.xlane.xlu1 %1437  ;;  %1717 = vmax.xlane.f32.xlu2 %v1716_v26  ;;  %v6792_v26 = vadd.f32 %v1700_v31, %v1299_v23 }
 0x275   : > { %v1456_v41 = vsub.f32 %v1375_v30, %v1438_v29 }
 0x277   : > { %v1466_v44 = vmul.f32 1.442695, %v1456_v41  ;;  %v6779_v24 = vpop.eup %5867 }
 0x278   : > { %v1668_v46 = vpop.f32.mrf.mxu0  ;;  %v1705_v16 = vpop.f32.mrf.mxu1  ;;  %v1481_v47 = vsel %vm1347_vm0, %v6779_v24, 0.0 }
 0x279   : > { %v6783_v55 = vadd.f32 %v1668_v46, %v1302_v35  ;;  %1726 = vmax.xlane.f32.xlu1 %v1725_v52  ;;  %5869 = vpow2.f32 %v1466_v44  ;;  %v6789_v30 = vadd.f32 %v1705_v16, %v1301_v7  ;;  %v1722_v46 = vsel %vm1347_vm0, %v6792_v26, -inf }
 0x27b   : > { %v1719_v38 = vsel %vm1347_vm0, %v6783_v55, -inf  ;;  %v1728_v44 = vsel %vm1347_vm0, %v6789_v30, -inf }
 0x27c   : > { %1720 = vmax.xlane.f32.xlu0 %v1719_v38  ;;  %1482 = vadd.xlane.f32.xlu2 %v1481_v47  ;;  %v1441_v9 = vpop.xlane.xlu2 %1440 }
 0x27d   : > { %v1457_v22 = vsub.f32 %v6741_v45, %v1441_v9 }
 0x27f   : > { %v1468_v29 = vmul.f32 1.442695, %v1457_v22  ;;  %v6794_v41 = vpop.eup %5869 }
 0x280   : > { %v1484_v7 = vsel %vm1347_vm0, %v6794_v41, 0.0  ;;  %v1707_v52 = vpop.f32.mrf.mxu1 }
 0x281   : > { %1729 = vmax.xlane.f32.xlu1 %v1728_v44  ;;  %5871 = vpow2.f32 %v1468_v29  ;;  %v6803_v31 = vadd.f32 %v1707_v52, %v1302_v35 }
 0x283   : > { %v1731_v47 = vsel %vm1347_vm0, %v6803_v31, -inf }
 0x284   : > { %1723 = vmax.xlane.f32.xlu0 %v1722_v46  ;;  %1485 = vadd.xlane.f32.xlu2 %v1484_v7  ;;  %v1444_v45 = vpop.xlane.xlu2 %1443 }
 0x285   : > { %v1458_v23 = vsub.f32 %v6745_v59, %v1444_v45 }
 0x287   : > { %v1470_v16 = vmul.f32 1.442695, %v1458_v23  ;;  %v6805_v38 = vpop.eup %5871 }
 0x288   : > { %v1487_v9 = vsel %vm1347_vm0, %v6805_v38, 0.0 }
 0x289   : > { %5873 = vpow2.f32 %v1470_v16 }
 0x28c   : > { %v1447_v22 = vpop.xlane.xlu0 %1446  ;;  %1732 = vmax.xlane.f32.xlu2 %v1731_v47  ;;  %1488 = vadd.xlane.f32.xlu0 %v1487_v9 }
 0x28d   : > { %v1459_v29 = vsub.f32 %v6749_v5, %v1447_v22 }
 0x28f   : > { %v1472_v44 = vmul.f32 1.442695, %v1459_v29  ;;  %v6812_v46 = vpop.eup %5873 }
 0x290   : > { %v1490_v59 = vsel %vm1347_vm0, %v6812_v46, 0.0 }
 0x291   : > { %5875 = vpow2.f32 %v1472_v44 }
 0x294   : > { %v1450_v35 = vpop.xlane.xlu0 %1449  ;;  %1491 = vadd.xlane.f32.xlu0 %v1490_v59 }
 0x295   : > { %v1460_v7 = vsub.f32 %v6753_v6, %v1450_v35 }
 0x297   : > { %v6817_v52 = vpop.eup %5875  ;;  %v1474_v45 = vmul.f32 1.442695, %v1460_v7 }
 0x298   : > { %v1493_v23 = vsel %vm1347_vm0, %v6817_v52, 0.0 }
 0x299   : > { %5877 = vpow2.f32 %v1474_v45  ;;  %1494 = vadd.xlane.f32.xlu1 %v1493_v23 }
 0x29c   : > { %v1453_v5 = vpop.xlane.xlu1 %1452 }
 0x29d   : > { %v1461_v16 = vsub.f32 %v6757_v18, %v1453_v5 }
 0x29f   : > { %v6822_v47 = vpop.eup %5877  ;;  %v1476_v9 = vmul.f32 1.442695, %v1461_v16 }
 0x2a0   : > { %v1496_v22 = vsel %vm1347_vm0, %v6822_v47, 0.0 }
 0x2a1   : > { %5879 = vpow2.f32 %v1476_v9  ;;  %1497 = vadd.xlane.f32.xlu0 %v1496_v22 }
 0x2a7   : > { %v6826_v6 = vpop.eup %5879 }
 0x2a8   : > { %v1499_v29 = vsel %vm1347_vm0, %v6826_v6, 0.0 }
 0x2a9   : > { %1500 = vadd.xlane.f32.xlu0 %v1499_v29 }
 0x2b2   : > { %1818 = vrot.lane.b32.xlu1 %v6704_v58, %s6324_s24 }
 0x2d7   : > { %v1712_v44 = vpop.xlane.xlu1 %1711 }
 0x2d8   : > { %v1734_v18 = vsub.f32 %v6761_v27, %v1712_v44 }
 0x2da   : > { %v1742_v59 = vmul.f32 1.442695, %v1734_v18 }
 0x2dc   : > { %5881 = vpow2.f32 %v1742_v59 }
 0x2df   : > { %v1715_v35 = vpop.xlane.xlu2 %1714 }
 0x2e0   : > { %v1735_v7 = vsub.f32 %v6765_v25, %v1715_v35 }
 0x2e2   : > { %v6834_v45 = vpop.eup %5881  ;;  %v1744_v23 = vmul.f32 1.442695, %v1735_v7 }
 0x2e3   : > { %v1758_v5 = vsel %vm1347_vm0, %v6834_v45, 0.0 }
 0x2e4   : > { %5883 = vpow2.f32 %v1744_v23  ;;  %1759 = vadd.xlane.f32.xlu2 %v1758_v5  ;;  %v1480_v16 = vpop.xlane.xlu1 %1479 }
 0x2e5   : > { %5885 = vrcp.f32 %v1480_v16 }
 0x2e7   : > { %v1718_v9 = vpop.xlane.xlu2 %1717 }
 0x2e8   : > { %v1736_v22 = vsub.f32 %v6773_v20, %v1718_v9 }
 0x2ea   : > { %v6839_v29 = vpop.eup %5883  ;;  %v1746_v27 = vmul.f32 1.442695, %v1736_v22 }
 0x2eb   : > { %v1761_v44 = vsel %vm1347_vm0, %v6839_v29, 0.0  ;;  %v5886_v35 = vpop.eup %5885 }
 0x2ec   : > { %5887 = vpow2.f32 %v1746_v27  ;;  %v6843_v25 = vpop.xlane.xlu1 %1726  ;;  %1762 = vadd.xlane.f32.xlu0 %v1761_v44  ;;  %v1510_v5 = vmul.f32 %v5886_v35, %v6769_v57 }
 0x2ee   : > { %v1518_v44 = vpack.c.bf16 %v1510_v5, %v1510_v5 }
 0x2ef   : > { %v1721_v18 = vpop.xlane.xlu0 %1720  ;;  %v1483_v59 = vpop.xlane.xlu2 %1482 }
 0x2f0   : > { %v1737_v7 = vsub.f32 %v6783_v55, %v1721_v18  ;;  %5889 = vrcp.f32 %v1483_v59  ;;  %v1530_v57 = vunpack.c.l.b16 %v1518_v44 }
 0x2f2   : > { %v6846_v23 = vpop.eup %5887  ;;  %v1748_v20 = vmul.f32 1.442695, %v1737_v7 }
 0x2f3   : > { %v1764_v16 = vsel %vm1347_vm0, %v6846_v23, 0.0 }
 0x2f4   : > { %5891 = vpow2.f32 %v1748_v20  ;;  %v1730_v9 = vpop.xlane.xlu1 %1729  ;;  %1765 = vadd.xlane.f32.xlu0 %v1764_v16 }
 0x2f5   : > { %v1740_v22 = vsub.f32 %v6789_v30, %v1730_v9 }
 0x2f6   : > { %v5890_v27 = vpop.eup %5889 }
 0x2f7   : > { %v1511_v3 = vmul.f32 %v5890_v27, %v6779_v24  ;;  %v1754_v49 = vmul.f32 1.442695, %v1740_v22  ;;  %v1724_v55 = vpop.xlane.xlu0 %1723  ;;  %v1486_v18 = vpop.xlane.xlu2 %1485 }
 0x2f8   : > { %5893 = vrcp.f32 %v1486_v18 }
 0x2f9   : > { %v1519_v59 = vpack.c.bf16 %v1511_v3, %v1511_v3  ;;  %5895 = vpow2.f32 %v1754_v49 }
 0x2fa   : > { %v6853_v7 = vpop.eup %5891 }
 0x2fb   : > { %v1531_v35 = vunpack.c.l.b16 %v1519_v59  ;;  %v1767_v20 = vsel %vm1347_vm0, %v6853_v7, 0.0 }
 0x2fc   : > { %1816 = vrot.lane.b32.xlu2 %v6709_v8, %s6324_s24  ;;  %1768 = vadd.xlane.f32.xlu1 %v1767_v20 }
 0x2fd   : > { %v1534_v30 = vpack.c.b16 %v1531_v35, %v1530_v57 }
 0x2fe   : > { %v5894_v5 = vpop.eup %5893 }
 0x2ff   : > { %v1489_v24 = vpop.xlane.xlu0 %1488  ;;  %5365 = vmatmul.msk.bf16.vlgmr.msra.gmra.mxu2 %vm1347_vm0, %v1534_v30  ;;  %v6860_v16 = vpop.eup %5895  ;;  %v1512_v3 = vmul.f32 %v5894_v5, %v6794_v41 }
 0x300   : > { %5897 = vrcp.f32 %v1489_v24  ;;  %v1776_v49 = vsel %vm1347_vm0, %v6860_v16, 0.0  ;;  %v1738_v24 = vsub.f32 %v6792_v26, %v1724_v55  ;;  %v1739_v26 = vsub.f32 %v6777_v37, %v6843_v25 }
 0x301   : > { %v1520_v22 = vpack.c.bf16 %v1512_v3, %v1512_v3 }
 0x303   : > { %v1532_v59 = vunpack.c.l.b16 %v1520_v22 }
 0x304   : > { %1777 = vadd.xlane.f32.xlu1 %v1776_v49 }
 0x306   : > { %v5898_v9 = vpop.eup %5897 }
 0x307   : > { %v1513_v27 = vmul.f32 %v5898_v9, %v6805_v38  ;;  %v1492_v44 = vpop.xlane.xlu0 %1491 }
 0x308   : > { %5899 = vrcp.f32 %v1492_v44  ;;  %1859 = vrot.lane.b32.xlu0 %v6728_v13, %s6324_s24  ;;  %v1750_v44 = vmul.f32 1.442695, %v1738_v24 }
 0x309   : > { %v1521_v18 = vpack.c.bf16 %v1513_v27, %v1513_v27 }
 0x30b   : > { %v1533_v57 = vunpack.c.l.b16 %v1521_v18 }
 0x30c   : > { %v1495_v35 = vpop.xlane.xlu1 %1494 }
 0x30d   : > { %5901 = vrcp.f32 %v1495_v35  ;;  %v1535_v20 = vpack.c.b16 %v1533_v57, %v1532_v59  ;;  %v1752_v35 = vmul.f32 1.442695, %v1739_v26 }
 0x30e   : > { %v5900_v41 = vpop.eup %5899 }
 0x30f   : > { %5366 = vmatmul.msk.bf16.gmra.mxu2 %vm1347_vm0, %v1535_v20  ;;  %v1514_v30 = vmul.f32 %v5900_v41, %v6812_v46 }
 0x311   : > { %v1522_v38 = vpack.c.bf16 %v1514_v30, %v1514_v30 }
 0x313   : > { %v5902_v5 = vpop.eup %5901  ;;  %v1577_v22 = vunpack.c.l.b16 %v1522_v38 }
 0x314   : > { %v1515_v3 = vmul.f32 %v5902_v5, %v6817_v52  ;;  %v1498_v49 = vpop.xlane.xlu0 %1497 }
 0x315   : > { %5903 = vrcp.f32 %v1498_v49 }
 0x316   : > { %v1523_v9 = vpack.c.bf16 %v1515_v3, %v1515_v3  ;;  %5905 = vpow2.f32 %v1750_v44  ;;  %v1733_v3 = vpop.xlane.xlu2 %1732 }
 0x318   : > { %v1578_v27 = vunpack.c.l.b16 %v1523_v9  ;;  %v1741_v9 = vsub.f32 %v6803_v31, %v1733_v3 }
 0x31a   : > { %v1581_v18 = vpack.c.b16 %v1578_v27, %v1577_v22 }
 0x31b   : > { %v5904_v57 = vpop.eup %5903 }
 0x31c   : > { %5367 = vmatmul.msk.bf16.vlgmr.msra.gmra.mxu3 %vm1347_vm0, %v1581_v18  ;;  %v1501_v59 = vpop.xlane.xlu0 %1500  ;;  %v1516_v46 = vmul.f32 %v5904_v57, %v6822_v47  ;;  %v6878_v52 = vpop.eup %5905  ;;  %v1756_v18 = vmul.f32 1.442695, %v1741_v9 }
 0x31d   : > { %5907 = vrcp.f32 %v1501_v59  ;;  %2124 = vrot.lane.b32.xlu1 %v6648_v32, %s6325_s29  ;;  %v1770_v5 = vsel %vm1347_vm0, %v6878_v52, 0.0 }
 0x31e   : > { %v1524_v20 = vpack.c.bf16 %v1516_v46, %v1516_v46  ;;  %5909 = vpow2.f32 %v1752_v35  ;;  %v5411_v35 = vld [vmem:[#allocation7 + $0x10] sm:$0xf] }
 0x320   : > { %v1579_v37 = vunpack.c.l.b16 %v1524_v20  ;;  %v5732_v20 = vld [vmem:[#allocation7 + $0x14] sm:$0xf0] }
 0x323   : > { %v5908_v55 = vpop.eup %5907 }
 0x324   : > { %v1517_v41 = vmul.f32 %v5908_v55, %v6826_v6  ;;  %v1819_v30 = vpop.permute.xlu1 %1818  ;;  %v6888_v6 = vpop.eup %5909 }
 0x325   : > { %1771 = vadd.xlane.f32.xlu2 %v1770_v5  ;;  %2122 = vrot.lane.b32.xlu1 %v6587_v4, %s6325_s29  ;;  %v1773_v38 = vsel %vm1347_vm0, %v6888_v6, 0.0 }
 0x326   : > { %v1525_v24 = vpack.c.bf16 %v1517_v41, %v1517_v41  ;;  %1834 = vmatpush.bf16.msrb.mxu2 %v1819_v30  ;;  %v5412_v30 = vor.u32 %v5732_v20, %v5411_v35  ;;  %v5379_v20 = vld [vmem:[#allocation7 + $0x20] sm:$0xf] }
 0x328   : > { %v1580_v47 = vunpack.c.l.b16 %v1525_v24 }
 0x32a   : > { %v1582_v25 = vpack.c.b16 %v1580_v47, %v1579_v37  ;;  %v5403_v37 = vld [vmem:[#allocation7] sm:$0xf]  ;;  %v5730_v47 = vld [vmem:[#allocation7 + $0x4] sm:$0xf0] }
 0x32c   : > { %5368 = vmatmul.msk.bf16.gmra.mxu3 %vm1347_vm0, %v1582_v25 }
 0x32d   : > { %2163 = vrot.lane.b32.xlu1 %v6684_v12, %s6325_s29 }
 0x332   : > { %1774 = vadd.xlane.f32.xlu0 %v1773_v38 }
 0x33d   : > { %2126 = vrot.lane.b32.xlu2 %v6636_v21, %s6325_s29 }
 0x345   : > { %2120 = vrot.lane.b32.xlu2 %v6576_v61, %s6325_s29 }
 0x346   : > { %1857 = vrot.lane.b32.xlu0 %v6733_v34, %s6324_s24 }
 0x34d   : > { %2165 = vrot.lane.b32.xlu2 %v6674_v2, %s6325_s29 }
 0x355   : > { %2161 = vrot.lane.b32.xlu2 %v6615_v56, %s6325_s29 }
 0x357   : > { %v1760_v49 = vpop.xlane.xlu2 %1759 }
 0x358   : > { %5911 = vrcp.f32 %v1760_v49 }
 0x35e   : > { %v5912_v27 = vpop.eup %5911 }
 0x35f   : > { %v1763_v44 = vpop.xlane.xlu0 %1762  ;;  %v1817_v22 = vpop.permute.xlu2 %1816  ;;  %v1790_v59 = vmul.f32 %v5912_v27, %v6834_v45  ;;  %v5404_v45 = vor.u32 %v5730_v47, %v5403_v37  ;;  %v5735_v37 = vld [vmem:[#allocation7 + $0x34] sm:$0xf]  ;;  %v5389_v47 = vld [vmem:[#allocation7 + $0x38] sm:$0xf0] }
 0x360   : > { %5913 = vrcp.f32 %v1763_v44  ;;  %1835 = vmatpush.bf16.msrb.mxu2 %v1817_v22 }
 0x361   : > { %5915 = vpow2.f32 %v1756_v18  ;;  %v1798_v26 = vpack.c.bf16 %v1790_v59, %v1790_v59 }
 0x363   : > { %v1810_v31 = vunpack.c.l.b16 %v1798_v26  ;;  %v5387_v26 = vld [vmem:[#allocation7 + $0x30] sm:$0xf] }
 0x364   : > { %2068 = vmatpush.bf16.msra.mxu2 %v5412_v30 }
 0x366   : > { %v5914_v57 = vpop.eup %5913 }
 0x367   : > { %v1791_v46 = vmul.f32 %v5914_v57, %v6839_v29  ;;  %v1766_v55 = vpop.xlane.xlu0 %1765  ;;  %v6905_v24 = vpop.eup %5915 }
 0x368   : > { %5917 = vrcp.f32 %v1766_v55  ;;  %v1779_v29 = vsel %vm1347_vm0, %v6905_v24, 0.0  ;;  %2069 = vmatpush.bf16.msra.mxu2 %v5404_v45 }
 0x369   : > { %v1799_v41 = vpack.c.bf16 %v1791_v46, %v1791_v46  ;;  %v5736_v46 = vld [vmem:[#allocation7 + $0x34] sm:$0xf0] }
 0x36a   : > { %v5388_v55 = vor.u32 %v5736_v46, %v5387_v26 }
 0x36b   : > { %v1811_v5 = vunpack.c.l.b16 %v1799_v41  ;;  %v5734_v41 = vld [vmem:[#allocation7 + $0x24] sm:$0xf0] }
 0x36c   : > { %1958 = vmatpush.bf16.msrb.mxu0 %v5388_v55  ;;  %v5380_v30 = vor.u32 %v5734_v41, %v5379_v20 }
 0x36d   : > { %v1814_v25 = vpack.c.b16 %v1811_v5, %v1810_v31 }
 0x36e   : > { %v5918_v3 = vpop.eup %5917 }
 0x36f   : > { %v1769_v38 = vpop.xlane.xlu1 %1768  ;;  %5373 = vmatmul.msk.bf16.vlgmr.msrb.gmra.mxu2 %vm1347_vm0, %v1814_v25  ;;  %v1792_v49 = vmul.f32 %v5918_v3, %v6846_v23  ;;  %v5392_v25 = vor.u32 %v5735_v37, %v5389_v47  ;;  %v5733_v3 = vld [vmem:[#allocation7 + $0x24] sm:$0xf] }
 0x370   : > { %5919 = vrcp.f32 %v1769_v38  ;;  %1780 = vadd.xlane.f32.xlu0 %v1779_v29  ;;  %1959 = vmatpush.bf16.msrb.mxu0 %v5380_v30 }
 0x371   : > { %v1800_v44 = vpack.c.bf16 %v1792_v49, %v1792_v49  ;;  %1987 = vmatpush.bf16.msrb.mxu1 %v5392_v25  ;;  %v5381_v49 = vld [vmem:[#allocation7 + $0x28] sm:$0xf0] }
 0x373   : > { %v1812_v59 = vunpack.c.l.b16 %v1800_v44 }
 0x376   : > { %v5920_v9 = vpop.eup %5919 }
 0x377   : > { %v1793_v22 = vmul.f32 %v5920_v9, %v6853_v7  ;;  %v5384_v9 = vor.u32 %v5733_v3, %v5381_v49 }
 0x379   : > { %v1801_v27 = vpack.c.bf16 %v1793_v22, %v1793_v22  ;;  %1988 = vmatpush.bf16.msrb.mxu1 %v5384_v9 }
 0x37a   : > { %v1860_v18 = vpop.permute.xlu0 %1859 }
 0x37b   : > { %1875 = vmatpush.bf16.msrb.mxu3 %v1860_v18  ;;  %v1813_v57 = vunpack.c.l.b16 %v1801_v27  ;;  %v1778_v18 = vpop.xlane.xlu1 %1777 }
 0x37d   : > { %v1815_v35 = vpack.c.b16 %v1813_v57, %v1812_v59 }
 0x37f   : > { %5374 = vmatmul.msk.bf16.gmra.mxu2 %vm1347_vm0, %v1815_v35 }
 0x382   : > { %v1563_v23 = vpop.f32.mrf.mxu2 }
 0x383   : > { %v1620_v7 = vpack.c.bf16 %v1563_v23, %v1563_v23 }
 0x384   : > { %2159 = vrot.lane.b32.xlu0 %v6658_v43, %s6325_s29 }
 0x385   : > { %v2018_v45 = vunpack.c.l.b16 %v1620_v7 }
 0x38a   : > { %v1565_v31 = vpop.f32.mrf.mxu2 }
 0x38b   : > { %v1621_v5 = vpack.c.bf16 %v1565_v31, %v1565_v31 }
 0x38d   : > { %v2019_v38 = vunpack.c.l.b16 %v1621_v5 }
 0x38f   : > { %v6915_v29 = vpack.c.b16 %v2019_v38, %v2018_v45  ;;  %v2125_v30 = vpop.permute.xlu1 %2124 }
 0x390   : > { %v2135_v47 = vsel %vm1347_vm0, %v2125_v30, 0 }
 0x391   : > { %5417 = vmatmul.msk.bf16.vlgmr.msra.gmra.mxu2 %vm1347_vm0, %v6915_v29 }
 0x392   : > { %v1568_v44 = vpop.f32.mrf.mxu2 }
 0x393   : > { %v1622_v27 = vpack.c.bf16 %v1568_v44, %v1568_v44 }
 0x395   : > { %v2020_v26 = vunpack.c.l.b16 %v1622_v27 }
 0x397   : > { %v6927_v38 = vpop.permute.xlu1 %2122 }
 0x398   : > { %v1772_v22 = vpop.xlane.xlu2 %1771 }
 0x39a   : > { %v1570_v59 = vpop.f32.mrf.mxu2 }
 0x39b   : > { %v1623_v57 = vpack.c.bf16 %v1570_v59, %v1570_v59 }
 0x39d   : > { %v2021_v46 = vunpack.c.l.b16 %v1623_v57 }
 0x39f   : > { %v6919_v55 = vpack.c.b16 %v2021_v46, %v2020_v26  ;;  %v1610_v35 = vpop.f32.mrf.mxu3 }
 0x3a0   : > { %v2127_v20 = vpop.permute.xlu2 %2126  ;;  %v1624_v37 = vpack.c.bf16 %v1610_v35, %v1610_v35  ;;  %v2164_v35 = vpop.permute.xlu1 %2163 }
 0x3a1   : > { %v2138_v41 = vsel %vm1347_vm0, %v2127_v20, 0  ;;  %5418 = vmatmul.msk.bf16.gmra.mxu2 %vm1347_vm0, %v6919_v55 }
 0x3a2   : > { %2146 = vmatpush.bf16.xpose.msra.mxu0 %v2138_v41  ;;  %v2022_v49 = vunpack.c.l.b16 %v1624_v37 }
 0x3a5   : > { %v1775_v23 = vpop.xlane.xlu0 %1774 }
 0x3a6   : > { %5921 = vrcp.f32 %v1775_v23 }
 0x3a7   : > { %5923 = vrcp.f32 %v1772_v22  ;;  %v1612_v7 = vpop.f32.mrf.mxu3 }
 0x3a8   : > { %v1625_v31 = vpack.c.bf16 %v1612_v7, %v1612_v7  ;;  %v6924_v5 = vpop.permute.xlu2 %2120  ;;  %5925 = vrcp.f32 %v1778_v18 }
 0x3aa   : > { %2147 = vmatpush.bf16.xpose.msra.mxu0 %v2135_v47  ;;  %v2023_v25 = vunpack.c.l.b16 %v1625_v31  ;;  %v2174_v31 = vsel %vm1347_vm0, %v2164_v35, 0 }
 0x3ac   : > { %v5922_v45 = vpop.eup %5921  ;;  %v6930_v44 = vpack.c.b16 %v2023_v25, %v2022_v49 }
 0x3ad   : > { %v5924_v3 = vpop.eup %5923  ;;  %v1795_v9 = vmul.f32 %v5922_v45, %v6888_v6  ;;  %v5731_v45 = vld [vmem:[#allocation7 + $0x14] sm:$0xf] }
 0x3ae   : > { %v1794_v22 = vmul.f32 %v5924_v3, %v6878_v52  ;;  %v5413_v3 = vld [vmem:[#allocation7 + $0x18] sm:$0xf0] }
 0x3af   : > { %v1615_v27 = vpop.f32.mrf.mxu3  ;;  %v1803_v26 = vpack.c.bf16 %v1795_v9, %v1795_v9  ;;  %v5416_v49 = vor.u32 %v5731_v45, %v5413_v3  ;;  %v5729_v9 = vld [vmem:[#allocation7 + $0x4] sm:$0xf] }
 0x3b0   : > { %v2166_v59 = vpop.permute.xlu2 %2165  ;;  %v1802_v46 = vpack.c.bf16 %v1794_v22, %v1794_v22  ;;  %v1626_v7 = vpack.c.bf16 %v1615_v27, %v1615_v27  ;;  %v5405_v22 = vld [vmem:[#allocation7 + $0x8] sm:$0xf0] }
 0x3b1   : > { %v2177_v57 = vsel %vm1347_vm0, %v2166_v59, 0  ;;  %5419 = vmatmul.msk.bf16.gmra.mxu2 %vm1347_vm0, %v6930_v44  ;;  %v1852_v20 = vunpack.c.l.b16 %v1803_v26  ;;  %v5408_v27 = vor.u32 %v5729_v9, %v5405_v22 }
 0x3b2   : > { %2185 = vmatpush.bf16.xpose.msra.mxu1 %v2177_v57  ;;  %v1851_v30 = vunpack.c.l.b16 %v1802_v46  ;;  %v2024_v47 = vunpack.c.l.b16 %v1626_v7  ;;  %v5926_v57 = vpop.eup %5925 }
 0x3b3   : > { %v1796_v26 = vmul.f32 %v5926_v57, %v6860_v16 }
 0x3b4   : > { %v1855_v52 = vpack.c.b16 %v1852_v20, %v1851_v30 }
 0x3b5   : > { %v1804_v35 = vpack.c.bf16 %v1796_v26, %v1796_v26 }
 0x3b7   : > { %v1617_v41 = vpop.f32.mrf.mxu3  ;;  %v1853_v30 = vunpack.c.l.b16 %v1804_v35 }
 0x3b8   : > { %v1627_v23 = vpack.c.bf16 %v1617_v41, %v1617_v41  ;;  %v1858_v6 = vpop.permute.xlu0 %1857 }
 0x3b9   : > { %1876 = vmatpush.bf16.msrb.mxu3 %v1858_v6 }
 0x3ba   : > { %2186 = vmatpush.bf16.xpose.msra.mxu1 %v2174_v31  ;;  %v2025_v37 = vunpack.c.l.b16 %v1627_v23 }
 0x3bc   : > { %5375 = vmatmul.msk.bf16.vlgmr.msrb.gmra.mxu3 %vm1347_vm0, %v1855_v52  ;;  %v2029_v25 = vpack.c.b16 %v2025_v37, %v2024_v47 }
 0x3bd   : > { %2097 = vmatpush.bf16.msra.mxu3 %v5416_v49 }
 0x3c1   : > { %5420 = vmatmul.msk.bf16.gmra.mxu2 %vm1347_vm0, %v2029_v25  ;;  %2098 = vmatpush.bf16.msra.mxu3 %v5408_v27 }
 0x3e3   : > { %v1781_v59 = vpop.xlane.xlu0 %1780 }
 0x3e4   : > { %5927 = vrcp.f32 %v1781_v59 }
 0x3ea   : > { %v5928_v46 = vpop.eup %5927 }
 0x3eb   : > { %v1797_v20 = vmul.f32 %v5928_v46, %v6905_v24 }
 0x3ed   : > { %v1805_v41 = vpack.c.bf16 %v1797_v20, %v1797_v20 }
 0x3ef   : > { %v1854_v23 = vunpack.c.l.b16 %v1805_v41 }
 0x3f1   : > { %v1856_v6 = vpack.c.b16 %v1854_v23, %v1853_v30 }
 0x3f2   : > { %v1837_v7 = vpop.f32.mrf.mxu2 }
 0x3f3   : > { %5376 = vmatmul.msk.bf16.gmra.mxu3 %vm1347_vm0, %v1856_v6  ;;  %v1888_v18 = vpack.c.bf16 %v1837_v7, %v1837_v7 }
 0x3f5   : > { %v1908_v37 = vunpack.c.l.b16 %v1888_v18 }
 0x3fa   : > { %v1839_v31 = vpop.f32.mrf.mxu2 }
 0x3fb   : > { %v1889_v52 = vpack.c.bf16 %v1839_v31, %v1839_v31 }
 0x3fd   : > { %v1909_v47 = vunpack.c.l.b16 %v1889_v52 }
 0x3ff   : > { %v1916_v45 = vpack.c.b16 %v1909_v47, %v1908_v37  ;;  %v2160_v47 = vpop.permute.xlu0 %2159 }
 0x401   : > { %5393 = vmatmul.msk.bf16.vlgmr.msrb.gmra.mxu0 %vm1347_vm0, %v1916_v45  ;;  %5397 = vmatmul.msk.bf16.vlgmr.msrb.gmra.mxu1 %vm1347_vm0, %v1916_v45 }
 0x402   : > { %v1842_v16 = vpop.f32.mrf.mxu2 }
 0x403   : > { %5421 = vmatmul.msk.bf16.vlgmr.msra.gmra.mxu3 %vm1347_vm0, %v6915_v29  ;;  %v1890_v24 = vpack.c.bf16 %v1842_v16, %v1842_v16 }
 0x405   : > { %v1910_v9 = vunpack.c.l.b16 %v1890_v24 }
 0x40a   : > { %v1844_v3 = vpop.f32.mrf.mxu2 }
 0x40b   : > { %v1891_v49 = vpack.c.bf16 %v1844_v3, %v1844_v3  ;;  %v2162_v3 = vpop.permute.xlu2 %2161 }
 0x40d   : > { %v1911_v22 = vunpack.c.l.b16 %v1891_v49 }
 0x40f   : > { %v1917_v27 = vpack.c.b16 %v1911_v22, %v1910_v9 }
 0x411   : > { %5394 = vmatmul.msk.bf16.gmra.mxu0 %vm1347_vm0, %v1917_v27  ;;  %5398 = vmatmul.msk.bf16.gmra.mxu1 %vm1347_vm0, %v1917_v27 }
 0x413   : > { %5422 = vmatmul.msk.bf16.gmra.mxu3 %vm1347_vm0, %v6919_v55 }
 0x423   : > { %5423 = vmatmul.msk.bf16.gmra.mxu3 %vm1347_vm0, %v6930_v44 }
 0x433   : > { %5424 = vmatmul.msk.bf16.gmra.mxu3 %vm1347_vm0, %v2029_v25 }
 0x43f   : > { %v1878_v59 = vpop.f32.mrf.mxu3 }
 0x440   : > { %v1892_v29 = vpack.c.bf16 %v1878_v59, %v1878_v59 }
 0x442   : > { %v1912_v46 = vunpack.c.l.b16 %v1892_v29 }
 0x447   : > { %v1880_v57 = vpop.f32.mrf.mxu3 }
 0x448   : > { %v1893_v26 = vpack.c.bf16 %v1880_v57, %v1880_v57 }
 0x44a   : > { %v1913_v35 = vunpack.c.l.b16 %v1893_v26 }
 0x44c   : > { %v1918_v20 = vpack.c.b16 %v1913_v35, %v1912_v46 }
 0x44e   : > { %5395 = vmatmul.msk.bf16.gmra.mxu0 %vm1347_vm0, %v1918_v20  ;;  %5399 = vmatmul.msk.bf16.gmra.mxu1 %vm1347_vm0, %v1918_v20 }
 0x476   : > { %v1883_v41 = vpop.f32.mrf.mxu3 }
 0x477   : > { %v1894_v30 = vpack.c.bf16 %v1883_v41, %v1883_v41 }
 0x479   : > { %v1914_v6 = vunpack.c.l.b16 %v1894_v30 }
 0x47e   : > { %v1885_v23 = vpop.f32.mrf.mxu3  ;;  %v1990_v44 = vpop.f32.mrf.mxu1 }
 0x47f   : > { %v1895_v55 = vpack.c.bf16 %v1885_v23, %v1885_v23  ;;  %v6975_v22 = vpop.f32.mrf.mxu0 }
 0x481   : > { %v1915_v7 = vunpack.c.l.b16 %v1895_v55  ;;  %v1303_v55 = vld [vmem:[#allocation8 + $0x40] sm:$0xff] }
 0x483   : > { %v1919_v18 = vpack.c.b16 %v1915_v7, %v1914_v6 }
 0x485   : > { %5396 = vmatmul.msk.bf16.gmra.mxu0 %vm1347_vm0, %v1919_v18  ;;  %5400 = vmatmul.msk.bf16.gmra.mxu1 %vm1347_vm0, %v1919_v18 }
 0x486   : > { %v2100_v25 = vpop.f32.mrf.mxu3  ;;  %v6959_v52 = vpop.f32.mrf.mxu1 }
 0x487   : > { %v6957_v31 = vadd.f32 %v2100_v25, %v1990_v44  ;;  %8108 = vst [vmem:[#allocation17_spill] sm:$0xff] %v6959_v52  ;;  %v6979_v29 = vpop.f32.mrf.mxu0 }
 0x488   : > { %8112 = vst [vmem:[#allocation21_spill] sm:$0xff] %v6979_v29 }
 0x48e   : > { %v6961_v37 = vpop.f32.mrf.mxu3  ;;  %v1995_v45 = vpop.f32.mrf.mxu1 }
 0x48f   : > { %8109 = vst [vmem:[#allocation18_spill] sm:$0xff] %v6961_v37  ;;  %v6981_v57 = vpop.f32.mrf.mxu0  ;;  %v1305_v37 = vld [vmem:[#allocation8 + $0x50] sm:$0xff] }
 0x495   : > { %5425 = vmatmul.msk.bf16.vlgmr.msra.gmra.mxu0 %vm1347_vm0, %v6924_v5  ;;  %5427 = vmatmul.msk.bf16.vlgmr.msra.gmra.mxu1 %vm1347_vm0, %v2160_v47 }
 0x496   : > { %v2105_v16 = vpop.f32.mrf.mxu3  ;;  %v6973_v9 = vpop.f32.mrf.mxu1 }
 0x497   : > { %v6966_v24 = vadd.f32 %v2105_v16, %v1995_v45  ;;  %8111 = vst [vmem:[#allocation20_spill] sm:$0xff] %v6973_v9  ;;  %v6983_v26 = vpop.f32.mrf.mxu0  ;;  %v1304_v45 = vld [vmem:[#allocation8 + $0x48] sm:$0xff] }
 0x49e   : > { %v6971_v49 = vpop.f32.mrf.mxu3 }
 0x49f   : > { %8110 = vst [vmem:[#allocation19_spill] sm:$0xff] %v6971_v49 }
 0x4a5   : > { %5426 = vmatmul.msk.bf16.gmra.mxu0 %vm1347_vm0, %v6927_v38  ;;  %5428 = vmatmul.msk.bf16.gmra.mxu1 %vm1347_vm0, %v2162_v3 }
 0x4a6   : > { %v2110_v27 = vpop.f32.mrf.mxu3 }
 0x4cb   : > { %v2000_v5 = vpop.f32.mrf.mxu1  ;;  %v6985_v46 = vpop.f32.mrf.mxu0 }
 0x4cc   : > { %v6977_v59 = vadd.f32 %v2110_v27, %v2000_v5 }
 0x4d3   : > { %v6987_v38 = vpop.f32.mrf.mxu0  ;;  %v6989_v35 = vpop.f32.mrf.mxu1 }
 0x4d4   : > { %8113 = vst [vmem:[#allocation22_spill] sm:$0xff] %v6987_v38 }
 0x4d5   : > { %8114 = vst [vmem:[#allocation23_spill] sm:$0xff] %v6989_v35 }
 0x502   : > { %v6991_v20 = vpop.f32.mrf.mxu0  ;;  %v6993_v41 = vpop.f32.mrf.mxu1 }
 0x50a   : > { %v6995_v30 = vpop.f32.mrf.mxu0  ;;  %v6997_v23 = vpop.f32.mrf.mxu1 }
 0x50b   : > { %8115 = vst [vmem:[#allocation24_spill] sm:$0xff] %v6995_v30 }
 0x50c   : > { %8116 = vst [vmem:[#allocation25_spill] sm:$0xff] %v6997_v23 }
 0x512   : > { %v2149_v6 = vpop.f32.mrf.mxu0  ;;  %v2188_v7 = vpop.f32.mrf.mxu1 }
 0x513   : > { %v2150_v44 = vadd.f32 %v2149_v6, %v1303_v55  ;;  %v2189_v18 = vadd.f32 %v2188_v7, %v1303_v55 }
 0x515   : > { %v2198_v25 = vsel %vm1347_vm0, %v2150_v44, -inf  ;;  %v2210_v47 = vsel %vm1347_vm0, %v2189_v18, -inf }
 0x516   : > { %2199 = vmax.xlane.f32.xlu1 %v2198_v25  ;;  %2211 = vmax.xlane.f32.xlu2 %v2210_v47 }
 0x51a   : > { %v2151_v16 = vpop.f32.mrf.mxu0  ;;  %v2190_v3 = vpop.f32.mrf.mxu1 }
 0x51b   : > { %v2152_v27 = vadd.f32 %v2151_v16, %v1304_v45  ;;  %v2191_v5 = vadd.f32 %v2190_v3, %v1304_v45  ;;  %v1306_v45 = vld [vmem:[#allocation8 + $0x58] sm:$0xff] }
 0x51d   : > { %v2213_v30 = vsel %vm1347_vm0, %v2191_v5, -inf  ;;  %v2201_v23 = vsel %vm1347_vm0, %v2152_v27, -inf }
 0x51e   : > { %2214 = vmax.xlane.f32.xlu1 %v2213_v30  ;;  %2202 = vmax.xlane.f32.xlu2 %v2201_v23 }
 0x522   : > { %v2154_v6 = vpop.f32.mrf.mxu0  ;;  %v2193_v55 = vpop.f32.mrf.mxu1 }
 0x523   : > { %v2155_v7 = vadd.f32 %v2154_v6, %v1305_v37  ;;  %v7003_v52 = vadd.f32 %v2193_v55, %v1305_v37 }
 0x525   : > { %v2204_v25 = vsel %vm1347_vm0, %v2155_v7, -inf  ;;  %v2216_v47 = vsel %vm1347_vm0, %v7003_v52, -inf }
 0x526   : > { %2205 = vmax.xlane.f32.xlu0 %v2204_v25  ;;  %2217 = vmax.xlane.f32.xlu2 %v2216_v47 }
 0x52a   : > { %v2156_v16 = vpop.f32.mrf.mxu0  ;;  %v2195_v3 = vpop.f32.mrf.mxu1 }
 0x52b   : > { %v2157_v29 = vadd.f32 %v2156_v16, %v1306_v45  ;;  %v7008_v35 = vadd.f32 %v2195_v3, %v1306_v45 }
 0x52d   : > { %v2207_v30 = vsel %vm1347_vm0, %v2157_v29, -inf  ;;  %v2219_v23 = vsel %vm1347_vm0, %v7008_v35, -inf }
 0x52e   : > { %2208 = vmax.xlane.f32.xlu1 %v2207_v30  ;;  %2220 = vmax.xlane.f32.xlu0 %v2219_v23 }
 0x542   : > { %2306 = vrot.lane.b32.xlu0 %v6704_v58, %s6325_s29 }
 0x547   : > { %2304 = vrot.lane.b32.xlu1 %v6709_v8, %s6325_s29 }
 0x54f   : > { %2520 = vrot.lane.b32.xlu1 %v6636_v21, %s6326_s16 }
 0x589   : > { %v2200_v37 = vpop.xlane.xlu1 %2199  ;;  %v2212_v6 = vpop.xlane.xlu2 %2211 }
 0x58a   : > { %v2222_v55 = vsub.f32 %v2150_v44, %v2200_v37  ;;  %v2226_v25 = vsub.f32 %v2189_v18, %v2212_v6 }
 0x58c   : > { %v2230_v47 = vmul.f32 1.442695, %v2222_v55  ;;  %v2238_v45 = vmul.f32 1.442695, %v2226_v25 }
 0x58e   : > { %5929 = vpow2.f32 %v2230_v47 }
 0x58f   : > { %5931 = vpow2.f32 %v2238_v45 }
 0x591   : > { %v2203_v16 = vpop.xlane.xlu2 %2202  ;;  %v2215_v3 = vpop.xlane.xlu1 %2214 }
 0x592   : > { %v2223_v30 = vsub.f32 %v2152_v27, %v2203_v16  ;;  %v2227_v9 = vsub.f32 %v2191_v5, %v2215_v3 }
 0x594   : > { %v7019_v23 = vpop.eup %5929  ;;  %v2232_v38 = vmul.f32 1.442695, %v2223_v30  ;;  %v2240_v18 = vmul.f32 1.442695, %v2227_v9 }
 0x595   : > { %v7021_v49 = vpop.eup %5931  ;;  %v2246_v21 = vsel %vm1347_vm0, %v7019_v23, 0.0 }
 0x596   : > { %2247 = vadd.xlane.f32.xlu1 %v2246_v21  ;;  %v2258_v44 = vsel %vm1347_vm0, %v7021_v49, 0.0  ;;  %5933 = vpow2.f32 %v2232_v38 }
 0x597   : > { %2259 = vadd.xlane.f32.xlu0 %v2258_v44  ;;  %5935 = vpow2.f32 %v2240_v18 }
 0x599   : > { %v2206_v37 = vpop.xlane.xlu0 %2205 }
 0x59a   : > { %v2224_v27 = vsub.f32 %v2155_v7, %v2206_v37 }
 0x59c   : > { %v5934_v6 = vpop.eup %5933  ;;  %v2234_v25 = vmul.f32 1.442695, %v2224_v27 }
 0x59d   : > { %v2249_v55 = vsel %vm1347_vm0, %v5934_v6, 0.0  ;;  %v7028_v5 = vpop.eup %5935 }
 0x59e   : > { %2250 = vadd.xlane.f32.xlu2 %v2249_v55  ;;  %5937 = vpow2.f32 %v2234_v25  ;;  %v2261_v16 = vsel %vm1347_vm0, %v7028_v5, 0.0 }
 0x5a1   : > { %v2209_v47 = vpop.xlane.xlu1 %2208  ;;  %v2221_v9 = vpop.xlane.xlu0 %2220 }
 0x5a2   : > { %v2225_v45 = vsub.f32 %v2157_v29, %v2209_v47  ;;  %v2229_v25 = vsub.f32 %v7008_v35, %v2221_v9 }
 0x5a4   : > { %v2236_v38 = vmul.f32 1.442695, %v2225_v45  ;;  %v7032_v3 = vpop.eup %5937  ;;  %v2244_v47 = vmul.f32 1.442695, %v2229_v25 }
 0x5a5   : > { %v2252_v7 = vsel %vm1347_vm0, %v7032_v3, 0.0 }
 0x5a6   : > { %2262 = vadd.xlane.f32.xlu2 %v2261_v16  ;;  %5939 = vpow2.f32 %v2236_v38 }
 0x5ab   : > { %2514 = vrot.lane.b32.xlu0 %v6576_v61, %s6326_s16 }
 0x5ac   : > { %v7040_v29 = vpop.eup %5939 }
 0x5ad   : > { %v2255_v21 = vsel %vm1347_vm0, %v7040_v29, 0.0 }
 0x5ae   : > { %2253 = vadd.xlane.f32.xlu2 %v2252_v7 }
 0x5af   : > { %2347 = vrot.lane.b32.xlu1 %v6728_v13, %s6325_s29 }
 0x5b3   : > { %2516 = vrot.lane.b32.xlu0 %v6587_v4, %s6326_s16  ;;  %v2218_v4 = vpop.xlane.xlu2 %2217 }
 0x5b4   : > { %v2307_v30 = vpop.permute.xlu0 %2306  ;;  %v2228_v37 = vsub.f32 %v7003_v52, %v2218_v4 }
 0x5b5   : > { %2322 = vmatpush.bf16.msrb.mxu2 %v2307_v30 }
 0x5b6   : > { %2256 = vadd.xlane.f32.xlu2 %v2255_v21  ;;  %v2242_v27 = vmul.f32 1.442695, %v2228_v37 }
 0x5b7   : > { %2345 = vrot.lane.b32.xlu1 %v6733_v34, %s6325_s29 }
 0x5b8   : > { %5941 = vpow2.f32 %v2242_v27 }
 0x5b9   : > { %v2305_v61 = vpop.permute.xlu1 %2304  ;;  %5943 = vpow2.f32 %v2244_v47 }
 0x5ba   : > { %2323 = vmatpush.bf16.msrb.mxu2 %v2305_v61 }
 0x5bb   : > { %2559 = vrot.lane.b32.xlu0 %v6674_v2, %s6326_s16 }
 0x5be   : > { %v7056_v55 = vpop.eup %5941 }
 0x5bf   : > { %v2264_v2 = vsel %vm1347_vm0, %v7056_v55, 0.0 }
 0x5c1   : > { %v2521_v44 = vpop.permute.xlu1 %2520 }
 0x5c2   : > { %v2532_v18 = vsel %vm1347_vm0, %v2521_v44, 0 }
 0x5c3   : > { %2555 = vrot.lane.b32.xlu0 %v6615_v56, %s6326_s16  ;;  %2540 = vmatpush.bf16.xpose.msra.mxu2 %v2532_v18  ;;  %v7061_v56 = vpop.eup %5943 }
 0x5c4   : > { %v2267_v52 = vsel %vm1347_vm0, %v7061_v56, 0.0 }
 0x5ce   : > { %2518 = vrot.lane.b32.xlu2 %v6648_v32, %s6326_s16 }
 0x5e1   : > { %2265 = vadd.xlane.f32.xlu1 %v2264_v2 }
 0x5f7   : > { %2268 = vadd.xlane.f32.xlu2 %v2267_v52 }
 0x5fa   : > { %2557 = vrot.lane.b32.xlu1 %v6684_v12, %s6326_s16 }
 0x609   : > { %v2248_v32 = vpop.xlane.xlu1 %2247 }
 0x60a   : > { %5945 = vrcp.f32 %v2248_v32  ;;  %v2260_v35 = vpop.xlane.xlu0 %2259 }
 0x60f   : > { %2553 = vrot.lane.b32.xlu2 %v6658_v43, %s6326_s16 }
 0x610   : > { %v5946_v16 = vpop.eup %5945 }
 0x611   : > { %v2251_v45 = vpop.xlane.xlu2 %2250  ;;  %v2278_v38 = vmul.f32 %v5946_v16, %v7019_v23 }
 0x612   : > { %5947 = vrcp.f32 %v2251_v45 }
 0x613   : > { %5949 = vrcp.f32 %v2260_v35  ;;  %v2286_v7 = vpack.c.bf16 %v2278_v38, %v2278_v38 }
 0x615   : > { %v2298_v18 = vunpack.c.l.b16 %v2286_v7 }
 0x618   : > { %v5948_v9 = vpop.eup %5947 }
 0x619   : > { %v2279_v30 = vmul.f32 %v5948_v9, %v5934_v6  ;;  %v2263_v21 = vpop.xlane.xlu2 %2262  ;;  %v5950_v12 = vpop.eup %5949 }
 0x61a   : > { %5951 = vrcp.f32 %v2263_v21  ;;  %v2282_v43 = vmul.f32 %v5950_v12, %v7021_v49 }
 0x61b   : > { %v2287_v61 = vpack.c.bf16 %v2279_v30, %v2279_v30 }
 0x61c   : > { %v2290_v6 = vpack.c.bf16 %v2282_v43, %v2282_v43 }
 0x61d   : > { %v2515_v44 = vpop.permute.xlu0 %2514  ;;  %v2299_v4 = vunpack.c.l.b16 %v2287_v61 }
 0x61e   : > { %v2339_v45 = vunpack.c.l.b16 %v2290_v6 }
 0x61f   : > { %v2302_v37 = vpack.c.b16 %v2299_v4, %v2298_v18 }
 0x620   : > { %v5952_v27 = vpop.eup %5951 }
 0x621   : > { %v2348_v2 = vpop.permute.xlu1 %2347  ;;  %v2283_v25 = vmul.f32 %v5952_v27, %v7028_v5  ;;  %5429 = vmatmul.msk.bf16.vlgmr.msrb.gmra.mxu2 %vm1347_vm0, %v2302_v37  ;;  %v2254_v23 = vpop.xlane.xlu2 %2253 }
 0x622   : > { %2363 = vmatpush.bf16.msrb.mxu3 %v2348_v2  ;;  %5953 = vrcp.f32 %v2254_v23 }
 0x623   : > { %v2291_v47 = vpack.c.bf16 %v2283_v25, %v2283_v25 }
 0x625   : > { %v2517_v52 = vpop.permute.xlu0 %2516  ;;  %v2340_v32 = vunpack.c.l.b16 %v2291_v47 }
 0x627   : > { %v2343_v9 = vpack.c.b16 %v2340_v32, %v2339_v45 }
 0x628   : > { %v5954_v38 = vpop.eup %5953 }
 0x629   : > { %v2346_v16 = vpop.permute.xlu1 %2345  ;;  %v2257_v35 = vpop.xlane.xlu2 %2256  ;;  %v2280_v5 = vmul.f32 %v5954_v38, %v7032_v3 }
 0x62a   : > { %2364 = vmatpush.bf16.msrb.mxu3 %v2346_v16  ;;  %5955 = vrcp.f32 %v2257_v35  ;;  %v7080_v3 = vpop.f32.mrf.mxu2 }
 0x62b   : > { %v2288_v21 = vpack.c.bf16 %v2280_v5, %v2280_v5 }
 0x62d   : > { %v2560_v49 = vpop.permute.xlu0 %2559  ;;  %5431 = vmatmul.msk.bf16.vlgmr.msrb.gmra.mxu3 %vm1347_vm0, %v2343_v9  ;;  %v2300_v37 = vunpack.c.l.b16 %v2288_v21 }
 0x62e   : > { %v2571_v7 = vsel %vm1347_vm0, %v2560_v49, 0 }
 0x62f   : > { %2579 = vmatpush.bf16.xpose.msra.mxu3 %v2571_v7 }
 0x630   : > { %v5956_v30 = vpop.eup %5955 }
 0x631   : > { %v2281_v61 = vmul.f32 %v5956_v30, %v7040_v29  ;;  %v2519_v12 = vpop.permute.xlu2 %2518 }
 0x632   : > { %v2529_v18 = vsel %vm1347_vm0, %v2519_v12, 0  ;;  %v7083_v2 = vpop.f32.mrf.mxu2  ;;  %v5740_v12 = vld [vmem:[#allocation7 + $0x54] sm:$0xf0] }
 0x633   : > { %v2289_v4 = vpack.c.bf16 %v2281_v61, %v2281_v61  ;;  %2541 = vmatpush.bf16.xpose.msra.mxu2 %v2529_v18  ;;  %8117 = vst [vmem:[#allocation26_spill] sm:$0xff] %v7083_v2  ;;  %v5443_v61 = vld [vmem:[#allocation7 + $0x50] sm:$0xf] }
 0x634   : > { %v5444_v18 = vor.u32 %v5740_v12, %v5443_v61 }
 0x635   : > { %v2301_v27 = vunpack.c.l.b16 %v2289_v4 }
 0x636   : > { %2446 = vmatpush.bf16.msrb.mxu0 %v5444_v18 }
 0x637   : > { %v2303_v43 = vpack.c.b16 %v2301_v27, %v2300_v37  ;;  %v5435_v37 = vld [vmem:[#allocation7 + $0x40] sm:$0xf]  ;;  %v5738_v27 = vld [vmem:[#allocation7 + $0x44] sm:$0xf0] }
 0x639   : > { %5430 = vmatmul.msk.bf16.gmra.mxu2 %vm1347_vm0, %v2303_v43  ;;  %v5737_v43 = vld [vmem:[#allocation7 + $0x44] sm:$0xf] }
 0x63a   : > { %v7085_v29 = vpop.f32.mrf.mxu2 }
 0x649   : > { %5457 = vmatmul.msk.bf16.vlgmr.msra.gmra.mxu2 %vm1347_vm0, %v2515_v44 }
 0x654   : > { %v2266_v25 = vpop.xlane.xlu1 %2265 }
 0x655   : > { %5957 = vrcp.f32 %v2266_v25  ;;  %v5436_v25 = vor.u32 %v5738_v27, %v5435_v37 }
 0x657   : > { %2447 = vmatpush.bf16.msrb.mxu0 %v5436_v25 }
 0x659   : > { %5458 = vmatmul.msk.bf16.gmra.mxu2 %vm1347_vm0, %v2517_v52  ;;  %v7090_v52 = vpop.f32.mrf.mxu2 }
 0x65a   : > { %8118 = vst [vmem:[#allocation27_spill] sm:$0xff] %v7090_v52 }
 0x65b   : > { %v5958_v47 = vpop.eup %5957 }
 0x65c   : > { %v2284_v45 = vmul.f32 %v5958_v47, %v7056_v55  ;;  %v5739_v55 = vld [vmem:[#allocation7 + $0x54] sm:$0xf] }
 0x65e   : > { %v2292_v16 = vpack.c.bf16 %v2284_v45, %v2284_v45 }
 0x660   : > { %v2341_v9 = vunpack.c.l.b16 %v2292_v16  ;;  %v7103_v16 = vpop.f32.mrf.mxu3 }
 0x661   : > { %v7093_v7 = vpop.f32.mrf.mxu2  ;;  %8121 = vst [vmem:[#allocation30_spill] sm:$0xff] %v7103_v16 }
 0x668   : > { %v7105_v61 = vpop.f32.mrf.mxu3 }
 0x669   : > { %v7095_v30 = vpop.f32.mrf.mxu2 }
 0x66a   : > { %v2269_v23 = vpop.xlane.xlu2 %2268  ;;  %8119 = vst [vmem:[#allocation28_spill] sm:$0xff] %v7095_v30 }
 0x66b   : > { %5959 = vrcp.f32 %v2269_v23  ;;  %v5437_v23 = vld [vmem:[#allocation7 + $0x48] sm:$0xf0] }
 0x66c   : > { %v2558_v6 = vpop.permute.xlu1 %2557  ;;  %v5440_v47 = vor.u32 %v5737_v43, %v5437_v23  ;;  %v1307_v23 = vld [vmem:[#allocation8 + $0x60] sm:$0xff] }
 0x66d   : > { %v2568_v32 = vsel %vm1347_vm0, %v2558_v6, 0 }
 0x66e   : > { %2580 = vmatpush.bf16.xpose.msra.mxu3 %v2568_v32  ;;  %v2556_v32 = vpop.permute.xlu0 %2555 }
 0x670   : > { %v7109_v12 = vpop.f32.mrf.mxu3 }
 0x671   : > { %v5960_v44 = vpop.eup %5959  ;;  %v7098_v6 = vpop.f32.mrf.mxu2  ;;  %8122 = vst [vmem:[#allocation31_spill] sm:$0xff] %v7109_v12 }
 0x672   : > { %v2285_v35 = vmul.f32 %v5960_v44, %v7061_v56  ;;  %v2554_v21 = vpop.permute.xlu2 %2553  ;;  %v5445_v56 = vld [vmem:[#allocation7 + $0x58] sm:$0xf0] }
 0x673   : > { %v5448_v4 = vor.u32 %v5739_v55, %v5445_v56 }
 0x674   : > { %v2293_v38 = vpack.c.bf16 %v2285_v35, %v2285_v35 }
 0x675   : > { %2475 = vmatpush.bf16.msrb.mxu1 %v5448_v4 }
 0x676   : > { %v2342_v49 = vunpack.c.l.b16 %v2293_v38 }
 0x678   : > { %v2344_v5 = vpack.c.b16 %v2342_v49, %v2341_v9 }
 0x679   : > { %2476 = vmatpush.bf16.msrb.mxu1 %v5440_v47  ;;  %v7101_v45 = vpop.f32.mrf.mxu2 }
 0x67a   : > { %5432 = vmatmul.msk.bf16.gmra.mxu3 %vm1347_vm0, %v2344_v5  ;;  %8120 = vst [vmem:[#allocation29_spill] sm:$0xff] %v7101_v45 }
 0x68a   : > { %5459 = vmatmul.msk.bf16.vlgmr.msra.gmra.mxu3 %vm1347_vm0, %v2554_v21 }
 0x69a   : > { %5460 = vmatmul.msk.bf16.gmra.mxu3 %vm1347_vm0, %v2556_v32 }
 0x6a4   : > { %v2325_v44 = vpop.f32.mrf.mxu2 }
 0x6a5   : > { %v2376_v35 = vpack.c.bf16 %v2325_v44, %v2325_v44 }
 0x6a7   : > { %v2396_v49 = vunpack.c.l.b16 %v2376_v35 }
 0x6ac   : > { %v2327_v38 = vpop.f32.mrf.mxu2 }
 0x6ad   : > { %v2377_v9 = vpack.c.bf16 %v2327_v38, %v2327_v38 }
 0x6af   : > { %v2397_v5 = vunpack.c.l.b16 %v2377_v9  ;;  %v1308_v9 = vld [vmem:[#allocation8 + $0x68] sm:$0xff] }
 0x6b0   : > { %v2366_v56 = vpop.f32.mrf.mxu3 }
 0x6b1   : > { %v2404_v21 = vpack.c.b16 %v2397_v5, %v2396_v49  ;;  %v2380_v49 = vpack.c.bf16 %v2366_v56, %v2366_v56 }
 0x6b3   : > { %5449 = vmatmul.msk.bf16.vlgmr.msrb.gmra.mxu0 %vm1347_vm0, %v2404_v21  ;;  %5453 = vmatmul.msk.bf16.vlgmr.msrb.gmra.mxu1 %vm1347_vm0, %v2404_v21 }
 0x6b8   : > { %v2368_v44 = vpop.f32.mrf.mxu3 }
 0x6b9   : > { %v2381_v38 = vpack.c.bf16 %v2368_v44, %v2368_v44 }
 0x6bb   : > { %v2401_v21 = vunpack.c.l.b16 %v2381_v38 }
 0x6bc   : > { %v2330_v55 = vpop.f32.mrf.mxu2 }
 0x6bd   : > { %v2378_v18 = vpack.c.bf16 %v2330_v55, %v2330_v55 }
 0x6bf   : > { %v2398_v27 = vunpack.c.l.b16 %v2378_v18  ;;  %v2400_v18 = vunpack.c.l.b16 %v2380_v49 }
 0x6c4   : > { %v2332_v4 = vpop.f32.mrf.mxu2 }
 0x6c5   : > { %v2379_v37 = vpack.c.bf16 %v2332_v4, %v2332_v4 }
 0x6c7   : > { %v2399_v43 = vunpack.c.l.b16 %v2379_v37  ;;  %v2406_v37 = vpack.c.b16 %v2401_v21, %v2400_v18  ;;  %v1310_v21 = vld [vmem:[#allocation8 + $0x78] sm:$0xff] }
 0x6c9   : > { %v2405_v25 = vpack.c.b16 %v2399_v43, %v2398_v27 }
 0x6cb   : > { %5450 = vmatmul.msk.bf16.gmra.mxu0 %vm1347_vm0, %v2405_v25  ;;  %5454 = vmatmul.msk.bf16.gmra.mxu1 %vm1347_vm0, %v2405_v25 }
 0x6cc   : > { %v2543_v47 = vpop.f32.mrf.mxu2 }
 0x6cd   : > { %v7113_v32 = vadd.f32 %v2543_v47, %v1307_v23 }
 0x6cf   : > { %v2592_v35 = vsel %vm1347_vm0, %v7113_v32, -inf }
 0x6d0   : > { %2593 = vmax.xlane.f32.xlu0 %v2592_v35 }
 0x6d4   : > { %v2545_v5 = vpop.f32.mrf.mxu2 }
 0x6d5   : > { %v2546_v55 = vadd.f32 %v2545_v5, %v1308_v9 }
 0x6d7   : > { %v2595_v4 = vsel %vm1347_vm0, %v2546_v55, -inf }
 0x6d8   : > { %2596 = vmax.xlane.f32.xlu1 %v2595_v4 }
 0x6db   : > { %5451 = vmatmul.msk.bf16.gmra.mxu0 %vm1347_vm0, %v2406_v37  ;;  %5455 = vmatmul.msk.bf16.gmra.mxu1 %vm1347_vm0, %v2406_v37 }
 0x6dc   : > { %v2548_v35 = vpop.f32.mrf.mxu2 }
 0x6e4   : > { %v2550_v18 = vpop.f32.mrf.mxu2 }
 0x6e5   : > { %v7126_v4 = vadd.f32 %v2550_v18, %v1310_v21 }
 0x6fd   : > { %v2371_v27 = vpop.f32.mrf.mxu3 }
 0x6fe   : > { %v2382_v43 = vpack.c.bf16 %v2371_v27, %v2371_v27 }
 0x700   : > { %v2402_v44 = vunpack.c.l.b16 %v2382_v43  ;;  %v2601_v43 = vsel %vm1347_vm0, %v7126_v4, -inf }
 0x705   : > { %v2373_v25 = vpop.f32.mrf.mxu3 }
 0x706   : > { %v2383_v47 = vpack.c.bf16 %v2373_v25, %v2373_v25  ;;  %v1309_v25 = vld [vmem:[#allocation8 + $0x70] sm:$0xff] }
 0x708   : > { %v2403_v12 = vunpack.c.l.b16 %v2383_v47 }
 0x70a   : > { %v2407_v56 = vpack.c.b16 %v2403_v12, %v2402_v44 }
 0x70c   : > { %5452 = vmatmul.msk.bf16.gmra.mxu0 %vm1347_vm0, %v2407_v56  ;;  %5456 = vmatmul.msk.bf16.gmra.mxu1 %vm1347_vm0, %v2407_v56 }
 0x70d   : > { %v2582_v38 = vpop.f32.mrf.mxu3 }
 0x70e   : > { %v7122_v49 = vadd.f32 %v2582_v38, %v1307_v23  ;;  %v7134_v23 = vadd.f32 %v2548_v35, %v1309_v25  ;;  %v2072_v35 = vadd.f32 %v7080_v3, %v6975_v22  ;;  %v2077_v22 = vadd.f32 %v7085_v29, %v6981_v57 }
 0x70f   : > { %v2082_v29 = vadd.f32 %v7093_v7, %v6985_v46 }
 0x710   : > { %v2604_v5 = vsel %vm1347_vm0, %v7122_v49, -inf }
 0x711   : > { %2605 = vmax.xlane.f32.xlu0 %v2604_v5 }
 0x715   : > { %v2584_v37 = vpop.f32.mrf.mxu3 }
 0x716   : > { %v7128_v27 = vadd.f32 %v2584_v37, %v1308_v9  ;;  %v2598_v9 = vsel %vm1347_vm0, %v7134_v23, -inf }
 0x718   : > { %v2607_v12 = vsel %vm1347_vm0, %v7128_v27, -inf }
 0x719   : > { %2608 = vmax.xlane.f32.xlu2 %v2607_v12  ;;  %2602 = vmax.xlane.f32.xlu0 %v2601_v43 }
 0x71d   : > { %v2587_v47 = vpop.f32.mrf.mxu3 }
 0x71e   : > { %v7136_v44 = vadd.f32 %v2587_v47, %v1309_v25 }
 0x720   : > { %v2610_v56 = vsel %vm1347_vm0, %v7136_v44, -inf }
 0x721   : > { %2611 = vmax.xlane.f32.xlu1 %v2610_v56  ;;  %2599 = vmax.xlane.f32.xlu2 %v2598_v9 }
 0x725   : > { %v2589_v38 = vpop.f32.mrf.mxu3 }
 0x726   : > { %v7142_v5 = vadd.f32 %v2589_v38, %v1310_v21 }
 0x728   : > { %v2613_v18 = vsel %vm1347_vm0, %v7142_v5, -inf }
 0x729   : > { %2614 = vmax.xlane.f32.xlu0 %v2613_v18 }
 0x730   : > { %v2449_v37 = vpop.f32.mrf.mxu0  ;;  %v2478_v12 = vpop.f32.mrf.mxu1 }
 0x731   : > { %v7148_v43 = vadd.f32 %v2449_v37, %v2072_v35  ;;  %v7151_v25 = vadd.f32 %v2478_v12, %v6957_v31 }
 0x738   : > { %v7157_v21 = vpop.f32.mrf.mxu0  ;;  %v7159_v47 = vpop.f32.mrf.mxu1 }
 0x739   : > { %2698 = vrot.lane.b32.xlu2 %v6709_v8, %s6326_s16  ;;  %8123 = vst [vmem:[#allocation32_spill] sm:$0xff] %v7157_v21 }
 0x73a   : > { %8124 = vst [vmem:[#allocation33_spill] sm:$0xff] %v7159_v47 }
 0x73d   : > { %2700 = vrot.lane.b32.xlu0 %v6704_v58, %s6326_s16 }
 0x743   : > { %v2594_v8 = vpop.xlane.xlu0 %2593 }
 0x744   : > { %v2616_v58 = vsub.f32 %v7113_v32, %v2594_v8 }
 0x746   : > { %v2624_v45 = vmul.f32 1.442695, %v2616_v58 }
 0x748   : > { %v2454_v3 = vpop.f32.mrf.mxu0  ;;  %v2483_v56 = vpop.f32.mrf.mxu1 }
 0x749   : > { %v7163_v9 = vadd.f32 %v2454_v3, %v2077_v22  ;;  %v7166_v31 = vadd.f32 %v2483_v56, %v6966_v24 }
 0x74b   : > { %v2597_v38 = vpop.xlane.xlu1 %2596 }
 0x74c   : > { %v2617_v18 = vsub.f32 %v2546_v55, %v2597_v38 }
 0x74e   : > { %v2626_v35 = vmul.f32 1.442695, %v2617_v18 }
 0x750   : > { %5961 = vpow2.f32 %v2626_v35  ;;  %v7169_v37 = vpop.f32.mrf.mxu0  ;;  %v7171_v12 = vpop.f32.mrf.mxu1  ;;  %v2116_v35 = vadd.f32 %v7105_v61, %v6993_v41 }
 0x751   : > { %8125 = vst [vmem:[#allocation34_spill] sm:$0xff] %v7169_v37  ;;  %5963 = vpow2.f32 %v2624_v45 }
 0x752   : > { %8126 = vst [vmem:[#allocation35_spill] sm:$0xff] %v7171_v12 }
 0x756   : > { %v7173_v57 = vpop.eup %5961 }
 0x757   : > { %v2643_v24 = vsel %vm1347_vm0, %v7173_v57, 0.0  ;;  %v7184_v56 = vpop.eup %5963 }
 0x758   : > { %v2459_v55 = vpop.f32.mrf.mxu0  ;;  %v2488_v22 = vpop.f32.mrf.mxu1  ;;  %2644 = vadd.xlane.f32.xlu1 %v2643_v24  ;;  %v2640_v38 = vsel %vm1347_vm0, %v7184_v56, 0.0 }
 0x759   : > { %v7179_v3 = vadd.f32 %v2459_v55, %v2082_v29  ;;  %v7182_v32 = vadd.f32 %v2488_v22, %v6977_v59  ;;  %v2087_v59 = vadd.f32 %v7098_v6, %v6991_v20 }
 0x760   : > { %v7190_v46 = vpop.f32.mrf.mxu0  ;;  %v7192_v7 = vpop.f32.mrf.mxu1 }
 0x761   : > { %8127 = vst [vmem:[#allocation36_spill] sm:$0xff] %v7190_v46 }
 0x762   : > { %2641 = vadd.xlane.f32.xlu2 %v2640_v38  ;;  %8128 = vst [vmem:[#allocation37_spill] sm:$0xff] %v7192_v7 }
 0x77a   : > { %2741 = vrot.lane.b32.xlu2 %v6728_v13, %s6326_s16 }
 0x784   : > { %v2606_v45 = vpop.xlane.xlu0 %2605 }
 0x785   : > { %v2620_v18 = vsub.f32 %v7122_v49, %v2606_v45 }
 0x787   : > { %v2632_v8 = vmul.f32 1.442695, %v2620_v18 }
 0x789   : > { %5965 = vpow2.f32 %v2632_v8  ;;  %v2464_v58 = vpop.f32.mrf.mxu0  ;;  %v2493_v29 = vpop.f32.mrf.mxu1 }
 0x78a   : > { %v7199_v24 = vadd.f32 %v2464_v58, %v2087_v59  ;;  %v7201_v13 = vadd.f32 %v2493_v29, %v2116_v35 }
 0x78c   : > { %v2609_v55 = vpop.xlane.xlu2 %2608  ;;  %v2603_v6 = vpop.xlane.xlu0 %2602 }
 0x78d   : > { %v2621_v22 = vsub.f32 %v7128_v27, %v2609_v55  ;;  %v2619_v27 = vsub.f32 %v7126_v4, %v2603_v6 }
 0x78f   : > { %v7204_v38 = vpop.eup %5965  ;;  %v2634_v49 = vmul.f32 1.442695, %v2621_v22  ;;  %v2630_v29 = vmul.f32 1.442695, %v2619_v27  ;;  %v2912_v27 = vrot.slane %v6634_v19, 4 }
 0x790   : > { %v2652_v45 = vsel %vm1347_vm0, %v7204_v38, 0.0 }
 0x791   : > { %5967 = vpow2.f32 %v2634_v49  ;;  %2653 = vadd.xlane.f32.xlu0 %v2652_v45  ;;  %v2915_v45 = vrot.slane %v6627_v14, 4 }
 0x793   : > { %v2925_v6 = vunpack.c.l.b16 %v2915_v45 }
 0x794   : > { %v2612_v20 = vpop.xlane.xlu1 %2611  ;;  %v2600_v41 = vpop.xlane.xlu2 %2599 }
 0x795   : > { %v2622_v61 = vsub.f32 %v7136_v44, %v2612_v20  ;;  %v2618_v18 = vsub.f32 %v7134_v23, %v2600_v41  ;;  %v2914_v41 = vrot.slane %v6623_v10, 4 }
 0x797   : > { %v7210_v8 = vpop.eup %5967  ;;  %v2636_v59 = vmul.f32 1.442695, %v2622_v61  ;;  %v2628_v35 = vmul.f32 1.442695, %v2618_v18  ;;  %v2924_v61 = vunpack.c.l.b16 %v2914_v41 }
 0x798   : > { %v2655_v58 = vsel %vm1347_vm0, %v7210_v8, 0.0 }
 0x799   : > { %5969 = vpow2.f32 %v2636_v59  ;;  %2656 = vadd.xlane.f32.xlu1 %v2655_v58  ;;  %v2927_v59 = vpack.c.b16 %v2925_v6, %v2924_v61 }
 0x79a   : > { %5971 = vpow2.f32 %v2628_v35  ;;  %v2913_v35 = vrot.slane %v6629_v15, 4 }
 0x79b   : > { %5973 = vpow2.f32 %v2630_v29  ;;  %v2938_v29 = vsel %vm1347_vm0, %v2927_v59, 0 }
 0x79c   : > { %v2615_v49 = vpop.xlane.xlu0 %2614  ;;  %v2699_v58 = vpop.permute.xlu2 %2698 }
 0x79d   : > { %v2623_v59 = vsub.f32 %v7142_v5, %v2615_v49 }
 0x79f   : > { %v7215_v55 = vpop.eup %5969 }
 0x7a0   : > { %v7217_v22 = vpop.eup %5971  ;;  %v2658_v44 = vsel %vm1347_vm0, %v7215_v55, 0.0 }
 0x7a1   : > { %v2646_v23 = vsel %vm1347_vm0, %v7217_v22, 0.0  ;;  %v7225_v4 = vpop.eup %5973 }
 0x7a2   : > { %2647 = vadd.xlane.f32.xlu1 %v2646_v23  ;;  %v2649_v20 = vsel %vm1347_vm0, %v7225_v4, 0.0  ;;  %v2923_v23 = vunpack.c.l.b16 %v2913_v35 }
 0x7a3   : > { %2659 = vadd.xlane.f32.xlu2 %v2658_v44  ;;  %v2922_v44 = vunpack.c.l.b16 %v2912_v27  ;;  %v3108_v27 = vrot.slane %v6694_v42, 4 }
 0x7a5   : > { %3356 = vrot.lane.b32.xlu0 %v6627_v14, %s6324_s24 }
 0x7aa   : > { %2650 = vadd.xlane.f32.xlu1 %v2649_v20  ;;  %v2926_v20 = vpack.c.b16 %v2923_v23, %v2922_v44 }
 0x7ac   : > { %v2935_v45 = vsel %vm1347_vm0, %v2926_v20, 0 }
 0x7ad   : > { %3352 = vrot.lane.b32.xlu0 %v6629_v15, %s6324_s24 }
 0x7af   : > { %v2701_v18 = vpop.permute.xlu0 %2700 }
 0x7b0   : > { %2716 = vmatpush.bf16.msrb.mxu2 %v2701_v18 }
 0x7b4   : > { %2717 = vmatpush.bf16.msrb.mxu2 %v2699_v58  ;;  %v3109_v58 = vrot.slane %v6696_v53, 4 }
 0x7b8   : > { %2946 = vmatpush.bf16.xpose.msra.mxu2 %v2938_v29 }
 0x7bb   : > { %3354 = vrot.lane.b32.xlu2 %v6623_v10, %s6324_s24 }
 0x7c0   : > { %2947 = vmatpush.bf16.xpose.msra.mxu2 %v2935_v45  ;;  %v3122_v45 = vunpack.c.l.b16 %v3108_v27 }
 0x7c3   : > { %2739 = vrot.lane.b32.xlu1 %v6733_v34, %s6326_s16  ;;  %v2638_v34 = vmul.f32 1.442695, %v2623_v59 }
 0x7cb   : > { %v2645_v41 = vpop.xlane.xlu1 %2644 }
 0x7cc   : > { %5975 = vrcp.f32 %v2645_v41  ;;  %v3123_v41 = vunpack.c.l.b16 %v3109_v58 }
 0x7ce   : > { %v3125_v47 = vpack.c.b16 %v3123_v41, %v3122_v45 }
 0x7d2   : > { %v5976_v61 = vpop.eup %5975 }
 0x7d3   : > { %v2673_v18 = vmul.f32 %v5976_v61, %v7173_v57  ;;  %v3107_v57 = vrot.slane %v6700_v39, 4 }
 0x7d5   : > { %v2642_v6 = vpop.xlane.xlu2 %2641  ;;  %v2681_v29 = vpack.c.bf16 %v2673_v18, %v2673_v18  ;;  %v3121_v2 = vunpack.c.l.b16 %v3107_v57 }
 0x7d6   : > { %5977 = vrcp.f32 %v2642_v6  ;;  %v3106_v6 = vrot.slane %v6698_v50, 4 }
 0x7d7   : > { %v2693_v61 = vunpack.c.l.b16 %v2681_v29  ;;  %5979 = vpow2.f32 %v2638_v34 }
 0x7d8   : > { %v3120_v21 = vunpack.c.l.b16 %v3106_v6 }
 0x7dc   : > { %v5978_v35 = vpop.eup %5977 }
 0x7dd   : > { %v2672_v23 = vmul.f32 %v5978_v35, %v7184_v56  ;;  %v2742_v44 = vpop.permute.xlu2 %2741  ;;  %v3124_v56 = vpack.c.b16 %v3121_v2, %v3120_v21  ;;  %v7249_v18 = vpop.eup %5979 }
 0x7de   : > { %2757 = vmatpush.bf16.msrb.mxu3 %v2742_v44  ;;  %v2661_v59 = vsel %vm1347_vm0, %v7249_v18, 0.0 }
 0x7df   : > { %v2680_v20 = vpack.c.bf16 %v2672_v23, %v2672_v23 }
 0x7e1   : > { %v2692_v5 = vunpack.c.l.b16 %v2680_v20 }
 0x7e3   : > { %v2696_v49 = vpack.c.b16 %v2693_v61, %v2692_v5  ;;  %v2965_v61 = vrot.slane %v6664_v54, 4  ;;  %v2966_v5 = vrot.slane %v6670_v0, 4 }
 0x7e5   : > { %5461 = vmatmul.msk.bf16.vlgmr.msrb.gmra.mxu2 %vm1347_vm0, %v2696_v49 }
 0x7e6   : > { %3140 = vmatpush.bf16.msrb.mxu2 %v3125_v47 }
 0x7ea   : > { %3141 = vmatpush.bf16.msrb.mxu2 %v3124_v56 }
 0x7ed   : > { %2662 = vadd.xlane.f32.xlu1 %v2661_v59 }
 0x804   : > { %v2654_v23 = vpop.xlane.xlu0 %2653 }
 0x806   : > { %3350 = vrot.lane.b32.xlu1 %v6634_v19, %s6324_s24 }
 0x80c   : > { %v2657_v35 = vpop.xlane.xlu1 %2656 }
 0x815   : > { %v2648_v27 = vpop.xlane.xlu1 %2647 }
 0x816   : > { %5981 = vrcp.f32 %v2648_v27  ;;  %v7256_v21 = vpop.xlane.xlu2 %2659  ;;  %v2976_v27 = vunpack.c.l.b16 %v2966_v5 }
 0x81c   : > { %v5982_v29 = vpop.eup %5981 }
 0x81d   : > { %v2651_v58 = vpop.xlane.xlu1 %2650  ;;  %v2674_v47 = vmul.f32 %v5982_v29, %v7217_v22 }
 0x81e   : > { %5983 = vrcp.f32 %v2651_v58  ;;  %v3355_v59 = vpop.permute.xlu2 %3354  ;;  %v3357_v58 = vpop.permute.xlu0 %3356 }
 0x81f   : > { %5985 = vrcp.f32 %v2657_v35  ;;  %v2682_v44 = vpack.c.bf16 %v2674_v47, %v2674_v47  ;;  %v2975_v35 = vunpack.c.l.b16 %v2965_v61  ;;  %v2963_v47 = vrot.slane %v6666_v60, 4 }
 0x820   : > { %5987 = vrcp.f32 %v2654_v23  ;;  %v3360_v23 = vrot.slane %v3355_v59, 4 }
 0x821   : > { %v2694_v41 = vunpack.c.l.b16 %v2682_v44  ;;  %v2978_v44 = vpack.c.b16 %v2976_v27, %v2975_v35  ;;  %5989 = vrcp.f32 %v7256_v21 }
 0x823   : > { %v2989_v5 = vsel %vm1347_vm0, %v2978_v44, 0 }
 0x824   : > { %v5984_v2 = vpop.eup %5983 }
 0x825   : > { %v2675_v34 = vmul.f32 %v5984_v2, %v7225_v4  ;;  %v5986_v45 = vpop.eup %5985  ;;  %v2964_v2 = vrot.slane %v6668_v63, 4 }
 0x826   : > { %v5988_v57 = vpop.eup %5987  ;;  %v2677_v49 = vmul.f32 %v5986_v45, %v7210_v8 }
 0x827   : > { %v2683_v20 = vpack.c.bf16 %v2675_v34, %v2675_v34  ;;  %v2676_v56 = vmul.f32 %v5988_v57, %v7204_v38  ;;  %v2909_v34 = vrot.slane %v6572_v36, 4  ;;  %v2908_v38 = vrot.slane %v6570_v28, 4 }
 0x828   : > { %v2685_v4 = vpack.c.bf16 %v2677_v49, %v2677_v49  ;;  %v2973_v57 = vunpack.c.l.b16 %v2963_v47  ;;  %v2974_v61 = vunpack.c.l.b16 %v2964_v2  ;;  %v3155_v49 = vrot.slane %v6717_v11, 4 }
 0x829   : > { %v2695_v6 = vunpack.c.l.b16 %v2683_v20  ;;  %v2684_v29 = vpack.c.bf16 %v2676_v56, %v2676_v56  ;;  %v3361_v20 = vrot.slane %v3357_v58, 4  ;;  %v2917_v56 = vunpack.c.l.b16 %v2909_v34 }
 0x82a   : > { %v2734_v8 = vunpack.c.l.b16 %v2685_v4  ;;  %v2916_v27 = vunpack.c.l.b16 %v2908_v38  ;;  %v2977_v58 = vpack.c.b16 %v2974_v61, %v2973_v57  ;;  %v3153_v47 = vrot.slane %v6719_v62, 4 }
 0x82b   : > { %v2697_v22 = vpack.c.b16 %v2695_v6, %v2694_v41  ;;  %v2733_v45 = vunpack.c.l.b16 %v2684_v29  ;;  %v3370_v41 = vunpack.c.l.b16 %v3360_v23  ;;  %v3371_v35 = vunpack.c.l.b16 %v3361_v20 }
 0x82c   : > { %v3169_v29 = vunpack.c.l.b16 %v3155_v49  ;;  %v3154_v2 = vrot.slane %v6721_v1, 4  ;;  %v2920_v44 = vpack.c.b16 %v2917_v56, %v2916_v27  ;;  %v2986_v34 = vsel %vm1347_vm0, %v2977_v58, 0  ;;  %v5744_v56 = vld [vmem:[#allocation7 + $0x74] sm:$0xf0]  ;;  %v5477_v27 = vld [vmem:[#allocation7 + $0x78] sm:$0xf0] }
 0x82d   : > { %5462 = vmatmul.msk.bf16.gmra.mxu2 %vm1347_vm0, %v2697_v22  ;;  %v3156_v22 = vrot.slane %v6723_v51, 4  ;;  %v2737_v59 = vpack.c.b16 %v2734_v8, %v2733_v45  ;;  %v3373_v4 = vpack.c.b16 %v3371_v35, %v3370_v41  ;;  %v3167_v20 = vunpack.c.l.b16 %v3153_v47  ;;  %v5467_v58 = vld [vmem:[#allocation7 + $0x60] sm:$0xf] }
 0x82e   : > { %v3168_v38 = vunpack.c.l.b16 %v3154_v2  ;;  %v2911_v41 = vrot.slane %v6583_v48, 4  ;;  %v2910_v57 = vrot.slane %v6581_v40, 4  ;;  %v5469_v2 = vld [vmem:[#allocation7 + $0x68] sm:$0xf0] }
 0x82f   : > { %v3170_v23 = vunpack.c.l.b16 %v3156_v22  ;;  %v5475_v22 = vld [vmem:[#allocation7 + $0x70] sm:$0xf] }
 0x830   : > { %v3171_v45 = vpack.c.b16 %v3168_v38, %v3167_v20  ;;  %v2919_v61 = vunpack.c.l.b16 %v2911_v41  ;;  %v5476_v35 = vor.u32 %v5744_v56, %v5475_v22 }
 0x831   : > { %v3172_v8 = vpack.c.b16 %v3170_v23, %v3169_v29  ;;  %v5742_v29 = vld [vmem:[#allocation7 + $0x64] sm:$0xf0]  ;;  %v5741_v23 = vld [vmem:[#allocation7 + $0x64] sm:$0xf] }
 0x832   : > { %2840 = vmatpush.bf16.msra.mxu0 %v5476_v35  ;;  %v5468_v47 = vor.u32 %v5742_v29, %v5467_v58 }
 0x835   : > { %v2740_v6 = vpop.permute.xlu1 %2739 }
 0x836   : > { %2758 = vmatpush.bf16.msrb.mxu3 %v2740_v6  ;;  %v3384_v6 = vsel %vm1347_vm0, %v3373_v4, 0  ;;  %2841 = vmatpush.bf16.msra.mxu0 %v5468_v47 }
 0x839   : > { %5463 = vmatmul.msk.bf16.vlgmr.msrb.gmra.mxu3 %vm1347_vm0, %v2737_v59  ;;  %v5743_v59 = vld [vmem:[#allocation7 + $0x74] sm:$0xf] }
 0x83a   : > { %2997 = vmatpush.bf16.xpose.msra.mxu3 %v2989_v5  ;;  %v2918_v5 = vunpack.c.l.b16 %v2910_v57  ;;  %v5480_v4 = vor.u32 %v5743_v59, %v5477_v27  ;;  %v3353_v27 = vpop.permute.xlu0 %3352 }
 0x83b   : > { %v3359_v58 = vrot.slane %v3353_v27, 4 }
 0x83c   : > { %v2921_v49 = vpack.c.b16 %v2919_v61, %v2918_v5  ;;  %2869 = vmatpush.bf16.msra.mxu1 %v5480_v4 }
 0x83d   : > { %5489 = vmatmul.msk.bf16.vlgmr.msra.gmra.mxu2 %vm1347_vm0, %v2920_v44  ;;  %v5472_v44 = vor.u32 %v5741_v23, %v5469_v2  ;;  %v3369_v2 = vunpack.c.l.b16 %v3359_v58  ;;  %v1311_v58 = vld [vmem:[#allocation8 + $0x80] sm:$0xff] }
 0x83e   : > { %3392 = vmatpush.bf16.xpose.msra.mxu2 %v3384_v6 }
 0x840   : > { %2870 = vmatpush.bf16.msra.mxu1 %v5472_v44 }
 0x842   : > { %2998 = vmatpush.bf16.xpose.msra.mxu3 %v2986_v34  ;;  %v5990_v34 = vpop.eup %5989 }
 0x84a   : > { %3187 = vmatpush.bf16.msrb.mxu3 %v3172_v8  ;;  %v2678_v8 = vmul.f32 %v5990_v34, %v7215_v55  ;;  %v2960_v55 = vrot.slane %v6650_v33, 4 }
 0x84c   : > { %v2686_v38 = vpack.c.bf16 %v2678_v8, %v2678_v8  ;;  %v2968_v47 = vunpack.c.l.b16 %v2960_v55 }
 0x84d   : > { %5490 = vmatmul.msk.bf16.gmra.mxu2 %vm1347_vm0, %v2921_v49 }
 0x84e   : > { %3188 = vmatpush.bf16.msrb.mxu3 %v3171_v45  ;;  %v2735_v61 = vunpack.c.l.b16 %v2686_v38  ;;  %v8129_v38 = vld [vmem:[#allocation16_spill] sm:$0xff] }
 0x860   : > { %v2663_v6 = vpop.xlane.xlu1 %2662 }
 0x861   : > { %5991 = vrcp.f32 %v2663_v6 }
 0x867   : > { %v5992_v20 = vpop.eup %5991 }
 0x868   : > { %v2679_v45 = vmul.f32 %v5992_v20, %v7249_v18  ;;  %v2719_v41 = vpop.f32.mrf.mxu2  ;;  %v2959_v18 = vrot.slane %v6593_v17, 4 }
 0x869   : > { %v2770_v22 = vpack.c.bf16 %v2719_v41, %v2719_v41  ;;  %v8130_v41 = vld [vmem:[#allocation15_spill] sm:$0xff] }
 0x86a   : > { %v2687_v57 = vpack.c.bf16 %v2679_v45, %v2679_v45  ;;  %v2967_v6 = vunpack.c.l.b16 %v2959_v18  ;;  %v2962_v45 = vrot.slane %v8129_v38, 4 }
 0x86b   : > { %v2790_v21 = vunpack.c.l.b16 %v2770_v22 }
 0x86c   : > { %v2736_v5 = vunpack.c.l.b16 %v2687_v57  ;;  %v2971_v8 = vpack.c.b16 %v2968_v47, %v2967_v6  ;;  %v2961_v57 = vrot.slane %v8130_v41, 4 }
 0x86e   : > { %v2738_v49 = vpack.c.b16 %v2736_v5, %v2735_v61  ;;  %v2970_v61 = vunpack.c.l.b16 %v2962_v45  ;;  %v2969_v5 = vunpack.c.l.b16 %v2961_v57 }
 0x870   : > { %5464 = vmatmul.msk.bf16.gmra.mxu3 %vm1347_vm0, %v2738_v49  ;;  %v2721_v56 = vpop.f32.mrf.mxu2  ;;  %v2972_v49 = vpack.c.b16 %v2970_v61, %v2969_v5  ;;  %v7299_v5 = vpop.f32.mrf.mxu0 }
 0x871   : > { %v2771_v59 = vpack.c.bf16 %v2721_v56, %v2721_v56  ;;  %8131 = vst [vmem:[#allocation16_spill] sm:$0xff] %v7299_v5 }
 0x873   : > { %v2791_v35 = vunpack.c.l.b16 %v2771_v59 }
 0x875   : > { %v2798_v4 = vpack.c.b16 %v2791_v35, %v2790_v21 }
 0x877   : > { %5481 = vmatmul.msk.bf16.vlgmr.msra.gmra.mxu0 %vm1347_vm0, %v2798_v4  ;;  %5485 = vmatmul.msk.bf16.vlgmr.msra.gmra.mxu1 %vm1347_vm0, %v2798_v4 }
 0x878   : > { %v3351_v29 = vpop.permute.xlu1 %3350 }
 0x879   : > { %v3358_v23 = vrot.slane %v3351_v29, 4 }
 0x87b   : > { %v3368_v44 = vunpack.c.l.b16 %v3358_v23 }
 0x87d   : > { %v3372_v34 = vpack.c.b16 %v3369_v2, %v3368_v44  ;;  %v1312_v44 = vld [vmem:[#allocation8 + $0x88] sm:$0xff] }
 0x87f   : > { %v3381_v20 = vsel %vm1347_vm0, %v3372_v34, 0 }
 0x880   : > { %5491 = vmatmul.msk.bf16.vlgmr.msra.gmra.mxu3 %vm1347_vm0, %v2971_v8  ;;  %3393 = vmatpush.bf16.xpose.msra.mxu2 %v3381_v20 }
 0x890   : > { %5492 = vmatmul.msk.bf16.gmra.mxu3 %vm1347_vm0, %v2972_v49  ;;  %v7301_v49 = vpop.f32.mrf.mxu1 }
 0x891   : > { %8132 = vst [vmem:[#allocation15_spill] sm:$0xff] %v7301_v49 }
 0x8b0   : > { %v2724_v22 = vpop.f32.mrf.mxu2 }
 0x8b1   : > { %v2772_v56 = vpack.c.bf16 %v2724_v22, %v2724_v22 }
 0x8b3   : > { %v2792_v35 = vunpack.c.l.b16 %v2772_v56 }
 0x8b8   : > { %v2726_v59 = vpop.f32.mrf.mxu2 }
 0x8b9   : > { %v2773_v21 = vpack.c.bf16 %v2726_v59, %v2726_v59 }
 0x8bb   : > { %v2793_v27 = vunpack.c.l.b16 %v2773_v21 }
 0x8bc   : > { %v2760_v4 = vpop.f32.mrf.mxu3 }
 0x8bd   : > { %v2799_v55 = vpack.c.b16 %v2793_v27, %v2792_v35  ;;  %v2774_v6 = vpack.c.bf16 %v2760_v4, %v2760_v4 }
 0x8bf   : > { %5482 = vmatmul.msk.bf16.gmra.mxu0 %vm1347_vm0, %v2799_v55  ;;  %5486 = vmatmul.msk.bf16.gmra.mxu1 %vm1347_vm0, %v2799_v55  ;;  %v2794_v45 = vunpack.c.l.b16 %v2774_v6 }
 0x8c0   : > { %v2949_v18 = vpop.f32.mrf.mxu2 }
 0x8c1   : > { %v2950_v29 = vadd.f32 %v2949_v18, %v1311_v58 }
 0x8c3   : > { %v3010_v23 = vsel %vm1347_vm0, %v2950_v29, -inf }
 0x8c4   : > { %3011 = vmax.xlane.f32.xlu0 %v3010_v23  ;;  %v2762_v47 = vpop.f32.mrf.mxu3 }
 0x8c5   : > { %v2775_v2 = vpack.c.bf16 %v2762_v47, %v2762_v47 }
 0x8c7   : > { %v2795_v8 = vunpack.c.l.b16 %v2775_v2 }
 0x8c8   : > { %v2951_v34 = vpop.f32.mrf.mxu2 }
 0x8c9   : > { %v2952_v20 = vadd.f32 %v2951_v34, %v1312_v44  ;;  %v2800_v61 = vpack.c.b16 %v2795_v8, %v2794_v45 }
 0x8cb   : > { %v3013_v57 = vsel %vm1347_vm0, %v2952_v20, -inf }
 0x8cc   : > { %3014 = vmax.xlane.f32.xlu0 %v3013_v57 }
 0x8cf   : > { %5483 = vmatmul.msk.bf16.gmra.mxu0 %vm1347_vm0, %v2800_v61  ;;  %5487 = vmatmul.msk.bf16.gmra.mxu1 %vm1347_vm0, %v2800_v61 }
 0x8d0   : > { %v2954_v34 = vpop.f32.mrf.mxu2 }
 0x8f3   : > { %v2765_v22 = vpop.f32.mrf.mxu3 }
 0x8f4   : > { %v2843_v56 = vpop.f32.mrf.mxu0  ;;  %v2872_v59 = vpop.f32.mrf.mxu1  ;;  %v2776_v27 = vpack.c.bf16 %v2765_v22, %v2765_v22 }
 0x8f5   : > { %v7304_v21 = vadd.f32 %v2843_v56, %v7148_v43  ;;  %v7307_v35 = vadd.f32 %v2872_v59, %v7151_v25  ;;  %v1313_v43 = vld [vmem:[#allocation8 + $0x90] sm:$0xff]  ;;  %v1314_v56 = vld [vmem:[#allocation8 + $0x98] sm:$0xff]  ;;  %v2956_v59 = vpop.f32.mrf.mxu2 }
 0x8f6   : > { %v2796_v18 = vunpack.c.l.b16 %v2776_v27  ;;  %v2955_v45 = vadd.f32 %v2954_v34, %v1313_v43  ;;  %v7317_v27 = vadd.f32 %v2956_v59, %v1314_v56 }
 0x8f8   : > { %v3016_v22 = vsel %vm1347_vm0, %v2955_v45, -inf }
 0x8fb   : > { %v2767_v4 = vpop.f32.mrf.mxu3 }
 0x8fc   : > { %v2777_v55 = vpack.c.bf16 %v2767_v4, %v2767_v4  ;;  %v7330_v34 = vpop.f32.mrf.mxu1 }
 0x8fd   : > { %8134 = vst [vmem:[#allocation39_spill] sm:$0xff] %v7330_v34 }
 0x8fe   : > { %v2797_v23 = vunpack.c.l.b16 %v2777_v55  ;;  %v3019_v55 = vsel %vm1347_vm0, %v7317_v27, -inf }
 0x900   : > { %v2801_v47 = vpack.c.b16 %v2797_v23, %v2796_v18 }
 0x902   : > { %5484 = vmatmul.msk.bf16.gmra.mxu0 %vm1347_vm0, %v2801_v47  ;;  %5488 = vmatmul.msk.bf16.gmra.mxu1 %vm1347_vm0, %v2801_v47 }
 0x903   : > { %v3000_v2 = vpop.f32.mrf.mxu3 }
 0x904   : > { %v3001_v6 = vadd.f32 %v3000_v2, %v1311_v58  ;;  %v7328_v2 = vpop.f32.mrf.mxu0 }
 0x905   : > { %8133 = vst [vmem:[#allocation38_spill] sm:$0xff] %v7328_v2 }
 0x906   : > { %v3022_v8 = vsel %vm1347_vm0, %v3001_v6, -inf }
 0x907   : > { %3023 = vmax.xlane.f32.xlu2 %v3022_v8 }
 0x90b   : > { %v3002_v25 = vpop.f32.mrf.mxu3 }
 0x90c   : > { %v7312_v57 = vadd.f32 %v3002_v25, %v1312_v44 }
 0x90e   : > { %v3025_v61 = vsel %vm1347_vm0, %v7312_v57, -inf }
 0x90f   : > { %3026 = vmax.xlane.f32.xlu0 %v3025_v61  ;;  %3017 = vmax.xlane.f32.xlu2 %v3016_v22 }
 0x913   : > { %v3005_v58 = vpop.f32.mrf.mxu3 }
 0x914   : > { %v3006_v4 = vadd.f32 %v3005_v58, %v1313_v43 }
 0x916   : > { %v3028_v18 = vsel %vm1347_vm0, %v3006_v4, -inf }
 0x917   : > { %3020 = vmax.xlane.f32.xlu0 %v3019_v55  ;;  %3029 = vmax.xlane.f32.xlu2 %v3028_v18 }
 0x91b   : > { %v3007_v44 = vpop.f32.mrf.mxu3 }
 0x91c   : > { %v7322_v23 = vadd.f32 %v3007_v44, %v1314_v56 }
 0x91e   : > { %v3031_v47 = vsel %vm1347_vm0, %v7322_v23, -inf }
 0x91f   : > { %3032 = vmax.xlane.f32.xlu0 %v3031_v47 }
 0x933   : > { %3340 = vrot.lane.b32.xlu0 %v6572_v36, %s6324_s24 }
 0x937   : > { %v3012_v8 = vpop.xlane.xlu0 %3011 }
 0x938   : > { %v3034_v43 = vsub.f32 %v2950_v29, %v3012_v8 }
 0x93a   : > { %v3042_v25 = vmul.f32 1.442695, %v3034_v43 }
 0x93c   : > { %5993 = vpow2.f32 %v3042_v25  ;;  %v2848_v61 = vpop.f32.mrf.mxu0  ;;  %v2877_v22 = vpop.f32.mrf.mxu1 }
 0x93d   : > { %v7333_v56 = vadd.f32 %v2848_v61, %v7163_v9  ;;  %v7336_v59 = vadd.f32 %v2877_v22, %v7166_v31 }
 0x93f   : > { %v3015_v58 = vpop.xlane.xlu0 %3014 }
 0x940   : > { %v3035_v55 = vsub.f32 %v2952_v20, %v3015_v58 }
 0x942   : > { %v5994_v18 = vpop.eup %5993  ;;  %v3044_v44 = vmul.f32 1.442695, %v3035_v55 }
 0x943   : > { %v3058_v47 = vsel %vm1347_vm0, %v5994_v18, 0.0 }
 0x944   : > { %5995 = vpow2.f32 %v3044_v44  ;;  %v7339_v49 = vpop.f32.mrf.mxu0  ;;  %v7341_v29 = vpop.f32.mrf.mxu1  ;;  %3059 = vadd.xlane.f32.xlu1 %v3058_v47 }
 0x945   : > { %8135 = vst [vmem:[#allocation40_spill] sm:$0xff] %v7339_v49 }
 0x946   : > { %8136 = vst [vmem:[#allocation41_spill] sm:$0xff] %v7341_v29 }
 0x94a   : > { %v5996_v8 = vpop.eup %5995 }
 0x94b   : > { %v3061_v43 = vsel %vm1347_vm0, %v5996_v8, 0.0 }
 0x94c   : > { %v2853_v9 = vpop.f32.mrf.mxu0  ;;  %v2882_v25 = vpop.f32.mrf.mxu1  ;;  %3062 = vadd.xlane.f32.xlu2 %v3061_v43 }
 0x94d   : > { %v7345_v31 = vadd.f32 %v2853_v9, %v7179_v3  ;;  %v7348_v20 = vadd.f32 %v2882_v25, %v7182_v32 }
 0x954   : > { %v7352_v61 = vpop.f32.mrf.mxu0  ;;  %v7354_v22 = vpop.f32.mrf.mxu1 }
 0x955   : > { %8137 = vst [vmem:[#allocation42_spill] sm:$0xff] %v7352_v61 }
 0x956   : > { %8138 = vst [vmem:[#allocation43_spill] sm:$0xff] %v7354_v22 }
 0x964   : > { %3338 = vrot.lane.b32.xlu2 %v6570_v28, %s6324_s24 }
 0x97a   : > { %v3024_v58 = vpop.xlane.xlu2 %3023 }
 0x97b   : > { %v3038_v55 = vsub.f32 %v3001_v6, %v3024_v58 }
 0x97d   : > { %v3050_v44 = vmul.f32 1.442695, %v3038_v55 }
 0x97f   : > { %5997 = vpow2.f32 %v3050_v44  ;;  %v2858_v47 = vpop.f32.mrf.mxu0  ;;  %v2887_v5 = vpop.f32.mrf.mxu1 }
 0x980   : > { %v7357_v43 = vadd.f32 %v2858_v47, %v7199_v24  ;;  %v7360_v3 = vadd.f32 %v2887_v5, %v7201_v13 }
 0x982   : > { %v3018_v32 = vpop.xlane.xlu2 %3017 }
 0x983   : > { %v3036_v9 = vsub.f32 %v2955_v45, %v3018_v32  ;;  %v3027_v45 = vpop.xlane.xlu0 %3026 }
 0x984   : > { %v3039_v22 = vsub.f32 %v7312_v57, %v3027_v45 }
 0x985   : > { %v7362_v25 = vpop.eup %5997  ;;  %v3046_v34 = vmul.f32 1.442695, %v3036_v9 }
 0x986   : > { %v3070_v2 = vsel %vm1347_vm0, %v7362_v25, 0.0  ;;  %v3052_v61 = vmul.f32 1.442695, %v3039_v22 }
 0x987   : > { %5999 = vpow2.f32 %v3046_v34  ;;  %3071 = vadd.xlane.f32.xlu1 %v3070_v2 }
 0x98a   : > { %v3030_v6 = vpop.xlane.xlu2 %3029 }
 0x98b   : > { %v3040_v58 = vsub.f32 %v3006_v4, %v3030_v6  ;;  %v3021_v4 = vpop.xlane.xlu0 %3020 }
 0x98d   : > { %v7366_v55 = vpop.eup %5999  ;;  %v3054_v44 = vmul.f32 1.442695, %v3040_v58 }
 0x98e   : > { %v3064_v24 = vsel %vm1347_vm0, %v7366_v55, 0.0 }
 0x98f   : > { %6001 = vpow2.f32 %v3054_v44  ;;  %3065 = vadd.xlane.f32.xlu0 %v3064_v24 }
 0x993   : > { %v3033_v34 = vpop.xlane.xlu0 %3032 }
 0x994   : > { %v3041_v47 = vsub.f32 %v7322_v23, %v3033_v34 }
 0x995   : > { %v7370_v13 = vpop.eup %6001 }
 0x996   : > { %v3076_v5 = vsel %vm1347_vm0, %v7370_v13, 0.0  ;;  %v3056_v32 = vmul.f32 1.442695, %v3041_v47 }
 0x997   : > { %3077 = vadd.xlane.f32.xlu2 %v3076_v5 }
 0x9a0   : > { %3342 = vrot.lane.b32.xlu1 %v6581_v40, %s6324_s24 }
 0x9a3   : > { %3405 = vrot.lane.b32.xlu0 %v6593_v17, %s6324_s24 }
 0x9a8   : > { %3344 = vrot.lane.b32.xlu1 %v6583_v48, %s6324_s24 }
 0x9af   : > { %3417 = vrot.lane.b32.xlu2 %v6666_v60, %s6324_s24 }
 0x9b0   : > { %3421 = vrot.lane.b32.xlu1 %v6664_v54, %s6324_s24 }
 0x9b7   : > { %v3060_v2 = vpop.xlane.xlu1 %3059  ;;  %3411 = vrot.lane.b32.xlu2 %v8129_v38, %s6324_s24 }
 0x9b8   : > { %6003 = vrcp.f32 %v3060_v2 }
 0x9be   : > { %v6004_v6 = vpop.eup %6003 }
 0x9bf   : > { %3574 = vrot.lane.b32.xlu2 %v6696_v53, %s6324_s24  ;;  %v3063_v9 = vpop.xlane.xlu2 %3062  ;;  %v3090_v58 = vmul.f32 %v6004_v6, %v5994_v18  ;;  %v3037_v18 = vsub.f32 %v7317_v27, %v3021_v4 }
 0x9c0   : > { %6005 = vrcp.f32 %v3063_v9 }
 0x9c1   : > { %6007 = vpow2.f32 %v3056_v32  ;;  %v3098_v24 = vpack.c.bf16 %v3090_v58, %v3090_v58 }
 0x9c2   : > { %6009 = vpow2.f32 %v3052_v61 }
 0x9c3   : > { %v3114_v34 = vunpack.c.l.b16 %v3098_v24 }
 0x9c6   : > { %v6006_v44 = vpop.eup %6005 }
 0x9c7   : > { %v3091_v5 = vmul.f32 %v6006_v44, %v5996_v8  ;;  %3830 = vrot.lane.b32.xlu2 %v6629_v15, %s6325_s29  ;;  %v7392_v2 = vpop.eup %6007  ;;  %v3048_v8 = vmul.f32 1.442695, %v3037_v18  ;;  %v7425_v18 = vpop.permute.xlu0 %3340 }
 0x9c8   : > { %v3079_v7 = vsel %vm1347_vm0, %v7392_v2, 0.0  ;;  %v6010_v32 = vpop.eup %6009 }
 0x9c9   : > { %v3099_v23 = vpack.c.bf16 %v3091_v5, %v3091_v5  ;;  %6011 = vpow2.f32 %v3048_v8  ;;  %v3073_v57 = vsel %vm1347_vm0, %v6010_v32, 0.0  ;;  %v5507_v5 = vld [vmem:[#allocation7 + $0x90] sm:$0xf] }
 0x9cb   : > { %v3115_v47 = vunpack.c.l.b16 %v3099_v23  ;;  %v5748_v23 = vld [vmem:[#allocation7 + $0x94] sm:$0xf0] }
 0x9cd   : > { %v3118_v9 = vpack.c.b16 %v3115_v47, %v3114_v34  ;;  %3080 = vadd.xlane.f32.xlu0 %v3079_v7  ;;  %v5747_v34 = vld [vmem:[#allocation7 + $0x94] sm:$0xf]  ;;  %v5508_v47 = vor.u32 %v5748_v23, %v5507_v5  ;;  %v3339_v5 = vpop.permute.xlu2 %3338 }
 0x9cf   : > { %5493 = vmatmul.msk.bf16.vlgmr.msrb.gmra.mxu2 %vm1347_vm0, %v3118_v9  ;;  %v7399_v45 = vpop.eup %6011  ;;  %v5509_v9 = vld [vmem:[#allocation7 + $0x98] sm:$0xf0]  ;;  %3270 = vmatpush.bf16.msrb.mxu0 %v5508_v47 }
 0x9d0   : > { %v3067_v22 = vsel %vm1347_vm0, %v7399_v45, 0.0  ;;  %v5512_v8 = vor.u32 %v5747_v34, %v5509_v9 }
 0x9d2   : > { %3299 = vmatpush.bf16.msrb.mxu1 %v5512_v8 }
 0x9da   : > { %3074 = vadd.xlane.f32.xlu1 %v3073_v57  ;;  %v5499_v57 = vld [vmem:[#allocation7 + $0x80] sm:$0xf] }
 0x9e1   : > { %3568 = vrot.lane.b32.xlu0 %v6698_v50, %s6324_s24 }
 0x9e2   : > { %3068 = vadd.xlane.f32.xlu1 %v3067_v22  ;;  %v5746_v22 = vld [vmem:[#allocation7 + $0x84] sm:$0xf0] }
 0x9fa   : > { %v3072_v7 = vpop.xlane.xlu1 %3071 }
 0x9fb   : > { %3423 = vrot.lane.b32.xlu1 %v6670_v0, %s6324_s24  ;;  %6013 = vrcp.f32 %v3072_v7 }
 0xa01   : > { %v6014_v30 = vpop.eup %6013 }
 0xa02   : > { %v3066_v24 = vpop.xlane.xlu0 %3065  ;;  %v3094_v34 = vmul.f32 %v6014_v30, %v7362_v25 }
 0xa03   : > { %3419 = vrot.lane.b32.xlu1 %v6668_v63, %s6324_s24 }
 0xa0b   : > { %3407 = vrot.lane.b32.xlu1 %v6650_v33, %s6324_s24 }
 0xa12   : > { %v3343_v27 = vpop.permute.xlu1 %3342 }
 0xa13   : > { %3409 = vrot.lane.b32.xlu1 %v8130_v41, %s6324_s24  ;;  %v3348_v61 = vrot.slane %v3343_v27, 4  ;;  %v5745_v27 = vld [vmem:[#allocation7 + $0x84] sm:$0xf] }
 0xa15   : > { %v7415_v58 = vunpack.c.l.b16 %v3348_v61  ;;  %v5500_v61 = vor.u32 %v5746_v22, %v5499_v57  ;;  %v7427_v16 = vpop.permute.xlu0 %3405  ;;  %v3102_v57 = vpack.c.bf16 %v3094_v34, %v3094_v34  ;;  %v3078_v22 = vpop.xlane.xlu2 %3077 }
 0xa17   : > { %3271 = vmatpush.bf16.msrb.mxu0 %v5500_v61 }
 0xa1a   : > { %v3345_v4 = vpop.permute.xlu1 %3344 }
 0xa1b   : > { %v3349_v6 = vrot.slane %v3345_v4, 4  ;;  %3572 = vrot.lane.b32.xlu1 %v6694_v42, %s6324_s24  ;;  %v5501_v4 = vld [vmem:[#allocation7 + $0x88] sm:$0xf0] }
 0xa1d   : > { %v7417_v44 = vunpack.c.l.b16 %v3349_v6  ;;  %v5504_v6 = vor.u32 %v5745_v27, %v5501_v4 }
 0xa1f   : > { %3300 = vmatpush.bf16.msrb.mxu1 %v5504_v6  ;;  %v3161_v6 = vunpack.c.l.b16 %v3102_v57 }
 0xa22   : > { %v3422_v46 = vpop.permute.xlu1 %3421 }
 0xa23   : > { %3570 = vrot.lane.b32.xlu1 %v6700_v39, %s6324_s24 }
 0xa2b   : > { %3832 = vrot.lane.b32.xlu1 %v6623_v10, %s6325_s29 }
 0xa40   : > { %v3081_v47 = vpop.xlane.xlu0 %3080 }
 0xa4d   : > { %v3075_v23 = vpop.xlane.xlu1 %3074 }
 0xa4e   : > { %6015 = vrcp.f32 %v3075_v23 }
 0xa4f   : > { %6017 = vrcp.f32 %v3066_v24 }
 0xa50   : > { %6019 = vrcp.f32 %v3081_v47 }
 0xa52   : > { %v3143_v9 = vpop.f32.mrf.mxu2 }
 0xa53   : > { %v3200_v23 = vpack.c.bf16 %v3143_v9, %v3143_v9 }
 0xa54   : > { %v6016_v8 = vpop.eup %6015 }
 0xa55   : > { %v3095_v27 = vmul.f32 %v6016_v8, %v6010_v32  ;;  %v3069_v61 = vpop.xlane.xlu1 %3068  ;;  %v6018_v4 = vpop.eup %6017  ;;  %v3220_v34 = vunpack.c.l.b16 %v3200_v23 }
 0xa56   : > { %6021 = vrcp.f32 %v3069_v61  ;;  %v3092_v29 = vmul.f32 %v6018_v4, %v7366_v55  ;;  %v6020_v12 = vpop.eup %6019 }
 0xa57   : > { %v3103_v7 = vpack.c.bf16 %v3095_v27, %v3095_v27  ;;  %6023 = vrcp.f32 %v3078_v22  ;;  %v3097_v22 = vmul.f32 %v6020_v12, %v7392_v2  ;;  %v3427_v12 = vrot.slane %v3422_v46, 4 }
 0xa58   : > { %v3100_v52 = vpack.c.bf16 %v3092_v29, %v3092_v29  ;;  %v3347_v2 = vrot.slane %v7425_v18, 4 }
 0xa59   : > { %v3162_v49 = vunpack.c.l.b16 %v3103_v7  ;;  %v3346_v7 = vrot.slane %v3339_v5, 4 }
 0xa5a   : > { %v3145_v24 = vpop.f32.mrf.mxu2  ;;  %v3116_v55 = vunpack.c.l.b16 %v3100_v52 }
 0xa5b   : > { %v3165_v30 = vpack.c.b16 %v3162_v49, %v3161_v6  ;;  %v3201_v25 = vpack.c.bf16 %v3145_v24, %v3145_v24  ;;  %v3105_v49 = vpack.c.bf16 %v3097_v22, %v3097_v22  ;;  %v3362_v23 = vunpack.c.l.b16 %v3346_v7 }
 0xa5c   : > { %v6022_v37 = vpop.eup %6021  ;;  %v3437_v24 = vunpack.c.l.b16 %v3427_v12 }
 0xa5d   : > { %v3093_v47 = vmul.f32 %v6022_v37, %v7399_v45  ;;  %v3221_v32 = vunpack.c.l.b16 %v3201_v25  ;;  %5495 = vmatmul.msk.bf16.vlgmr.msrb.gmra.mxu3 %vm1347_vm0, %v3165_v30  ;;  %v6024_v8 = vpop.eup %6023  ;;  %v3164_v37 = vunpack.c.l.b16 %v3105_v49  ;;  %v3363_v25 = vunpack.c.l.b16 %v3347_v2 }
 0xa5e   : > { %v3096_v9 = vmul.f32 %v6024_v8, %v7370_v13 }
 0xa5f   : > { %v3101_v57 = vpack.c.bf16 %v3093_v47, %v3093_v47  ;;  %v3228_v27 = vpack.c.b16 %v3221_v32, %v3220_v34  ;;  %v3418_v34 = vpop.permute.xlu2 %3417  ;;  %v3366_v32 = vpack.c.b16 %v3363_v25, %v3362_v23 }
 0xa60   : > { %v3104_v4 = vpack.c.bf16 %v3096_v9, %v3096_v9  ;;  %v3425_v8 = vrot.slane %v3418_v34, 4 }
 0xa61   : > { %v3117_v61 = vunpack.c.l.b16 %v3101_v57  ;;  %5513 = vmatmul.msk.bf16.vlgmr.msrb.gmra.mxu0 %vm1347_vm0, %v3228_v27  ;;  %5517 = vmatmul.msk.bf16.vlgmr.msrb.gmra.mxu1 %vm1347_vm0, %v3228_v27 }
 0xa62   : > { %v3163_v45 = vunpack.c.l.b16 %v3104_v4  ;;  %v3435_v18 = vunpack.c.l.b16 %v3425_v8 }
 0xa63   : > { %v3119_v29 = vpack.c.b16 %v3117_v61, %v3116_v55  ;;  %v3413_v55 = vrot.slane %v7427_v16, 4 }
 0xa64   : > { %v3166_v6 = vpack.c.b16 %v3164_v37, %v3163_v45 }
 0xa65   : > { %5494 = vmatmul.msk.bf16.gmra.mxu2 %vm1347_vm0, %v3119_v29  ;;  %v3429_v4 = vunpack.c.l.b16 %v3413_v55 }
 0xa67   : > { %v3412_v29 = vpop.permute.xlu2 %3411 }
 0xa68   : > { %v3416_v16 = vrot.slane %v3412_v29, 4 }
 0xa6d   : > { %v3424_v52 = vpop.permute.xlu1 %3423  ;;  %5496 = vmatmul.msk.bf16.gmra.mxu3 %vm1347_vm0, %v3166_v6  ;;  %v8139_v6 = vpack.c.b16 %v7417_v44, %v7415_v58 }
 0xa6e   : > { %v3428_v13 = vrot.slane %v3424_v52, 4 }
 0xa6f   : > { %v3575_v12 = vpop.permute.xlu2 %3574 }
 0xa70   : > { %v3438_v30 = vunpack.c.l.b16 %v3428_v13  ;;  %v3579_v52 = vrot.slane %v3575_v12, 4 }
 0xa72   : > { %v3440_v47 = vpack.c.b16 %v3438_v30, %v3437_v24  ;;  %v3432_v30 = vunpack.c.l.b16 %v3416_v16  ;;  %v3593_v25 = vunpack.c.l.b16 %v3579_v52 }
 0xa74   : > { %v3451_v22 = vsel %vm1347_vm0, %v3440_v47, 0  ;;  %v3569_v47 = vpop.permute.xlu0 %3568 }
 0xa75   : > { %3459 = vmatpush.bf16.xpose.msra.mxu3 %v3451_v22  ;;  %v3420_v5 = vpop.permute.xlu1 %3419  ;;  %5521 = vmatmul.msk.bf16.vlgmr.msra.gmra.mxu2 %vm1347_vm0, %v3366_v32  ;;  %v3576_v22 = vrot.slane %v3569_v47, 4 }
 0xa76   : > { %v3426_v46 = vrot.slane %v3420_v5, 4 }
 0xa77   : > { %v3590_v5 = vunpack.c.l.b16 %v3576_v22 }
 0xa78   : > { %v3436_v57 = vunpack.c.l.b16 %v3426_v46 }
 0xa7a   : > { %v3439_v27 = vpack.c.b16 %v3436_v57, %v3435_v18  ;;  %v7450_v57 = vpop.f32.mrf.mxu0 }
 0xa7c   : > { %v3448_v9 = vsel %vm1347_vm0, %v3439_v27, 0  ;;  %v7452_v27 = vpop.f32.mrf.mxu1 }
 0xa7d   : > { %3460 = vmatpush.bf16.xpose.msra.mxu3 %v3448_v9  ;;  %v3408_v61 = vpop.permute.xlu1 %3407  ;;  %8140 = vst [vmem:[#allocation44_spill] sm:$0xff] %v7452_v27 }
 0xa7e   : > { %v3414_v49 = vrot.slane %v3408_v61, 4 }
 0xa80   : > { %v3430_v37 = vunpack.c.l.b16 %v3414_v49 }
 0xa82   : > { %v3433_v45 = vpack.c.b16 %v3430_v37, %v3429_v4 }
 0xa84   : > { %5523 = vmatmul.msk.bf16.vlgmr.msra.gmra.mxu3 %vm1347_vm0, %v3433_v45 }
 0xa85   : > { %v3410_v7 = vpop.permute.xlu1 %3409  ;;  %5522 = vmatmul.msk.bf16.gmra.mxu2 %vm1347_vm0, %v8139_v6 }
 0xa86   : > { %v3415_v2 = vrot.slane %v3410_v7, 4 }
 0xa88   : > { %v3431_v23 = vunpack.c.l.b16 %v3415_v2 }
 0xa8a   : > { %v3434_v32 = vpack.c.b16 %v3432_v30, %v3431_v23 }
 0xa8d   : > { %v3573_v13 = vpop.permute.xlu1 %3572 }
 0xa8e   : > { %v3578_v24 = vrot.slane %v3573_v13, 4  ;;  %v1315_v13 = vld [vmem:[#allocation8 + $0xa0] sm:$0xff] }
 0xa90   : > { %v3592_v34 = vunpack.c.l.b16 %v3578_v24 }
 0xa92   : > { %v3595_v8 = vpack.c.b16 %v3593_v25, %v3592_v34 }
 0xa94   : > { %5524 = vmatmul.msk.bf16.gmra.mxu3 %vm1347_vm0, %v3434_v32  ;;  %3610 = vmatpush.bf16.msrb.mxu2 %v3595_v8 }
 0xa95   : > { %v3571_v58 = vpop.permute.xlu1 %3570 }
 0xa96   : > { %v3577_v44 = vrot.slane %v3571_v58, 4 }
 0xa98   : > { %v3591_v46 = vunpack.c.l.b16 %v3577_v44 }
 0xa9a   : > { %v3594_v18 = vpack.c.b16 %v3591_v46, %v3590_v5  ;;  %v1316_v5 = vld [vmem:[#allocation8 + $0xa8] sm:$0xff] }
 0xa9c   : > { %3611 = vmatpush.bf16.msrb.mxu2 %v3594_v18 }
 0xade   : > { %v3273_v55 = vpop.f32.mrf.mxu0  ;;  %v3302_v9 = vpop.f32.mrf.mxu1 }
 0xadf   : > { %v7455_v61 = vadd.f32 %v3273_v55, %v7304_v21  ;;  %v7458_v49 = vadd.f32 %v3302_v9, %v7307_v35 }
 0xae0   : > { %v3190_v29 = vpop.f32.mrf.mxu3 }
 0xae1   : > { %v3204_v30 = vpack.c.bf16 %v3190_v29, %v3190_v29 }
 0xae3   : > { %v3224_v47 = vunpack.c.l.b16 %v3204_v30 }
 0xae8   : > { %v3148_v4 = vpop.f32.mrf.mxu2  ;;  %v3192_v37 = vpop.f32.mrf.mxu3 }
 0xae9   : > { %v3202_v45 = vpack.c.bf16 %v3148_v4, %v3148_v4  ;;  %v3205_v24 = vpack.c.bf16 %v3192_v37, %v3192_v37 }
 0xaeb   : > { %v3222_v12 = vunpack.c.l.b16 %v3202_v45  ;;  %v3225_v34 = vunpack.c.l.b16 %v3205_v24  ;;  %v1318_v24 = vld [vmem:[#allocation8 + $0xb8] sm:$0xff] }
 0xaed   : > { %v3230_v32 = vpack.c.b16 %v3225_v34, %v3224_v47 }
 0xaf0   : > { %v3150_v7 = vpop.f32.mrf.mxu2  ;;  %v3195_v52 = vpop.f32.mrf.mxu3 }
 0xaf1   : > { %v3203_v6 = vpack.c.bf16 %v3150_v7, %v3150_v7  ;;  %v3206_v55 = vpack.c.bf16 %v3195_v52, %v3195_v52 }
 0xaf3   : > { %v3223_v2 = vunpack.c.l.b16 %v3203_v6  ;;  %v3226_v7 = vunpack.c.l.b16 %v3206_v55  ;;  %v1317_v6 = vld [vmem:[#allocation8 + $0xb0] sm:$0xff] }
 0xaf5   : > { %v3229_v16 = vpack.c.b16 %v3223_v2, %v3222_v12 }
 0xaf7   : > { %5514 = vmatmul.msk.bf16.gmra.mxu0 %vm1347_vm0, %v3229_v16  ;;  %5518 = vmatmul.msk.bf16.gmra.mxu1 %vm1347_vm0, %v3229_v16 }
 0xaf8   : > { %v3395_v21 = vpop.f32.mrf.mxu2  ;;  %v3197_v25 = vpop.f32.mrf.mxu3 }
 0xaf9   : > { %v3396_v23 = vadd.f32 %v3395_v21, %v1315_v13  ;;  %v3207_v46 = vpack.c.bf16 %v3197_v25, %v3197_v25 }
 0xafb   : > { %v3472_v35 = vsel %vm1347_vm0, %v3396_v23, -inf  ;;  %v3227_v4 = vunpack.c.l.b16 %v3207_v46 }
 0xafc   : > { %3473 = vmax.xlane.f32.xlu0 %v3472_v35 }
 0xafd   : > { %v3231_v2 = vpack.c.b16 %v3227_v4, %v3226_v7  ;;  %v3833_v7 = vpop.permute.xlu1 %3832 }
 0xb00   : > { %v3397_v58 = vpop.f32.mrf.mxu2 }
 0xb01   : > { %v3398_v18 = vadd.f32 %v3397_v58, %v1316_v5  ;;  %v7502_v58 = vpop.f32.mrf.mxu0 }
 0xb03   : > { %v3475_v45 = vsel %vm1347_vm0, %v3398_v18, -inf }
 0xb07   : > { %5515 = vmatmul.msk.bf16.gmra.mxu0 %vm1347_vm0, %v3230_v32  ;;  %5519 = vmatmul.msk.bf16.gmra.mxu1 %vm1347_vm0, %v3230_v32  ;;  %v3462_v8 = vpop.f32.mrf.mxu3 }
 0xb08   : > { %v7465_v22 = vadd.f32 %v3462_v8, %v1315_v13  ;;  %v3400_v12 = vpop.f32.mrf.mxu2 }
 0xb09   : > { %v7476_v16 = vadd.f32 %v3400_v12, %v1317_v6 }
 0xb0a   : > { %v3484_v44 = vsel %vm1347_vm0, %v7465_v22, -inf }
 0xb0b   : > { %3485 = vmax.xlane.f32.xlu1 %v3484_v44  ;;  %v3478_v52 = vsel %vm1347_vm0, %v7476_v16, -inf  ;;  %v7504_v44 = vpop.f32.mrf.mxu1 }
 0xb0f   : > { %v3464_v9 = vpop.f32.mrf.mxu3 }
 0xb10   : > { %v7469_v29 = vadd.f32 %v3464_v9, %v1316_v5  ;;  %3828 = vrot.lane.b32.xlu0 %v6634_v19, %s6325_s29  ;;  %v3402_v30 = vpop.f32.mrf.mxu2 }
 0xb11   : > { %v7492_v25 = vadd.f32 %v3402_v30, %v1318_v24 }
 0xb12   : > { %v3487_v37 = vsel %vm1347_vm0, %v7469_v29, -inf }
 0xb13   : > { %3488 = vmax.xlane.f32.xlu2 %v3487_v37  ;;  %3476 = vmax.xlane.f32.xlu1 %v3475_v45  ;;  %v3481_v34 = vsel %vm1347_vm0, %v7492_v25, -inf }
 0xb17   : > { %5516 = vmatmul.msk.bf16.gmra.mxu0 %vm1347_vm0, %v3231_v2  ;;  %5520 = vmatmul.msk.bf16.gmra.mxu1 %vm1347_vm0, %v3231_v2  ;;  %v3467_v13 = vpop.f32.mrf.mxu3 }
 0xb18   : > { %3627 = vrot.lane.b32.xlu0 %v6717_v11, %s6324_s24  ;;  %v7488_v21 = vadd.f32 %v3467_v13, %v1317_v6 }
 0xb1a   : > { %v3490_v35 = vsel %vm1347_vm0, %v7488_v21, -inf }
 0xb1b   : > { %3479 = vmax.xlane.f32.xlu2 %v3478_v52 }
 0xb1f   : > { %v3469_v47 = vpop.f32.mrf.mxu3 }
 0xb20   : > { %v7496_v32 = vadd.f32 %v3469_v47, %v1318_v24 }
 0xb22   : > { %v3493_v8 = vsel %vm1347_vm0, %v7496_v32, -inf }
 0xb2c   : > { %3834 = vrot.lane.b32.xlu1 %v6627_v14, %s6325_s29 }
 0xb33   : > { %3625 = vrot.lane.b32.xlu2 %v6721_v1, %s6324_s24 }
 0xb42   : > { %3491 = vmax.xlane.f32.xlu0 %v3490_v35 }
 0xb4a   : > { %3482 = vmax.xlane.f32.xlu0 %v3481_v34 }
 0xb56   : > { %3494 = vmax.xlane.f32.xlu1 %v3493_v8 }
 0xb5e   : > { %3623 = vrot.lane.b32.xlu0 %v6719_v62, %s6324_s24 }
 0xb6f   : > { %3629 = vrot.lane.b32.xlu1 %v6723_v51, %s6324_s24  ;;  %v3474_v5 = vpop.xlane.xlu0 %3473 }
 0xb70   : > { %v3496_v46 = vsub.f32 %v3396_v23, %v3474_v5 }
 0xb72   : > { %v3504_v55 = vmul.f32 1.442695, %v3496_v46 }
 0xb74   : > { %6025 = vpow2.f32 %v3504_v55  ;;  %v3278_v9 = vpop.f32.mrf.mxu0  ;;  %v3307_v4 = vpop.f32.mrf.mxu1 }
 0xb75   : > { %v7509_v37 = vadd.f32 %v3278_v9, %v7333_v56  ;;  %v7512_v45 = vadd.f32 %v3307_v4, %v7336_v59 }
 0xb7a   : > { %v7514_v6 = vpop.eup %6025 }
 0xb7b   : > { %v3520_v12 = vsel %vm1347_vm0, %v7514_v6, 0.0 }
 0xb7c   : > { %v7518_v2 = vpop.f32.mrf.mxu0  ;;  %v7520_v52 = vpop.f32.mrf.mxu1  ;;  %3521 = vadd.xlane.f32.xlu2 %v3520_v12 }
 0xb7e   : > { %v3486_v23 = vpop.xlane.xlu1 %3485 }
 0xb7f   : > { %v3500_v30 = vsub.f32 %v7465_v22, %v3486_v23  ;;  %v3838_v23 = vrot.slane %v3833_v7, 4 }
 0xb81   : > { %v3512_v8 = vmul.f32 1.442695, %v3500_v30  ;;  %v3831_v30 = vpop.permute.xlu2 %3830 }
 0xb84   : > { %v3283_v13 = vpop.f32.mrf.mxu0  ;;  %v3312_v35 = vpop.f32.mrf.mxu1 }
 0xb85   : > { %v7523_v56 = vadd.f32 %v3283_v13, %v7345_v31  ;;  %v7526_v59 = vadd.f32 %v3312_v35, %v7348_v20  ;;  %v3829_v13 = vpop.permute.xlu0 %3828 }
 0xb86   : > { %v3477_v24 = vpop.xlane.xlu1 %3476 }
 0xb87   : > { %v3497_v34 = vsub.f32 %v3398_v18, %v3477_v24 }
 0xb89   : > { %v3506_v47 = vmul.f32 1.442695, %v3497_v34  ;;  %v3848_v34 = vunpack.c.l.b16 %v3838_v23  ;;  %v3489_v23 = vpop.xlane.xlu2 %3488 }
 0xb8b   : > { %6027 = vpow2.f32 %v3506_v47  ;;  %v3836_v47 = vrot.slane %v3829_v13, 4 }
 0xb8c   : > { %v7529_v5 = vpop.f32.mrf.mxu0  ;;  %v7531_v46 = vpop.f32.mrf.mxu1  ;;  %6029 = vpow2.f32 %v3512_v8 }
 0xb91   : > { %v7533_v55 = vpop.eup %6027 }
 0xb92   : > { %v3523_v31 = vsel %vm1347_vm0, %v7533_v55, 0.0  ;;  %v7539_v22 = vpop.eup %6029 }
 0xb93   : > { %3524 = vadd.xlane.f32.xlu0 %v3523_v31  ;;  %v3532_v12 = vsel %vm1347_vm0, %v7539_v22, 0.0 }
 0xb94   : > { %v3288_v20 = vpop.f32.mrf.mxu0  ;;  %v3317_v9 = vpop.f32.mrf.mxu1  ;;  %3818 = vrot.lane.b32.xlu2 %v6572_v36, %s6325_s29 }
 0xb95   : > { %v7542_v18 = vadd.f32 %v3288_v20, %v7357_v43  ;;  %v7545_v4 = vadd.f32 %v3317_v9, %v7360_v3  ;;  %v3837_v43 = vrot.slane %v3831_v30, 4  ;;  %v3846_v3 = vunpack.c.l.b16 %v3836_v47  ;;  %v3480_v30 = vpop.xlane.xlu2 %3479 }
 0xb96   : > { %v3498_v47 = vsub.f32 %v7476_v16, %v3480_v30 }
 0xb97   : > { %v3847_v9 = vunpack.c.l.b16 %v3837_v43 }
 0xb99   : > { %3533 = vadd.xlane.f32.xlu1 %v3532_v12  ;;  %v3850_v7 = vpack.c.b16 %v3847_v9, %v3846_v3 }
 0xb9b   : > { %v3859_v12 = vsel %vm1347_vm0, %v3850_v7, 0 }
 0xb9c   : > { %3820 = vrot.lane.b32.xlu2 %v6581_v40, %s6325_s29 }
 0xb9e   : > { %v3835_v35 = vpop.permute.xlu1 %3834 }
 0xb9f   : > { %v3839_v24 = vrot.slane %v3835_v35, 4  ;;  %v3628_v35 = vpop.permute.xlu0 %3627 }
 0xba1   : > { %v3849_v8 = vunpack.c.l.b16 %v3839_v24  ;;  %v3501_v24 = vsub.f32 %v7469_v29, %v3489_v23 }
 0xba3   : > { %v3851_v31 = vpack.c.b16 %v3849_v8, %v3848_v34  ;;  %v3514_v34 = vmul.f32 1.442695, %v3501_v24 }
 0xba4   : > { %3822 = vrot.lane.b32.xlu2 %v6583_v48, %s6325_s29 }
 0xba5   : > { %v3862_v20 = vsel %vm1347_vm0, %v3851_v31, 0  ;;  %6031 = vpow2.f32 %v3514_v34  ;;  %v3508_v31 = vmul.f32 1.442695, %v3498_v47 }
 0xba6   : > { %3870 = vmatpush.bf16.xpose.msra.mxu2 %v3862_v20 }
 0xba7   : > { %3816 = vrot.lane.b32.xlu0 %v6570_v28, %s6325_s29  ;;  %6033 = vpow2.f32 %v3508_v31  ;;  %v3626_v31 = vpop.permute.xlu2 %3625 }
 0xbab   : > { %v7561_v9 = vpop.eup %6031 }
 0xbac   : > { %v3535_v16 = vsel %vm1347_vm0, %v7561_v9, 0.0 }
 0xbad   : > { %v7566_v24 = vpop.eup %6033 }
 0xbae   : > { %3871 = vmatpush.bf16.xpose.msra.mxu2 %v3859_v12 }
 0xbb5   : > { %v3492_v13 = vpop.xlane.xlu0 %3491 }
 0xbb6   : > { %v3502_v3 = vsub.f32 %v7488_v21, %v3492_v13  ;;  %v3526_v21 = vsel %vm1347_vm0, %v7566_v24, 0.0 }
 0xbb8   : > { %v3516_v29 = vmul.f32 1.442695, %v3502_v3 }
 0xbbd   : > { %v3483_v8 = vpop.xlane.xlu0 %3482 }
 0xbbe   : > { %v3499_v43 = vsub.f32 %v7492_v25, %v3483_v8 }
 0xbc0   : > { %v3510_v20 = vmul.f32 1.442695, %v3499_v43  ;;  %v3633_v43 = vrot.slane %v3628_v35, 4 }
 0xbc2   : > { %6035 = vpow2.f32 %v3510_v20 }
 0xbc8   : > { %v7568_v25 = vpop.eup %6035 }
 0xbc9   : > { %v3495_v7 = vpop.xlane.xlu1 %3494 }
 0xbca   : > { %v3503_v12 = vsub.f32 %v7496_v32, %v3495_v7  ;;  %v3529_v32 = vsel %vm1347_vm0, %v7568_v25, 0.0 }
 0xbcc   : > { %v3518_v23 = vmul.f32 1.442695, %v3503_v12  ;;  %v3647_v12 = vunpack.c.l.b16 %v3633_v43 }
 0xbcd   : > { %3536 = vadd.xlane.f32.xlu2 %v3535_v16 }
 0xbce   : > { %6037 = vpow2.f32 %v3518_v23 }
 0xbcf   : > { %6039 = vpow2.f32 %v3516_v29  ;;  %v3632_v29 = vrot.slane %v3626_v31, 4 }
 0xbd0   : > { %v3624_v8 = vpop.permute.xlu0 %3623 }
 0xbd1   : > { %3527 = vadd.xlane.f32.xlu0 %v3526_v21  ;;  %v3631_v3 = vrot.slane %v3624_v8, 4 }
 0xbd3   : > { %v3645_v16 = vunpack.c.l.b16 %v3631_v3 }
 0xbd4   : > { %v7572_v13 = vpop.eup %6037 }
 0xbd5   : > { %3530 = vadd.xlane.f32.xlu2 %v3529_v32  ;;  %v3541_v30 = vsel %vm1347_vm0, %v7572_v13, 0.0  ;;  %v7578_v34 = vpop.eup %6039  ;;  %v3646_v32 = vunpack.c.l.b16 %v3632_v29 }
 0xbd6   : > { %3542 = vadd.xlane.f32.xlu1 %v3541_v30  ;;  %v3538_v47 = vsel %vm1347_vm0, %v7578_v34, 0.0 }
 0xbd7   : > { %v3649_v27 = vpack.c.b16 %v3646_v32, %v3645_v16 }
 0xbd9   : > { %3539 = vadd.xlane.f32.xlu0 %v3538_v47 }
 0xbe1   : > { %v3630_v20 = vpop.permute.xlu1 %3629 }
 0xbe2   : > { %v3634_v7 = vrot.slane %v3630_v20, 4 }
 0xbe4   : > { %v3648_v23 = vunpack.c.l.b16 %v3634_v7 }
 0xbe6   : > { %v3650_v21 = vpack.c.b16 %v3648_v23, %v3647_v12 }
 0xbe8   : > { %3665 = vmatpush.bf16.msrb.mxu3 %v3650_v21 }
 0xbec   : > { %3666 = vmatpush.bf16.msrb.mxu3 %v3649_v27 }
 0xbed   : > { %3899 = vrot.lane.b32.xlu2 %v6664_v54, %s6325_s29  ;;  %3897 = vrot.lane.b32.xlu0 %v6668_v63, %s6325_s29 }
 0xbef   : > { %3885 = vrot.lane.b32.xlu1 %v6650_v33, %s6325_s29  ;;  %v3522_v27 = vpop.xlane.xlu2 %3521 }
 0xbf0   : > { %6041 = vrcp.f32 %v3522_v27 }
 0xbf5   : > { %3901 = vrot.lane.b32.xlu2 %v6670_v0, %s6325_s29  ;;  %4046 = vrot.lane.b32.xlu0 %v6698_v50, %s6325_s29 }
 0xbf6   : > { %v6042_v30 = vpop.eup %6041 }
 0xbf7   : > { %4052 = vrot.lane.b32.xlu1 %v6696_v53, %s6325_s29  ;;  %v3552_v47 = vmul.f32 %v6042_v30, %v7514_v6 }
 0xbfd   : > { %3895 = vrot.lane.b32.xlu2 %v6666_v60, %s6325_s29  ;;  %4048 = vrot.lane.b32.xlu0 %v6700_v39, %s6325_s29 }
 0xbff   : > { %4306 = vrot.lane.b32.xlu1 %v6634_v19, %s6326_s16  ;;  %v3560_v19 = vpack.c.bf16 %v3552_v47, %v3552_v47 }
 0xc01   : > { %v3584_v20 = vunpack.c.l.b16 %v3560_v19 }
 0xc05   : > { %3883 = vrot.lane.b32.xlu2 %v6593_v17, %s6325_s29  ;;  %4310 = vrot.lane.b32.xlu0 %v6623_v10, %s6326_s16  ;;  %v7615_v10 = vpop.permute.xlu2 %3818 }
 0xc06   : > { %v3525_v35 = vpop.xlane.xlu0 %3524 }
 0xc07   : > { %6043 = vrcp.f32 %v3525_v35 }
 0xc0d   : > { %3887 = vrot.lane.b32.xlu2 %v8130_v41, %s6325_s29  ;;  %v6044_v8 = vpop.eup %6043  ;;  %4312 = vrot.lane.b32.xlu0 %v6627_v14, %s6326_s16  ;;  %v7619_v14 = vpop.permute.xlu2 %3820 }
 0xc0e   : > { %v3553_v43 = vmul.f32 %v6044_v8, %v7533_v55  ;;  %v3534_v55 = vpop.xlane.xlu1 %3533 }
 0xc0f   : > { %6045 = vrcp.f32 %v3534_v55 }
 0xc10   : > { %v3561_v31 = vpack.c.bf16 %v3553_v43, %v3553_v43 }
 0xc12   : > { %v3585_v3 = vunpack.c.l.b16 %v3561_v31 }
 0xc14   : > { %v3588_v7 = vpack.c.b16 %v3585_v3, %v3584_v20 }
 0xc15   : > { %3889 = vrot.lane.b32.xlu2 %v8129_v38, %s6325_s29  ;;  %v7621_v6 = vpop.permute.xlu2 %3822  ;;  %v6046_v23 = vpop.eup %6045 }
 0xc16   : > { %5525 = vmatmul.msk.bf16.vlgmr.msrb.gmra.mxu2 %vm1347_vm0, %v3588_v7  ;;  %v3556_v16 = vmul.f32 %v6046_v23, %v7539_v22 }
 0xc18   : > { %v3564_v27 = vpack.c.bf16 %v3556_v16, %v3556_v16 }
 0xc19   : > { %v3817_v12 = vpop.permute.xlu0 %3816 }
 0xc1a   : > { %v3639_v19 = vunpack.c.l.b16 %v3564_v27 }
 0xc1d   : > { %4050 = vrot.lane.b32.xlu2 %v6694_v42, %s6325_s29 }
 0xc25   : > { %4308 = vrot.lane.b32.xlu2 %v6629_v15, %s6326_s16 }
 0xc40   : > { %v3537_v29 = vpop.xlane.xlu2 %3536 }
 0xc41   : > { %6047 = vrcp.f32 %v3537_v29 }
 0xc44   : > { %v3528_v21 = vpop.xlane.xlu0 %3527 }
 0xc45   : > { %6049 = vrcp.f32 %v3528_v21 }
 0xc47   : > { %v6048_v32 = vpop.eup %6047 }
 0xc48   : > { %v3557_v35 = vmul.f32 %v6048_v32, %v7561_v9  ;;  %v3531_v30 = vpop.xlane.xlu2 %3530 }
 0xc49   : > { %6051 = vrcp.f32 %v3531_v30  ;;  %v3543_v15 = vpop.xlane.xlu1 %3542 }
 0xc4a   : > { %v3565_v47 = vpack.c.bf16 %v3557_v35, %v3557_v35  ;;  %6053 = vrcp.f32 %v3543_v15 }
 0xc4b   : > { %v6050_v8 = vpop.eup %6049 }
 0xc4c   : > { %v3640_v43 = vunpack.c.l.b16 %v3565_v47  ;;  %v3554_v31 = vmul.f32 %v6050_v8, %v7566_v24  ;;  %v3540_v20 = vpop.xlane.xlu0 %3539 }
 0xc4d   : > { %6055 = vrcp.f32 %v3540_v20 }
 0xc4e   : > { %v3643_v3 = vpack.c.b16 %v3640_v43, %v3639_v19  ;;  %v3562_v7 = vpack.c.bf16 %v3554_v31, %v3554_v31 }
 0xc4f   : > { %v6052_v22 = vpop.eup %6051 }
 0xc50   : > { %v3555_v55 = vmul.f32 %v6052_v22, %v7568_v25  ;;  %v3900_v29 = vpop.permute.xlu2 %3899  ;;  %5527 = vmatmul.msk.bf16.vlgmr.msrb.gmra.mxu3 %vm1347_vm0, %v3643_v3  ;;  %v6054_v9 = vpop.eup %6053  ;;  %v3586_v21 = vunpack.c.l.b16 %v3562_v7  ;;  %v3824_v22 = vrot.slane %v3817_v12, 4 }
 0xc51   : > { %v3559_v27 = vmul.f32 %v6054_v9, %v7572_v13  ;;  %v3905_v15 = vrot.slane %v3900_v29, 4  ;;  %v3825_v13 = vrot.slane %v7615_v10, 4 }
 0xc52   : > { %v3563_v23 = vpack.c.bf16 %v3555_v55, %v3555_v55 }
 0xc53   : > { %v6056_v16 = vpop.eup %6055  ;;  %v3567_v47 = vpack.c.bf16 %v3559_v27, %v3559_v27  ;;  %v3915_v43 = vunpack.c.l.b16 %v3905_v15  ;;  %v3841_v27 = vunpack.c.l.b16 %v3825_v13 }
 0xc54   : > { %v3587_v32 = vunpack.c.l.b16 %v3563_v23  ;;  %v3558_v35 = vmul.f32 %v6056_v16, %v7578_v34  ;;  %v3840_v16 = vunpack.c.l.b16 %v3824_v22 }
 0xc55   : > { %v3642_v20 = vunpack.c.l.b16 %v3567_v47 }
 0xc56   : > { %v3589_v24 = vpack.c.b16 %v3587_v32, %v3586_v21  ;;  %v3566_v30 = vpack.c.bf16 %v3558_v35, %v3558_v35 }
 0xc58   : > { %v3902_v8 = vpop.permute.xlu2 %3901  ;;  %5526 = vmatmul.msk.bf16.gmra.mxu2 %vm1347_vm0, %v3589_v24  ;;  %v3641_v19 = vunpack.c.l.b16 %v3566_v30  ;;  %v3844_v30 = vpack.c.b16 %v3841_v27, %v3840_v16 }
 0xc59   : > { %v3906_v25 = vrot.slane %v3902_v8, 4 }
 0xc5a   : > { %v3644_v7 = vpack.c.b16 %v3642_v20, %v3641_v19  ;;  %v3826_v20 = vrot.slane %v7619_v14, 4  ;;  %v5752_v14 = vld [vmem:[#allocation7 + $0xb4] sm:$0xf0] }
 0xc5b   : > { %v3916_v31 = vunpack.c.l.b16 %v3906_v25 }
 0xc5d   : > { %v3918_v3 = vpack.c.b16 %v3916_v31, %v3915_v43  ;;  %v3827_v31 = vrot.slane %v7621_v6, 4 }
 0xc5f   : > { %v3929_v55 = vsel %vm1347_vm0, %v3918_v3, 0  ;;  %v3898_v34 = vpop.permute.xlu0 %3897 }
 0xc60   : > { %v3896_v9 = vpop.permute.xlu2 %3895  ;;  %5528 = vmatmul.msk.bf16.gmra.mxu3 %vm1347_vm0, %v3644_v7  ;;  %v3904_v29 = vrot.slane %v3898_v34, 4  ;;  %v3843_v7 = vunpack.c.l.b16 %v3827_v31 }
 0xc61   : > { %v3903_v23 = vrot.slane %v3896_v9, 4  ;;  %3937 = vmatpush.bf16.xpose.msra.mxu3 %v3929_v55  ;;  %v3886_v35 = vpop.permute.xlu1 %3885  ;;  %v3842_v55 = vunpack.c.l.b16 %v3826_v20 }
 0xc62   : > { %v3914_v21 = vunpack.c.l.b16 %v3904_v29  ;;  %v3892_v12 = vrot.slane %v3886_v35, 4  ;;  %v5539_v35 = vld [vmem:[#allocation7 + $0xb0] sm:$0xf] }
 0xc63   : > { %v3913_v32 = vunpack.c.l.b16 %v3903_v23  ;;  %v3845_v13 = vpack.c.b16 %v3843_v7, %v3842_v55 }
 0xc64   : > { %v3908_v25 = vunpack.c.l.b16 %v3892_v12 }
 0xc65   : > { %v3917_v24 = vpack.c.b16 %v3914_v21, %v3913_v32 }
 0xc67   : > { %v3926_v15 = vsel %vm1347_vm0, %v3917_v24, 0  ;;  %v4047_v47 = vpop.permute.xlu0 %4046  ;;  %v5751_v24 = vld [vmem:[#allocation7 + $0xb4] sm:$0xf] }
 0xc68   : > { %v3884_v8 = vpop.permute.xlu2 %3883  ;;  %5553 = vmatmul.msk.bf16.vlgmr.msra.gmra.mxu2 %vm1347_vm0, %v3844_v30  ;;  %v4054_v20 = vrot.slane %v4047_v47, 4 }
 0xc69   : > { %v3891_v10 = vrot.slane %v3884_v8, 4  ;;  %3938 = vmatpush.bf16.xpose.msra.mxu3 %v3926_v15  ;;  %v4053_v16 = vpop.permute.xlu1 %4052  ;;  %v5540_v8 = vor.u32 %v5752_v14, %v5539_v35 }
 0xc6a   : > { %v4057_v6 = vrot.slane %v4053_v16, 4 }
 0xc6b   : > { %v3907_v19 = vunpack.c.l.b16 %v3891_v10  ;;  %v5541_v10 = vld [vmem:[#allocation7 + $0xb8] sm:$0xf0]  ;;  %3748 = vmatpush.bf16.msra.mxu0 %v5540_v8 }
 0xc6c   : > { %v5544_v31 = vor.u32 %v5751_v24, %v5541_v10 }
 0xc6d   : > { %v3911_v43 = vpack.c.b16 %v3908_v25, %v3907_v19 }
 0xc6e   : > { %3777 = vmatpush.bf16.msra.mxu1 %v5544_v31 }
 0xc6f   : > { %v4049_v3 = vpop.permute.xlu0 %4048 }
 0xc70   : > { %v3888_v22 = vpop.permute.xlu2 %3887  ;;  %5555 = vmatmul.msk.bf16.vlgmr.msra.gmra.mxu3 %vm1347_vm0, %v3911_v43  ;;  %v4055_v30 = vrot.slane %v4049_v3, 4 }
 0xc71   : > { %v3893_v34 = vrot.slane %v3888_v22, 4  ;;  %v4071_v22 = vunpack.c.l.b16 %v4057_v6  ;;  %v4307_v35 = vpop.permute.xlu1 %4306 }
 0xc72   : > { %v4069_v16 = vunpack.c.l.b16 %v4055_v30  ;;  %v4314_v24 = vrot.slane %v4307_v35, 4 }
 0xc73   : > { %v3909_v21 = vunpack.c.l.b16 %v3893_v34  ;;  %v5750_v34 = vld [vmem:[#allocation7 + $0xa4] sm:$0xf0] }
 0xc74   : > { %v4324_v10 = vunpack.c.l.b16 %v4314_v24 }
 0xc77   : > { %v4311_v9 = vpop.permute.xlu0 %4310 }
 0xc78   : > { %v3890_v29 = vpop.permute.xlu2 %3889  ;;  %5554 = vmatmul.msk.bf16.gmra.mxu2 %vm1347_vm0, %v3845_v13  ;;  %v4316_v25 = vrot.slane %v4311_v9, 4  ;;  %v5531_v13 = vld [vmem:[#allocation7 + $0xa0] sm:$0xf]  ;;  %v4068_v9 = vunpack.c.l.b16 %v4054_v20 }
 0xc79   : > { %v3894_v23 = vrot.slane %v3890_v29, 4  ;;  %v5749_v29 = vld [vmem:[#allocation7 + $0xa4] sm:$0xf]  ;;  %v5532_v3 = vor.u32 %v5750_v34, %v5531_v13 }
 0xc7a   : > { %v4072_v6 = vpack.c.b16 %v4069_v16, %v4068_v9  ;;  %v1319_v9 = vld [vmem:[#allocation8 + $0xc0] sm:$0xff] }
 0xc7b   : > { %v3910_v32 = vunpack.c.l.b16 %v3894_v23  ;;  %v5533_v23 = vld [vmem:[#allocation7 + $0xa8] sm:$0xf0]  ;;  %3749 = vmatpush.bf16.msra.mxu0 %v5532_v3 }
 0xc7d   : > { %v3912_v27 = vpack.c.b16 %v3910_v32, %v3909_v21  ;;  %v4326_v21 = vunpack.c.l.b16 %v4316_v25 }
 0xc7f   : > { %v4313_v12 = vpop.permute.xlu0 %4312 }
 0xc80   : > { %v4051_v15 = vpop.permute.xlu2 %4050  ;;  %5556 = vmatmul.msk.bf16.gmra.mxu3 %vm1347_vm0, %v3912_v27  ;;  %v4317_v19 = vrot.slane %v4313_v12, 4  ;;  %v5536_v27 = vor.u32 %v5749_v29, %v5533_v23 }
 0xc81   : > { %v4056_v43 = vrot.slane %v4051_v15, 4 }
 0xc82   : > { %v4327_v7 = vunpack.c.l.b16 %v4317_v19  ;;  %3778 = vmatpush.bf16.msra.mxu1 %v5536_v27 }
 0xc83   : > { %v4070_v55 = vunpack.c.l.b16 %v4056_v43 }
 0xc84   : > { %v4329_v14 = vpack.c.b16 %v4327_v7, %v4326_v21 }
 0xc85   : > { %v4073_v32 = vpack.c.b16 %v4071_v22, %v4070_v55 }
 0xc86   : > { %v4340_v8 = vsel %vm1347_vm0, %v4329_v14, 0 }
 0xc87   : > { %4088 = vmatpush.bf16.msrb.mxu2 %v4073_v32 }
 0xc88   : > { %v4309_v47 = vpop.permute.xlu2 %4308 }
 0xc89   : > { %v4315_v12 = vrot.slane %v4309_v47, 4 }
 0xc8b   : > { %v4325_v15 = vunpack.c.l.b16 %v4315_v12  ;;  %4089 = vmatpush.bf16.msrb.mxu2 %v4072_v6 }
 0xc8d   : > { %v4328_v30 = vpack.c.b16 %v4325_v15, %v4324_v10 }
 0xc8f   : > { %4348 = vmatpush.bf16.xpose.msra.mxu2 %v4340_v8  ;;  %v4337_v25 = vsel %vm1347_vm0, %v4328_v30, 0 }
 0xc97   : > { %4349 = vmatpush.bf16.xpose.msra.mxu2 %v4337_v25 }
 0xc99   : > { %v3613_v19 = vpop.f32.mrf.mxu2 }
 0xc9a   : > { %v3678_v43 = vpack.c.bf16 %v3613_v19, %v3613_v19 }
 0xc9c   : > { %v3698_v22 = vunpack.c.l.b16 %v3678_v43 }
 0xca1   : > { %v3615_v31 = vpop.f32.mrf.mxu2 }
 0xca2   : > { %v3679_v20 = vpack.c.bf16 %v3615_v31, %v3615_v31  ;;  %v1320_v31 = vld [vmem:[#allocation8 + $0xc8] sm:$0xff] }
 0xca4   : > { %v3699_v7 = vunpack.c.l.b16 %v3679_v20 }
 0xca6   : > { %v3706_v55 = vpack.c.b16 %v3699_v7, %v3698_v22 }
 0xca8   : > { %5545 = vmatmul.msk.bf16.vlgmr.msra.gmra.mxu0 %vm1347_vm0, %v3706_v55  ;;  %5549 = vmatmul.msk.bf16.vlgmr.msra.gmra.mxu1 %vm1347_vm0, %v3706_v55 }
 0xcd3   : > { %v3668_v13 = vpop.f32.mrf.mxu3 }
 0xcd4   : > { %v3682_v15 = vpack.c.bf16 %v3668_v13, %v3668_v13 }
 0xcd6   : > { %v3702_v19 = vunpack.c.l.b16 %v3682_v15  ;;  %v1322_v15 = vld [vmem:[#allocation8 + $0xd8] sm:$0xff] }
 0xcdb   : > { %v3618_v34 = vpop.f32.mrf.mxu2  ;;  %v3670_v29 = vpop.f32.mrf.mxu3 }
 0xcdc   : > { %v3680_v3 = vpack.c.bf16 %v3618_v34, %v3618_v34  ;;  %v3683_v12 = vpack.c.bf16 %v3670_v29, %v3670_v29 }
 0xcde   : > { %v3700_v32 = vunpack.c.l.b16 %v3680_v3  ;;  %v3703_v30 = vunpack.c.l.b16 %v3683_v12  ;;  %v1321_v3 = vld [vmem:[#allocation8 + $0xd0] sm:$0xff] }
 0xce0   : > { %v3708_v20 = vpack.c.b16 %v3703_v30, %v3702_v19  ;;  %v7675_v30 = vpop.f32.mrf.mxu0  ;;  %v7677_v19 = vpop.f32.mrf.mxu1 }
 0xce1   : > { %8141 = vst [vmem:[#allocation45_spill] sm:$0xff] %v7677_v19 }
 0xce3   : > { %v3620_v23 = vpop.f32.mrf.mxu2  ;;  %v3673_v16 = vpop.f32.mrf.mxu3 }
 0xce4   : > { %v3681_v21 = vpack.c.bf16 %v3620_v23, %v3620_v23 }
 0xce6   : > { %v3701_v27 = vunpack.c.l.b16 %v3681_v21  ;;  %v3684_v21 = vpack.c.bf16 %v3673_v16, %v3673_v16 }
 0xce8   : > { %v3707_v35 = vpack.c.b16 %v3701_v27, %v3700_v32 }
 0xcea   : > { %5546 = vmatmul.msk.bf16.gmra.mxu0 %vm1347_vm0, %v3707_v35  ;;  %5550 = vmatmul.msk.bf16.gmra.mxu1 %vm1347_vm0, %v3707_v35 }
 0xceb   : > { %v3675_v14 = vpop.f32.mrf.mxu3  ;;  %v3873_v47 = vpop.f32.mrf.mxu2 }
 0xcec   : > { %v3874_v6 = vadd.f32 %v3873_v47, %v1319_v9  ;;  %v3685_v23 = vpack.c.bf16 %v3675_v14, %v3675_v14  ;;  %v3704_v47 = vunpack.c.l.b16 %v3684_v21 }
 0xcee   : > { %v3950_v24 = vsel %vm1347_vm0, %v3874_v6, -inf  ;;  %v3705_v35 = vunpack.c.l.b16 %v3685_v23 }
 0xcef   : > { %3951 = vmax.xlane.f32.xlu0 %v3950_v24 }
 0xcf3   : > { %v3875_v8 = vpop.f32.mrf.mxu2  ;;  %v3940_v10 = vpop.f32.mrf.mxu3 }
 0xcf4   : > { %v3941_v25 = vadd.f32 %v3940_v10, %v1319_v9  ;;  %v7649_v22 = vadd.f32 %v3875_v8, %v1320_v31  ;;  %v3709_v10 = vpack.c.b16 %v3705_v35, %v3704_v47 }
 0xcf6   : > { %v3962_v43 = vsel %vm1347_vm0, %v3941_v25, -inf  ;;  %v3953_v29 = vsel %vm1347_vm0, %v7649_v22, -inf }
 0xcf7   : > { %3963 = vmax.xlane.f32.xlu2 %v3962_v43 }
 0xcfa   : > { %5547 = vmatmul.msk.bf16.gmra.mxu0 %vm1347_vm0, %v3708_v20  ;;  %5551 = vmatmul.msk.bf16.gmra.mxu1 %vm1347_vm0, %v3708_v20 }
 0xcfb   : > { %v3942_v7 = vpop.f32.mrf.mxu3  ;;  %v3878_v13 = vpop.f32.mrf.mxu2 }
 0xcfc   : > { %v7653_v55 = vadd.f32 %v3942_v7, %v1320_v31  ;;  %v7659_v32 = vadd.f32 %v3878_v13, %v1321_v3 }
 0xcfe   : > { %v3965_v34 = vsel %vm1347_vm0, %v7653_v55, -inf  ;;  %v3956_v12 = vsel %vm1347_vm0, %v7659_v32, -inf }
 0xcff   : > { %3966 = vmax.xlane.f32.xlu1 %v3965_v34  ;;  %3954 = vmax.xlane.f32.xlu2 %v3953_v29 }
 0xd03   : > { %v3945_v27 = vpop.f32.mrf.mxu3  ;;  %v3880_v8 = vpop.f32.mrf.mxu2 }
 0xd04   : > { %v7661_v9 = vadd.f32 %v3945_v27, %v1321_v3  ;;  %v7667_v14 = vadd.f32 %v3880_v8, %v1322_v15 }
 0xd06   : > { %v3968_v24 = vsel %vm1347_vm0, %v7661_v9, -inf  ;;  %v3959_v16 = vsel %vm1347_vm0, %v7667_v14, -inf }
 0xd07   : > { %3969 = vmax.xlane.f32.xlu0 %v3968_v24  ;;  %3957 = vmax.xlane.f32.xlu1 %v3956_v12 }
 0xd0a   : > { %5548 = vmatmul.msk.bf16.gmra.mxu0 %vm1347_vm0, %v3709_v10  ;;  %5552 = vmatmul.msk.bf16.gmra.mxu1 %vm1347_vm0, %v3709_v10 }
 0xd0b   : > { %v3947_v13 = vpop.f32.mrf.mxu3 }
 0xd0c   : > { %v7689_v34 = vadd.f32 %v3947_v13, %v1322_v15 }
 0xd0e   : > { %v3971_v29 = vsel %vm1347_vm0, %v7689_v34, -inf }
 0xd0f   : > { %3960 = vmax.xlane.f32.xlu0 %v3959_v16 }
 0xd17   : > { %4101 = vrot.lane.b32.xlu2 %v6719_v62, %s6325_s29 }
 0xd20   : > { %4107 = vrot.lane.b32.xlu1 %v6723_v51, %s6325_s29 }
 0xd23   : > { %4105 = vrot.lane.b32.xlu0 %v6717_v11, %s6325_s29 }
 0xd25   : > { %v3751_v43 = vpop.f32.mrf.mxu0  ;;  %v3780_v31 = vpop.f32.mrf.mxu1 }
 0xd26   : > { %v7684_v20 = vadd.f32 %v3751_v43, %v7455_v61  ;;  %v7687_v7 = vadd.f32 %v3780_v31, %v7458_v49 }
 0xd2d   : > { %v7693_v3 = vpop.f32.mrf.mxu0  ;;  %v7695_v23 = vpop.f32.mrf.mxu1 }
 0xd40   : > { %3972 = vmax.xlane.f32.xlu2 %v3971_v29 }
 0xd62   : > { %v3952_v21 = vpop.xlane.xlu0 %3951 }
 0xd63   : > { %v3974_v27 = vsub.f32 %v3874_v6, %v3952_v21 }
 0xd65   : > { %v3982_v35 = vmul.f32 1.442695, %v3974_v27 }
 0xd67   : > { %6057 = vpow2.f32 %v3982_v35  ;;  %v3756_v61 = vpop.f32.mrf.mxu0  ;;  %v3785_v47 = vpop.f32.mrf.mxu1 }
 0xd68   : > { %v7698_v49 = vadd.f32 %v3756_v61, %v7509_v37  ;;  %v7701_v24 = vadd.f32 %v3785_v47, %v7512_v45 }
 0xd6a   : > { %v3964_v12 = vpop.xlane.xlu2 %3963 }
 0xd6b   : > { %v3978_v15 = vsub.f32 %v3941_v25, %v3964_v12 }
 0xd6d   : > { %v7703_v8 = vpop.eup %6057  ;;  %v3990_v10 = vmul.f32 1.442695, %v3978_v15 }
 0xd6e   : > { %v3998_v16 = vsel %vm1347_vm0, %v7703_v8, 0.0 }
 0xd6f   : > { %6059 = vpow2.f32 %v3990_v10  ;;  %v7707_v6 = vpop.f32.mrf.mxu0  ;;  %v7709_v43 = vpop.f32.mrf.mxu1  ;;  %3999 = vadd.xlane.f32.xlu1 %v3998_v16 }
 0xd72   : > { %v3967_v31 = vpop.xlane.xlu1 %3966  ;;  %v3955_v37 = vpop.xlane.xlu2 %3954 }
 0xd73   : > { %v3979_v13 = vsub.f32 %v7653_v55, %v3967_v31  ;;  %v3975_v45 = vsub.f32 %v7649_v22, %v3955_v37 }
 0xd75   : > { %v7713_v29 = vpop.eup %6059  ;;  %v3992_v25 = vmul.f32 1.442695, %v3979_v13  ;;  %v3984_v21 = vmul.f32 1.442695, %v3975_v45 }
 0xd76   : > { %v4010_v27 = vsel %vm1347_vm0, %v7713_v29, 0.0 }
 0xd77   : > { %6061 = vpow2.f32 %v3992_v25  ;;  %v3761_v35 = vpop.f32.mrf.mxu0  ;;  %v3790_v61 = vpop.f32.mrf.mxu1  ;;  %4011 = vadd.xlane.f32.xlu0 %v4010_v27 }
 0xd78   : > { %6063 = vpow2.f32 %v3984_v21  ;;  %v7718_v47 = vadd.f32 %v3761_v35, %v7523_v56  ;;  %v7721_v12 = vadd.f32 %v3790_v61, %v7526_v59 }
 0xd7a   : > { %v3958_v55 = vpop.xlane.xlu1 %3957  ;;  %v3970_v59 = vpop.xlane.xlu0 %3969 }
 0xd7b   : > { %v3976_v22 = vsub.f32 %v7659_v32, %v3958_v55 }
 0xd7d   : > { %v7724_v15 = vpop.eup %6061  ;;  %v3986_v10 = vmul.f32 1.442695, %v3976_v22 }
 0xd7e   : > { %v7726_v16 = vpop.eup %6063  ;;  %v4013_v31 = vsel %vm1347_vm0, %v7724_v15, 0.0 }
 0xd7f   : > { %6065 = vpow2.f32 %v3986_v10  ;;  %v7730_v37 = vpop.f32.mrf.mxu0  ;;  %v7732_v13 = vpop.f32.mrf.mxu1  ;;  %4014 = vadd.xlane.f32.xlu2 %v4013_v31  ;;  %v4001_v56 = vsel %vm1347_vm0, %v7726_v16, 0.0 }
 0xd80   : > { %4002 = vadd.xlane.f32.xlu0 %v4001_v56 }
 0xd82   : > { %v3961_v61 = vpop.xlane.xlu0 %3960 }
 0xd85   : > { %v7736_v32 = vpop.eup %6065 }
 0xd86   : > { %v4004_v45 = vsel %vm1347_vm0, %v7736_v32, 0.0 }
 0xd87   : > { %v3766_v25 = vpop.f32.mrf.mxu0  ;;  %v3795_v21 = vpop.f32.mrf.mxu1  ;;  %4005 = vadd.xlane.f32.xlu2 %v4004_v45 }
 0xd88   : > { %v7741_v27 = vadd.f32 %v3766_v25, %v7542_v18  ;;  %v7744_v35 = vadd.f32 %v3795_v21, %v7545_v4  ;;  %4103 = vrot.lane.b32.xlu1 %v6721_v1, %s6325_s29  ;;  %v3977_v18 = vsub.f32 %v7667_v14, %v3961_v61  ;;  %v4102_v25 = vpop.permute.xlu2 %4101 }
 0xd8a   : > { %v3988_v4 = vmul.f32 1.442695, %v3977_v18 }
 0xd8c   : > { %6067 = vpow2.f32 %v3988_v4 }
 0xd92   : > { %v4108_v55 = vpop.permute.xlu1 %4107 }
 0xd93   : > { %v4112_v22 = vrot.slane %v4108_v55, 4 }
 0xd94   : > { %4296 = vrot.lane.b32.xlu0 %v6572_v36, %s6326_s16  ;;  %v3980_v36 = vsub.f32 %v7661_v9, %v3970_v59 }
 0xd95   : > { %v4106_v10 = vpop.permute.xlu0 %4105  ;;  %v4126_v56 = vunpack.c.l.b16 %v4112_v22 }
 0xd96   : > { %v4111_v31 = vrot.slane %v4106_v10, 4  ;;  %v3994_v21 = vmul.f32 1.442695, %v3980_v36  ;;  %v4109_v10 = vrot.slane %v4102_v25, 4 }
 0xd98   : > { %v4125_v19 = vunpack.c.l.b16 %v4111_v31  ;;  %6069 = vpow2.f32 %v3994_v21  ;;  %v4123_v21 = vunpack.c.l.b16 %v4109_v10 }
 0xd9a   : > { %v4128_v45 = vpack.c.b16 %v4126_v56, %v4125_v19  ;;  %v7760_v19 = vpop.eup %6067 }
 0xd9c   : > { %4298 = vrot.lane.b32.xlu0 %v6581_v40, %s6326_s16  ;;  %4143 = vmatpush.bf16.msrb.mxu3 %v4128_v45 }
 0xd9f   : > { %4294 = vrot.lane.b32.xlu2 %v6570_v28, %s6326_s16  ;;  %v4007_v28 = vsel %vm1347_vm0, %v7760_v19, 0.0 }
 0xda4   : > { %4300 = vrot.lane.b32.xlu0 %v6583_v48, %s6326_s16  ;;  %v7766_v48 = vpop.eup %6069 }
 0xda5   : > { %v4016_v14 = vsel %vm1347_vm0, %v7766_v48, 0.0 }
 0xdac   : > { %4377 = vrot.lane.b32.xlu0 %v6664_v54, %s6326_s16 }
 0xdb2   : > { %4008 = vadd.xlane.f32.xlu1 %v4007_v28 }
 0xdb3   : > { %v3973_v40 = vpop.xlane.xlu2 %3972 }
 0xdb4   : > { %4379 = vrot.lane.b32.xlu0 %v6670_v0, %s6326_s16  ;;  %v3981_v9 = vsub.f32 %v7689_v34, %v3973_v40 }
 0xdb6   : > { %v3996_v59 = vmul.f32 1.442695, %v3981_v9 }
 0xdb8   : > { %6071 = vpow2.f32 %v3996_v59 }
 0xdba   : > { %4017 = vadd.xlane.f32.xlu1 %v4016_v14 }
 0xdbc   : > { %4373 = vrot.lane.b32.xlu0 %v6666_v60, %s6326_s16 }
 0xdbe   : > { %v7773_v54 = vpop.eup %6071 }
 0xdbf   : > { %v4019_v0 = vsel %vm1347_vm0, %v7773_v54, 0.0 }
 0xdc4   : > { %4363 = vrot.lane.b32.xlu0 %v6650_v33, %s6326_s16 }
 0xdc8   : > { %4020 = vadd.xlane.f32.xlu2 %v4019_v0 }
 0xdcc   : > { %4365 = vrot.lane.b32.xlu0 %v8130_v41, %s6326_s16 }
 0xdd3   : > { %4375 = vrot.lane.b32.xlu1 %v6668_v63, %s6326_s16 }
 0xdd4   : > { %4367 = vrot.lane.b32.xlu0 %v8129_v38, %s6326_s16 }
 0xddc   : > { %4530 = vrot.lane.b32.xlu0 %v6696_v53, %s6326_s16 }
 0xde0   : > { %4361 = vrot.lane.b32.xlu2 %v6593_v17, %s6326_s16 }
 0xde2   : > { %v4000_v60 = vpop.xlane.xlu1 %3999 }
 0xde3   : > { %6073 = vrcp.f32 %v4000_v60 }
 0xde9   : > { %v6074_v41 = vpop.eup %6073 }
 0xdea   : > { %v4012_v33 = vpop.xlane.xlu0 %4011  ;;  %v4030_v63 = vmul.f32 %v6074_v41, %v7703_v8 }
 0xdeb   : > { %6075 = vrcp.f32 %v4012_v33 }
 0xdec   : > { %v4038_v56 = vpack.c.bf16 %v4030_v63, %v4030_v63 }
 0xdee   : > { %v4062_v14 = vunpack.c.l.b16 %v4038_v56 }
 0xdf1   : > { %v6076_v55 = vpop.eup %6075 }
 0xdf2   : > { %v4015_v34 = vpop.xlane.xlu2 %4014  ;;  %v4034_v38 = vmul.f32 %v6076_v55, %v7713_v29 }
 0xdf3   : > { %6077 = vrcp.f32 %v4015_v34  ;;  %v4003_v61 = vpop.xlane.xlu0 %4002 }
 0xdf4   : > { %6079 = vrcp.f32 %v4003_v61  ;;  %v4042_v4 = vpack.c.bf16 %v4034_v38, %v4034_v38 }
 0xdf6   : > { %v4117_v29 = vunpack.c.l.b16 %v4042_v4 }
 0xdf9   : > { %v6078_v22 = vpop.eup %6077 }
 0xdfa   : > { %v6080_v53 = vpop.eup %6079  ;;  %v4035_v31 = vmul.f32 %v6078_v22, %v7724_v15  ;;  %v4104_v17 = vpop.permute.xlu1 %4103 }
 0xdfb   : > { %v4031_v45 = vmul.f32 %v6080_v53, %v7726_v16  ;;  %v4110_v18 = vrot.slane %v4104_v17, 4  ;;  %v4006_v60 = vpop.xlane.xlu2 %4005 }
 0xdfc   : > { %v4043_v36 = vpack.c.bf16 %v4035_v31, %v4035_v31  ;;  %6081 = vrcp.f32 %v4006_v60 }
 0xdfd   : > { %v4039_v28 = vpack.c.bf16 %v4031_v45, %v4031_v45  ;;  %v4124_v40 = vunpack.c.l.b16 %v4110_v18 }
 0xdfe   : > { %v4118_v9 = vunpack.c.l.b16 %v4043_v36 }
 0xdff   : > { %v4063_v8 = vunpack.c.l.b16 %v4039_v28  ;;  %v4127_v59 = vpack.c.b16 %v4124_v40, %v4123_v21 }
 0xe00   : > { %v4121_v25 = vpack.c.b16 %v4118_v9, %v4117_v29 }
 0xe01   : > { %v4066_v0 = vpack.c.b16 %v4063_v8, %v4062_v14  ;;  %4144 = vmatpush.bf16.msrb.mxu3 %v4127_v59 }
 0xe02   : > { %v6082_v55 = vpop.eup %6081 }
 0xe03   : > { %5557 = vmatmul.msk.bf16.vlgmr.msrb.gmra.mxu2 %vm1347_vm0, %v4066_v0  ;;  %v4032_v22 = vmul.f32 %v6082_v55, %v7736_v32  ;;  %v4295_v28 = vpop.permute.xlu2 %4294 }
 0xe04   : > { %5559 = vmatmul.msk.bf16.vlgmr.msrb.gmra.mxu3 %vm1347_vm0, %v4121_v25  ;;  %v4302_v59 = vrot.slane %v4295_v28, 4 }
 0xe05   : > { %v4040_v56 = vpack.c.bf16 %v4032_v22, %v4032_v22 }
 0xe06   : > { %v4297_v15 = vpop.permute.xlu0 %4296  ;;  %v4318_v25 = vunpack.c.l.b16 %v4302_v59 }
 0xe07   : > { %v4064_v36 = vunpack.c.l.b16 %v4040_v56  ;;  %v4303_v32 = vrot.slane %v4297_v15, 4 }
 0xe09   : > { %v4319_v29 = vunpack.c.l.b16 %v4303_v32 }
 0xe0e   : > { %v4299_v16 = vpop.permute.xlu0 %4298 }
 0xe16   : > { %v4301_v33 = vpop.permute.xlu0 %4300 }
 0xe1e   : > { %v4378_v34 = vpop.permute.xlu0 %4377 }
 0xe1f   : > { %v4383_v61 = vrot.slane %v4378_v34, 4  ;;  %v4322_v34 = vpack.c.b16 %v4319_v29, %v4318_v25 }
 0xe21   : > { %v4393_v10 = vunpack.c.l.b16 %v4383_v61 }
 0xe25   : > { %v4009_v41 = vpop.xlane.xlu1 %4008 }
 0xe26   : > { %6083 = vrcp.f32 %v4009_v41  ;;  %v4380_v63 = vpop.permute.xlu0 %4379 }
 0xe27   : > { %v4384_v38 = vrot.slane %v4380_v63, 4 }
 0xe29   : > { %v4394_v53 = vunpack.c.l.b16 %v4384_v38 }
 0xe2b   : > { %v4396_v31 = vpack.c.b16 %v4394_v53, %v4393_v10 }
 0xe2c   : > { %v6084_v17 = vpop.eup %6083 }
 0xe2d   : > { %v4033_v45 = vmul.f32 %v6084_v17, %v7760_v19  ;;  %v4407_v18 = vsel %vm1347_vm0, %v4396_v31, 0  ;;  %v4018_v40 = vpop.xlane.xlu1 %4017 }
 0xe2e   : > { %4415 = vmatpush.bf16.xpose.msra.mxu3 %v4407_v18  ;;  %6085 = vrcp.f32 %v4018_v40  ;;  %v4374_v0 = vpop.permute.xlu0 %4373 }
 0xe2f   : > { %v4041_v4 = vpack.c.bf16 %v4033_v45, %v4033_v45  ;;  %v4381_v55 = vrot.slane %v4374_v0, 4  ;;  %v4305_v45 = vrot.slane %v4301_v33, 4 }
 0xe31   : > { %v4065_v21 = vunpack.c.l.b16 %v4041_v4  ;;  %v4391_v53 = vunpack.c.l.b16 %v4381_v55  ;;  %v4304_v4 = vrot.slane %v4299_v16, 4  ;;  %v5573_v55 = vld [vmem:[#allocation7 + $0xd8] sm:$0xf0] }
 0xe33   : > { %v4067_v9 = vpack.c.b16 %v4065_v21, %v4064_v36  ;;  %v4321_v36 = vunpack.c.l.b16 %v4305_v45  ;;  %v4320_v21 = vunpack.c.l.b16 %v4304_v4 }
 0xe34   : > { %v6086_v8 = vpop.eup %6085 }
 0xe35   : > { %5558 = vmatmul.msk.bf16.gmra.mxu2 %vm1347_vm0, %v4067_v9  ;;  %v4036_v19 = vmul.f32 %v6086_v8, %v7766_v48  ;;  %v4323_v40 = vpack.c.b16 %v4321_v36, %v4320_v21 }
 0xe36   : > { %v4364_v56 = vpop.permute.xlu0 %4363 }
 0xe37   : > { %v4044_v61 = vpack.c.bf16 %v4036_v19, %v4036_v19  ;;  %v4370_v9 = vrot.slane %v4364_v56, 4 }
 0xe39   : > { %v4119_v22 = vunpack.c.l.b16 %v4044_v61  ;;  %v4386_v8 = vunpack.c.l.b16 %v4370_v9  ;;  %v5755_v61 = vld [vmem:[#allocation7 + $0xd4] sm:$0xf] }
 0xe3b   : > { %v4021_v14 = vpop.xlane.xlu2 %4020 }
 0xe3c   : > { %6087 = vrcp.f32 %v4021_v14 }
 0xe3e   : > { %v4366_v32 = vpop.permute.xlu0 %4365 }
 0xe3f   : > { %v4371_v19 = vrot.slane %v4366_v32, 4 }
 0xe41   : > { %v4387_v16 = vunpack.c.l.b16 %v4371_v19 }
 0xe42   : > { %v6088_v60 = vpop.eup %6087 }
 0xe43   : > { %v4037_v41 = vmul.f32 %v6088_v60, %v7773_v54  ;;  %v4362_v54 = vpop.permute.xlu2 %4361  ;;  %v5571_v60 = vld [vmem:[#allocation7 + $0xd0] sm:$0xf] }
 0xe44   : > { %v4369_v28 = vrot.slane %v4362_v54, 4 }
 0xe45   : > { %v4045_v63 = vpack.c.bf16 %v4037_v41, %v4037_v41  ;;  %v4376_v38 = vpop.permute.xlu1 %4375  ;;  %5585 = vmatmul.msk.bf16.vlgmr.msra.gmra.mxu2 %vm1347_vm0, %v4322_v34  ;;  %v5756_v34 = vld [vmem:[#allocation7 + $0xd4] sm:$0xf0] }
 0xe46   : > { %v4382_v15 = vrot.slane %v4376_v38, 4  ;;  %v4385_v14 = vunpack.c.l.b16 %v4369_v28  ;;  %v4368_v33 = vpop.permute.xlu0 %4367  ;;  %v5572_v41 = vor.u32 %v5756_v34, %v5571_v60  ;;  %v5563_v38 = vld [vmem:[#allocation7 + $0xc0] sm:$0xf]  ;;  %v1324_v60 = vld [vmem:[#allocation8 + $0xe8] sm:$0xff] }
 0xe47   : > { %v4120_v10 = vunpack.c.l.b16 %v4045_v63  ;;  %v4372_v29 = vrot.slane %v4368_v33, 4  ;;  %v5576_v63 = vor.u32 %v5755_v61, %v5573_v55  ;;  %v1323_v33 = vld [vmem:[#allocation8 + $0xe0] sm:$0xff] }
 0xe48   : > { %v4392_v31 = vunpack.c.l.b16 %v4382_v15  ;;  %v4389_v59 = vpack.c.b16 %v4386_v8, %v4385_v14  ;;  %4226 = vmatpush.bf16.msrb.mxu0 %v5572_v41  ;;  %v5754_v15 = vld [vmem:[#allocation7 + $0xc4] sm:$0xf0] }
 0xe49   : > { %v4122_v17 = vpack.c.b16 %v4120_v10, %v4119_v22  ;;  %v4388_v0 = vunpack.c.l.b16 %v4372_v29  ;;  %4255 = vmatpush.bf16.msrb.mxu1 %v5576_v63  ;;  %v5753_v22 = vld [vmem:[#allocation7 + $0xc4] sm:$0xf]  ;;  %v5564_v10 = vor.u32 %v5754_v15, %v5563_v38 }
 0xe4a   : > { %v4395_v48 = vpack.c.b16 %v4392_v31, %v4391_v53  ;;  %v5565_v53 = vld [vmem:[#allocation7 + $0xc8] sm:$0xf0] }
 0xe4b   : > { %5560 = vmatmul.msk.bf16.gmra.mxu3 %vm1347_vm0, %v4122_v17  ;;  %v4390_v25 = vpack.c.b16 %v4388_v0, %v4387_v16  ;;  %v5568_v31 = vor.u32 %v5753_v22, %v5565_v53 }
 0xe4c   : > { %v4404_v18 = vsel %vm1347_vm0, %v4395_v48, 0  ;;  %4227 = vmatpush.bf16.msrb.mxu0 %v5564_v10 }
 0xe4d   : > { %4416 = vmatpush.bf16.xpose.msra.mxu3 %v4404_v18  ;;  %4256 = vmatpush.bf16.msrb.mxu1 %v5568_v31 }
 0xe55   : > { %5586 = vmatmul.msk.bf16.gmra.mxu2 %vm1347_vm0, %v4323_v40 }
 0xe5b   : > { %5587 = vmatmul.msk.bf16.vlgmr.msra.gmra.mxu3 %vm1347_vm0, %v4389_v59 }
 0xe6b   : > { %5588 = vmatmul.msk.bf16.gmra.mxu3 %vm1347_vm0, %v4390_v25 }
 0xe86   : > { %v4091_v17 = vpop.f32.mrf.mxu2 }
 0xe87   : > { %v4156_v56 = vpack.c.bf16 %v4091_v17, %v4091_v17  ;;  %v4146_v21 = vpop.f32.mrf.mxu3 }
 0xe88   : > { %v4160_v34 = vpack.c.bf16 %v4146_v21, %v4146_v21 }
 0xe89   : > { %v4176_v18 = vunpack.c.l.b16 %v4156_v56 }
 0xe8a   : > { %v4180_v63 = vunpack.c.l.b16 %v4160_v34  ;;  %v7850_v34 = vpop.f32.mrf.mxu0 }
 0xe8e   : > { %v4093_v48 = vpop.f32.mrf.mxu2 }
 0xe8f   : > { %v4157_v45 = vpack.c.bf16 %v4093_v48, %v4093_v48  ;;  %v4148_v59 = vpop.f32.mrf.mxu3 }
 0xe90   : > { %v4161_v16 = vpack.c.bf16 %v4148_v59, %v4148_v59 }
 0xe91   : > { %v4177_v4 = vunpack.c.l.b16 %v4157_v45 }
 0xe92   : > { %v4181_v41 = vunpack.c.l.b16 %v4161_v16 }
 0xe93   : > { %v4184_v54 = vpack.c.b16 %v4177_v4, %v4176_v18 }
 0xe94   : > { %v4186_v15 = vpack.c.b16 %v4181_v41, %v4180_v63 }
 0xe95   : > { %5577 = vmatmul.msk.bf16.vlgmr.msrb.gmra.mxu0 %vm1347_vm0, %v4184_v54  ;;  %5581 = vmatmul.msk.bf16.vlgmr.msrb.gmra.mxu1 %vm1347_vm0, %v4184_v54 }
 0xeb8   : > { %v4096_v36 = vpop.f32.mrf.mxu2 }
 0xeb9   : > { %v4158_v28 = vpack.c.bf16 %v4096_v36, %v4096_v36  ;;  %v1325_v36 = vld [vmem:[#allocation8 + $0xf0] sm:$0xff] }
 0xebb   : > { %v4178_v32 = vunpack.c.l.b16 %v4158_v28 }
 0xec0   : > { %v4098_v40 = vpop.f32.mrf.mxu2 }
 0xec1   : > { %v4159_v9 = vpack.c.bf16 %v4098_v40, %v4098_v40 }
 0xec3   : > { %v4179_v14 = vunpack.c.l.b16 %v4159_v9 }
 0xec5   : > { %v4185_v8 = vpack.c.b16 %v4179_v14, %v4178_v32  ;;  %v1326_v32 = vld [vmem:[#allocation8 + $0xf8] sm:$0xff] }
 0xec7   : > { %5578 = vmatmul.msk.bf16.gmra.mxu0 %vm1347_vm0, %v4185_v8  ;;  %5582 = vmatmul.msk.bf16.gmra.mxu1 %vm1347_vm0, %v4185_v8 }
 0xec8   : > { %v4351_v29 = vpop.f32.mrf.mxu2 }
 0xec9   : > { %v4352_v19 = vadd.f32 %v4351_v29, %v1323_v33 }
 0xecb   : > { %v4428_v0 = vsel %vm1347_vm0, %v4352_v19, -inf }
 0xecc   : > { %4429 = vmax.xlane.f32.xlu1 %v4428_v0 }
 0xece   : > { %v4151_v25 = vpop.f32.mrf.mxu3 }
 0xecf   : > { %v4162_v31 = vpack.c.bf16 %v4151_v25, %v4151_v25 }
 0xed0   : > { %v4353_v61 = vpop.f32.mrf.mxu2 }
 0xed1   : > { %v7812_v55 = vadd.f32 %v4353_v61, %v1324_v60  ;;  %v4182_v56 = vunpack.c.l.b16 %v4162_v31  ;;  %v7852_v61 = vpop.f32.mrf.mxu1  ;;  %v8144_v31 = vld [vmem:[#allocation19_spill] sm:$0xff] }
 0xed3   : > { %v4431_v38 = vsel %vm1347_vm0, %v7812_v55, -inf }
 0xed4   : > { %4432 = vmax.xlane.f32.xlu2 %v4431_v38 }
 0xed6   : > { %v4153_v22 = vpop.f32.mrf.mxu3 }
 0xed7   : > { %5579 = vmatmul.msk.bf16.gmra.mxu0 %vm1347_vm0, %v4186_v15  ;;  %5583 = vmatmul.msk.bf16.gmra.mxu1 %vm1347_vm0, %v4186_v15  ;;  %v4163_v10 = vpack.c.bf16 %v4153_v22, %v4153_v22 }
 0xed8   : > { %v4356_v4 = vpop.f32.mrf.mxu2 }
 0xed9   : > { %v4183_v17 = vunpack.c.l.b16 %v4163_v10  ;;  %v7826_v21 = vadd.f32 %v4356_v4, %v1325_v36 }
 0xedb   : > { %v4187_v48 = vpack.c.b16 %v4183_v17, %v4182_v56 }
 0xede   : > { %v4418_v53 = vpop.f32.mrf.mxu3 }
 0xedf   : > { %v7840_v29 = vadd.f32 %v4418_v53, %v1323_v33  ;;  %v8143_v53 = vld [vmem:[#allocation20_spill] sm:$0xff] }
 0xee0   : > { %v4358_v14 = vpop.f32.mrf.mxu2  ;;  %v2108_v17 = vadd.f32 %v8144_v31, %v8143_v53  ;;  %v8150_v53 = vld [vmem:[#allocation28_spill] sm:$0xff] }
 0xee1   : > { %v7834_v8 = vadd.f32 %v4358_v14, %v1326_v32  ;;  %v4440_v0 = vsel %vm1347_vm0, %v7840_v29, -inf }
 0xee3   : > { %v4437_v59 = vsel %vm1347_vm0, %v7834_v8, -inf }
 0xee5   : > { %4528 = vrot.lane.b32.xlu1 %v6694_v42, %s6326_s16  ;;  %v4434_v42 = vsel %vm1347_vm0, %v7826_v21, -inf }
 0xee6   : > { %v4420_v45 = vpop.f32.mrf.mxu3 }
 0xee7   : > { %v7820_v18 = vadd.f32 %v4420_v45, %v1324_v60  ;;  %5580 = vmatmul.msk.bf16.gmra.mxu0 %vm1347_vm0, %v4187_v48  ;;  %5584 = vmatmul.msk.bf16.gmra.mxu1 %vm1347_vm0, %v4187_v48  ;;  %v8145_v45 = vld [vmem:[#allocation34_spill] sm:$0xff] }
 0xee9   : > { %v4443_v54 = vsel %vm1347_vm0, %v7820_v18, -inf }
 0xeea   : > { %4444 = vmax.xlane.f32.xlu0 %v4443_v54  ;;  %v8146_v54 = vld [vmem:[#allocation35_spill] sm:$0xff] }
 0xeee   : > { %v4423_v28 = vpop.f32.mrf.mxu3 }
 0xeef   : > { %v7828_v40 = vadd.f32 %v4423_v28, %v1325_v36  ;;  %v2505_v36 = vadd.f32 %v8146_v54, %v2108_v17  ;;  %v8151_v17 = vld [vmem:[#allocation23_spill] sm:$0xff]  ;;  %v8153_v54 = vld [vmem:[#allocation36_spill] sm:$0xff] }
 0xef1   : > { %v4446_v9 = vsel %vm1347_vm0, %v7828_v40, -inf }
 0xef2   : > { %4435 = vmax.xlane.f32.xlu0 %v4434_v42  ;;  %4447 = vmax.xlane.f32.xlu2 %v4446_v9 }
 0xef6   : > { %v4425_v16 = vpop.f32.mrf.mxu3 }
 0xef7   : > { %v7844_v25 = vadd.f32 %v4425_v16, %v1326_v32  ;;  %v8148_v32 = vld [vmem:[#allocation41_spill] sm:$0xff] }
 0xef9   : > { %v4449_v60 = vsel %vm1347_vm0, %v7844_v25, -inf }
 0xefa   : > { %4438 = vmax.xlane.f32.xlu2 %v4437_v59 }
 0xf06   : > { %4526 = vrot.lane.b32.xlu0 %v6700_v39, %s6326_s16 }
 0xf0f   : > { %4441 = vmax.xlane.f32.xlu1 %v4440_v0 }
 0xf12   : > { %4524 = vrot.lane.b32.xlu2 %v6698_v50, %s6326_s16  ;;  %v7854_v39 = vpop.f32.mrf.mxu0  ;;  %v7856_v33 = vpop.f32.mrf.mxu1  ;;  %v8142_v50 = vld [vmem:[#allocation27_spill] sm:$0xff] }
 0xf13   : > { %v2079_v10 = vadd.f32 %v8142_v50, %v6983_v26  ;;  %v2899_v26 = vadd.f32 %v8148_v32, %v2505_v36 }
 0xf15   : > { %v2504_v4 = vadd.f32 %v8145_v45, %v2079_v10  ;;  %v3329_v16 = vadd.f32 %v7520_v52, %v2899_v26  ;;  %v8149_v52 = vld [vmem:[#allocation22_spill] sm:$0xff] }
 0xf16   : > { %v2084_v31 = vadd.f32 %v8150_v53, %v8149_v52 }
 0xf17   : > { %4450 = vmax.xlane.f32.xlu1 %v4449_v60 }
 0xf18   : > { %v2508_v36 = vadd.f32 %v8153_v54, %v2084_v31 }
 0xf1a   : > { %v7858_v41 = vpop.f32.mrf.mxu0  ;;  %v7860_v63 = vpop.f32.mrf.mxu1 }
 0xf3f   : > { %v4430_v38 = vpop.xlane.xlu1 %4429 }
 0xf40   : > { %v4452_v15 = vsub.f32 %v4352_v19, %v4430_v38  ;;  %v8147_v19 = vld [vmem:[#allocation40_spill] sm:$0xff] }
 0xf41   : > { %v2898_v9 = vadd.f32 %v8147_v19, %v2504_v4  ;;  %v8154_v19 = vld [vmem:[#allocation37_spill] sm:$0xff] }
 0xf42   : > { %v4460_v22 = vmul.f32 1.442695, %v4452_v15  ;;  %v3807_v15 = vadd.f32 %v7709_v43, %v3329_v16  ;;  %v4531_v43 = vpop.permute.xlu0 %4530  ;;  %v8156_v16 = vld [vmem:[#allocation43_spill] sm:$0xff] }
 0xf43   : > { %v3328_v0 = vadd.f32 %v7518_v2, %v2898_v9 }
 0xf44   : > { %6089 = vpow2.f32 %v4460_v22  ;;  %v4234_v56 = vpop.f32.mrf.mxu0  ;;  %v4263_v48 = vpop.f32.mrf.mxu1 }
 0xf45   : > { %v7869_v28 = vadd.f32 %v4234_v56, %v7698_v49  ;;  %v7872_v42 = vadd.f32 %v4263_v48, %v7701_v24  ;;  %v3806_v49 = vadd.f32 %v7707_v6, %v3328_v0  ;;  %v8152_v6 = vld [vmem:[#allocation30_spill] sm:$0xff] }
 0xf46   : > { %v2113_v56 = vadd.f32 %v8152_v6, %v8151_v17 }
 0xf47   : > { %v4433_v14 = vpop.xlane.xlu2 %4432 }
 0xf48   : > { %v4453_v59 = vsub.f32 %v7812_v55, %v4433_v14  ;;  %v2509_v9 = vadd.f32 %v8154_v19, %v2113_v56  ;;  %v4535_v14 = vrot.slane %v4531_v43, 4 }
 0xf4a   : > { %v7879_v60 = vpop.eup %6089  ;;  %v4462_v38 = vmul.f32 1.442695, %v4453_v59  ;;  %v8155_v59 = vld [vmem:[#allocation42_spill] sm:$0xff] }
 0xf4b   : > { %v4476_v24 = vsel %vm1347_vm0, %v7879_v60, 0.0  ;;  %v2902_v0 = vadd.f32 %v8155_v59, %v2508_v36 }
 0xf4c   : > { %6091 = vpow2.f32 %v4462_v38  ;;  %v4236_v22 = vpop.f32.mrf.mxu0  ;;  %v4265_v50 = vpop.f32.mrf.mxu1  ;;  %4477 = vadd.xlane.f32.xlu0 %v4476_v24  ;;  %v2903_v38 = vadd.f32 %v8156_v16, %v2509_v9 }
 0xf4d   : > { %v7885_v10 = vadd.f32 %v4236_v22, %v3806_v49  ;;  %v7887_v55 = vadd.f32 %v4265_v50, %v3807_v15  ;;  %v3332_v24 = vadd.f32 %v7529_v5, %v2902_v0  ;;  %v4549_v50 = vunpack.c.l.b16 %v4535_v14 }
 0xf4e   : > { %v3333_v22 = vadd.f32 %v7531_v46, %v2903_v38 }
 0xf4f   : > { %v3810_v53 = vadd.f32 %v7730_v37, %v3332_v24 }
 0xf52   : > { %v7889_v2 = vpop.eup %6091 }
 0xf53   : > { %v4479_v48 = vsel %vm1347_vm0, %v7889_v2, 0.0 }
 0xf54   : > { %v4239_v45 = vpop.f32.mrf.mxu0  ;;  %v4268_v4 = vpop.f32.mrf.mxu1  ;;  %4480 = vadd.xlane.f32.xlu2 %v4479_v48 }
 0xf55   : > { %v7900_v32 = vadd.f32 %v4239_v45, %v7718_v47  ;;  %v7903_v26 = vadd.f32 %v4268_v4, %v7721_v12  ;;  %v3811_v47 = vadd.f32 %v7732_v13, %v3333_v22 }
 0xf57   : > { %v4529_v49 = vpop.permute.xlu1 %4528 }
 0xf58   : > { %v4534_v15 = vrot.slane %v4529_v49, 4 }
 0xf5a   : > { %v4548_v52 = vunpack.c.l.b16 %v4534_v15 }
 0xf5c   : > { %v4551_v31 = vpack.c.b16 %v4549_v50, %v4548_v52  ;;  %v4241_v12 = vpop.f32.mrf.mxu0  ;;  %v4270_v17 = vpop.f32.mrf.mxu1 }
 0xf5d   : > { %v7911_v6 = vadd.f32 %v4241_v12, %v3810_v53  ;;  %v7913_v56 = vadd.f32 %v4270_v17, %v3811_v47  ;;  %v4445_v43 = vpop.xlane.xlu0 %4444 }
 0xf5e   : > { %v4457_v48 = vsub.f32 %v7820_v18, %v4445_v43  ;;  %4566 = vmatpush.bf16.msrb.mxu2 %v4551_v31 }
 0xf60   : > { %v4470_v5 = vmul.f32 1.442695, %v4457_v48 }
 0xf62   : > { %6093 = vpow2.f32 %v4470_v5 }
 0xf64   : > { %v4244_v46 = vpop.f32.mrf.mxu0  ;;  %v4273_v45 = vpop.f32.mrf.mxu1 }
 0xf65   : > { %v7917_v4 = vadd.f32 %v4244_v46, %v7741_v27  ;;  %v7920_v37 = vadd.f32 %v4273_v45, %v7744_v35  ;;  %v4448_v13 = vpop.xlane.xlu2 %4447  ;;  %v4436_v54 = vpop.xlane.xlu0 %4435 }
 0xf66   : > { %v4454_v36 = vsub.f32 %v7826_v21, %v4436_v54 }
 0xf68   : > { %v7923_v19 = vpop.eup %6093  ;;  %v4464_v9 = vmul.f32 1.442695, %v4454_v36 }
 0xf69   : > { %v4491_v18 = vsel %vm1347_vm0, %v7923_v19, 0.0 }
 0xf6a   : > { %4492 = vadd.xlane.f32.xlu1 %v4491_v18  ;;  %6095 = vpow2.f32 %v4464_v9 }
 0xf6d   : > { %v4439_v14 = vpop.xlane.xlu2 %4438 }
 0xf6e   : > { %v4455_v59 = vsub.f32 %v7834_v8, %v4439_v14 }
 0xf70   : > { %v4466_v27 = vmul.f32 1.442695, %v4455_v59  ;;  %v6096_v0 = vpop.eup %6095 }
 0xf71   : > { %v4482_v35 = vsel %vm1347_vm0, %v6096_v0, 0.0 }
 0xf72   : > { %6097 = vpow2.f32 %v4466_v27  ;;  %4483 = vadd.xlane.f32.xlu1 %v4482_v35 }
 0xf75   : > { %v4525_v16 = vpop.permute.xlu2 %4524 }
 0xf76   : > { %v4532_v38 = vrot.slane %v4525_v16, 4 }
 0xf78   : > { %v6098_v21 = vpop.eup %6097  ;;  %v4527_v49 = vpop.permute.xlu0 %4526  ;;  %v4546_v22 = vunpack.c.l.b16 %v4532_v38 }
 0xf79   : > { %v4533_v15 = vrot.slane %v4527_v49, 4  ;;  %v4485_v24 = vsel %vm1347_vm0, %v6098_v21, 0.0 }
 0xf7a   : > { %4486 = vadd.xlane.f32.xlu2 %v4485_v24 }
 0xf7b   : > { %v4547_v50 = vunpack.c.l.b16 %v4533_v15 }
 0xf7d   : > { %v4550_v52 = vpack.c.b16 %v4547_v50, %v4546_v22 }
 0xf7f   : > { %4567 = vmatpush.bf16.msrb.mxu2 %v4550_v52 }
 0xf82   : > { %v4442_v53 = vpop.xlane.xlu1 %4441 }
 0xf83   : > { %v4456_v8 = vsub.f32 %v7840_v29, %v4442_v53  ;;  %v4458_v29 = vsub.f32 %v7828_v40, %v4448_v13 }
 0xf85   : > { %v4468_v47 = vmul.f32 1.442695, %v4456_v8 }
 0xf87   : > { %6099 = vpow2.f32 %v4468_v47 }
 0xf8a   : > { %v4451_v17 = vpop.xlane.xlu1 %4450 }
 0xf8b   : > { %4579 = vrot.lane.b32.xlu1 %v6719_v62, %s6326_s16  ;;  %v4459_v43 = vsub.f32 %v7844_v25, %v4451_v17  ;;  %v4472_v62 = vmul.f32 1.442695, %v4458_v29 }
 0xf8d   : > { %v6100_v31 = vpop.eup %6099  ;;  %v4474_v48 = vmul.f32 1.442695, %v4459_v43 }
 0xf8e   : > { %v4488_v12 = vsel %vm1347_vm0, %v6100_v31, 0.0 }
 0xf8f   : > { %4489 = vadd.xlane.f32.xlu0 %v4488_v12  ;;  %6101 = vpow2.f32 %v4474_v48 }
 0xf90   : > { %6103 = vpow2.f32 %v4472_v62 }
 0xf92   : > { %4583 = vrot.lane.b32.xlu2 %v6717_v11, %s6326_s16 }
 0xf95   : > { %v7942_v5 = vpop.eup %6101 }
 0xf96   : > { %v4497_v11 = vsel %vm1347_vm0, %v7942_v5, 0.0  ;;  %v7946_v46 = vpop.eup %6103 }
 0xfa3   : > { %4585 = vrot.lane.b32.xlu0 %v6723_v51, %s6326_s16  ;;  %v4494_v51 = vsel %vm1347_vm0, %v7946_v46, 0.0 }
 0xfab   : > { %4581 = vrot.lane.b32.xlu0 %v6721_v1, %s6326_s16  ;;  %s6261_s16 = scalar_lea.hbm %s8093_s5, 512 }
 0xfac   : > { %p6263_p2 = scmp.lt.s32.totalorder %s6261_s16, %s6257_s11 }
 0xfae   : > { %p6264_p9 = por %p6263_p2, %p6262_p7 }
 0xfb0   : > { %p6265_p10 = pnand %p6264_p9, %p6260_p8 }
 0xfb5   : > { %4498 = vadd.xlane.f32.xlu1 %v4497_v11 }
 0xfbb   : > { %4495 = vadd.xlane.f32.xlu2 %v4494_v51 }
 0xfbf   : > { %v4478_v25 = vpop.xlane.xlu0 %4477 }
 0xfc0   : > { %6105 = vrcp.f32 %v4478_v25 }
 0xfc6   : > { %v6106_v45 = vpop.eup %6105 }
 0xfc7   : > { %v4481_v40 = vpop.xlane.xlu2 %4480  ;;  %v4508_v1 = vmul.f32 %v6106_v45, %v7879_v60 }
 0xfc8   : > { %6107 = vrcp.f32 %v4481_v40 }
 0xfc9   : > { %v4516_v54 = vpack.c.bf16 %v4508_v1, %v4508_v1 }
 0xfcb   : > { %v4540_v18 = vunpack.c.l.b16 %v4516_v54 }
 0xfce   : > { %v6108_v13 = vpop.eup %6107 }
 0xfcf   : > { %v4509_v36 = vmul.f32 %v6108_v13, %v7889_v2 }
 0xfd1   : > { %v4517_v9 = vpack.c.bf16 %v4509_v36, %v4509_v36 }
 0xfd3   : > { %v4541_v14 = vunpack.c.l.b16 %v4517_v9 }
 0xfd5   : > { %v4544_v59 = vpack.c.b16 %v4541_v14, %v4540_v18 }
 0xfd7   : > { %5589 = vmatmul.msk.bf16.vlgmr.msrb.gmra.mxu2 %vm1347_vm0, %v4544_v59 }
 0xfdd   : > { %v4493_v27 = vpop.xlane.xlu1 %4492 }
 0xfe5   : > { %v4484_v35 = vpop.xlane.xlu1 %4483 }
 0xfe6   : > { %6109 = vrcp.f32 %v4484_v35 }
 0xfec   : > { %v6110_v38 = vpop.eup %6109 }
 0xfed   : > { %v4487_v16 = vpop.xlane.xlu2 %4486  ;;  %v4510_v49 = vmul.f32 %v6110_v38, %v6096_v0 }
 0xfee   : > { %6111 = vrcp.f32 %v4487_v16 }
 0xfef   : > { %v4518_v24 = vpack.c.bf16 %v4510_v49, %v4510_v49 }
 0xff1   : > { %v4542_v50 = vunpack.c.l.b16 %v4518_v24 }
 0xff4   : > { %v6112_v15 = vpop.eup %6111 }
 0xff5   : > { %v4511_v60 = vmul.f32 %v6112_v15, %v6098_v21  ;;  %v4584_v8 = vpop.permute.xlu2 %4583 }
 0xff6   : > { %v4589_v47 = vrot.slane %v4584_v8, 4  ;;  %v5605_v8 = vld [vmem:[#allocation7 + $0xf8] sm:$0xf0] }
 0xff7   : > { %v4519_v22 = vpack.c.bf16 %v4511_v60, %v4511_v60 }
 0xff8   : > { %v4603_v29 = vunpack.c.l.b16 %v4589_v47 }
 0xff9   : > { %v4543_v52 = vunpack.c.l.b16 %v4519_v22 }
 0xffb   : > { %v4545_v2 = vpack.c.b16 %v4543_v52, %v4542_v50  ;;  %v5603_v50 = vld [vmem:[#allocation7 + $0xf0] sm:$0xf]  ;;  %v5760_v52 = vld [vmem:[#allocation7 + $0xf4] sm:$0xf0] }
 0xffd   : > { %5590 = vmatmul.msk.bf16.gmra.mxu2 %vm1347_vm0, %v4545_v2  ;;  %v4580_v62 = vpop.permute.xlu1 %4579  ;;  %v5759_v2 = vld [vmem:[#allocation7 + $0xf4] sm:$0xf] }
 0xffe   : > { %v4587_v25 = vrot.slane %v4580_v62, 4  ;;  %v5608_v47 = vor.u32 %v5759_v2, %v5605_v8  ;;  %v8157_v2 = vld [vmem:[#allocation21_spill] sm:$0xff] }
0x1000   : > { %v4601_v54 = vunpack.c.l.b16 %v4587_v25  ;;  %4733 = vmatpush.bf16.msra.mxu1 %v5608_v47  ;;  %v8159_v47 = vld [vmem:[#allocation17_spill] sm:$0xff] }
0x1002   : > { %v4490_v53 = vpop.xlane.xlu0 %4489 }
0x1003   : > { %6113 = vrcp.f32 %v4490_v53  ;;  %v5604_v53 = vor.u32 %v5760_v52, %v5603_v50  ;;  %v7967_v50 = vpop.f32.mrf.mxu0  ;;  %v7969_v52 = vpop.f32.mrf.mxu1 }
0x1004   : > { %6115 = vrcp.f32 %v4493_v27 }
0x1005   : > { %4704 = vmatpush.bf16.msra.mxu0 %v5604_v53  ;;  %v8158_v53 = vld [vmem:[#allocation26_spill] sm:$0xff] }
0x1006   : > { %v2074_v8 = vadd.f32 %v8158_v53, %v8157_v2 }
0x1009   : > { %v6114_v17 = vpop.eup %6113 }
0x100a   : > { %v6116_v48 = vpop.eup %6115  ;;  %v4512_v11 = vmul.f32 %v6114_v17, %v6100_v31  ;;  %v5757_v17 = vld [vmem:[#allocation7 + $0xe4] sm:$0xf] }
0x100b   : > { %v4513_v51 = vmul.f32 %v6116_v48, %v7923_v19  ;;  %v5597_v48 = vld [vmem:[#allocation7 + $0xe8] sm:$0xf0] }
0x100c   : > { %v4520_v40 = vpack.c.bf16 %v4512_v11, %v4512_v11 }
0x100d   : > { %v4521_v13 = vpack.c.bf16 %v4513_v51, %v4513_v51 }
0x100e   : > { %v4595_v9 = vunpack.c.l.b16 %v4520_v40 }
0x100f   : > { %v4596_v14 = vunpack.c.l.b16 %v4521_v13 }
0x1011   : > { %v4599_v59 = vpack.c.b16 %v4596_v14, %v4595_v9 }
0x1015   : > { %v4586_v12 = vpop.permute.xlu0 %4585 }
0x1016   : > { %v4590_v43 = vrot.slane %v4586_v12, 4  ;;  %v5595_v12 = vld [vmem:[#allocation7 + $0xe0] sm:$0xf] }
0x1018   : > { %v4604_v0 = vunpack.c.l.b16 %v4590_v43 }
0x101a   : > { %v4606_v21 = vpack.c.b16 %v4604_v0, %v4603_v29 }
0x101c   : > { %4621 = vmatpush.bf16.msrb.mxu3 %v4606_v21 }
0x101d   : > { %v4582_v45 = vpop.permute.xlu0 %4581 }
0x101e   : > { %v4588_v1 = vrot.slane %v4582_v45, 4 }
0x1020   : > { %v4602_v36 = vunpack.c.l.b16 %v4588_v1 }
0x1022   : > { %v4605_v18 = vpack.c.b16 %v4602_v36, %v4601_v54 }
0x1024   : > { %4622 = vmatpush.bf16.msrb.mxu3 %v4605_v18 }
0x1027   : > { %5591 = vmatmul.msk.bf16.vlgmr.msrb.gmra.mxu3 %vm1347_vm0, %v4599_v59 }
0x1028   : > { %v4499_v27 = vpop.xlane.xlu1 %4498 }
0x1029   : > { %6117 = vrcp.f32 %v4499_v27 }
0x102e   : > { %v4496_v31 = vpop.xlane.xlu2 %4495 }
0x102f   : > { %6119 = vrcp.f32 %v4496_v31  ;;  %v6118_v19 = vpop.eup %6117 }
0x1030   : > { %v4515_v35 = vmul.f32 %v6118_v19, %v7942_v5  ;;  %v5758_v5 = vld [vmem:[#allocation7 + $0xe4] sm:$0xf0] }
0x1031   : > { %v5596_v43 = vor.u32 %v5758_v5, %v5595_v12  ;;  %v8160_v12 = vld [vmem:[#allocation18_spill] sm:$0xff] }
0x1032   : > { %v4523_v38 = vpack.c.bf16 %v4515_v35, %v4515_v35  ;;  %v2103_v5 = vadd.f32 %v8160_v12, %v8159_v47 }
0x1033   : > { %4705 = vmatpush.bf16.msra.mxu0 %v5596_v43  ;;  %v8161_v43 = vld [vmem:[#allocation32_spill] sm:$0xff] }
0x1034   : > { %v4598_v24 = vunpack.c.l.b16 %v4523_v38 }
0x1035   : > { %v6120_v16 = vpop.eup %6119 }
0x1036   : > { %v4514_v49 = vmul.f32 %v6120_v16, %v7946_v46  ;;  %v5600_v46 = vor.u32 %v5757_v17, %v5597_v48  ;;  %v4772_v17 = vld [vmem:[%s8091_s3] sm:$0x3]  ;;  %v2500_v48 = vadd.f32 %v8161_v43, %v2074_v8 }
0x1038   : > { %v4522_v15 = vpack.c.bf16 %v4514_v49, %v4514_v49  ;;  %4734 = vmatpush.bf16.msra.mxu1 %v5600_v46  ;;  %v8162_v46 = vld [vmem:[#allocation33_spill] sm:$0xff] }
0x103a   : > { %v4597_v60 = vunpack.c.l.b16 %v4522_v15 }
0x103c   : > { %v4600_v22 = vpack.c.b16 %v4598_v24, %v4597_v60 }
0x103e   : > { %5592 = vmatmul.msk.bf16.gmra.mxu3 %vm1347_vm0, %v4600_v22 }
0x105a   : > { %v4569_v29 = vpop.f32.mrf.mxu2 }
0x105b   : > { %v4634_v0 = vpack.c.bf16 %v4569_v29, %v4569_v29  ;;  %v2501_v29 = vadd.f32 %v8162_v46, %v2103_v5 }
0x105d   : > { %v4654_v21 = vunpack.c.l.b16 %v4634_v0  ;;  %v4278_v0 = vadd.f32 %v7854_v39, %v7684_v20 }
0x1062   : > { %v4571_v62 = vpop.f32.mrf.mxu2 }
0x1063   : > { %v4635_v11 = vpack.c.bf16 %v4571_v62, %v4571_v62  ;;  %v4279_v62 = vadd.f32 %v7856_v33, %v7687_v7 }
0x1065   : > { %v4655_v51 = vunpack.c.l.b16 %v4635_v11  ;;  %v7985_v11 = vperm.slane %v4772_v17, 0 }
0x1067   : > { %v4662_v25 = vpack.c.b16 %v4655_v51, %v4654_v21  ;;  %v7987_v21 = vperm.slane %v4772_v17, 1 }
0x1069   : > { %5609 = vmatmul.msk.bf16.vlgmr.msra.gmra.mxu0 %vm1347_vm0, %v4662_v25  ;;  %5613 = vmatmul.msk.bf16.vlgmr.msra.gmra.mxu1 %vm1347_vm0, %v4662_v25 }
0x1080   : > { %v4574_v40 = vpop.f32.mrf.mxu2 }
0x1081   : > { %v4636_v45 = vpack.c.bf16 %v4574_v40, %v4574_v40  ;;  %v8163_v40 = vld [vmem:[#allocation38_spill] sm:$0xff] }
0x1083   : > { %v4656_v54 = vunpack.c.l.b16 %v4636_v45  ;;  %v2894_v45 = vadd.f32 %v8163_v40, %v2500_v48  ;;  %v8170_v40 = vld [vmem:[#allocation15_spill] sm:$0xff] }
0x1088   : > { %v4576_v1 = vpop.f32.mrf.mxu2 }
0x1089   : > { %v4637_v13 = vpack.c.bf16 %v4576_v1, %v4576_v1  ;;  %v8164_v1 = vld [vmem:[#allocation39_spill] sm:$0xff] }
0x108b   : > { %v4657_v36 = vunpack.c.l.b16 %v4637_v13  ;;  %v2895_v13 = vadd.f32 %v8164_v1, %v2501_v29  ;;  %v8167_v29 = vld [vmem:[#allocation25_spill] sm:$0xff] }
0x108d   : > { %v4663_v9 = vpack.c.b16 %v4657_v36, %v4656_v54  ;;  %v3325_v20 = vadd.f32 %v7504_v44, %v2895_v13  ;;  %v8171_v13 = vld [vmem:[#allocation44_spill] sm:$0xff] }
0x108f   : > { %5610 = vmatmul.msk.bf16.gmra.mxu0 %vm1347_vm0, %v4663_v9  ;;  %5614 = vmatmul.msk.bf16.gmra.mxu1 %vm1347_vm0, %v4663_v9  ;;  %v3324_v9 = vadd.f32 %v7502_v58, %v2894_v45 }
0x1091   : > { %v3802_v33 = vadd.f32 %v7693_v3, %v3324_v9 }
0x1093   : > { %v4280_v58 = vadd.f32 %v7858_v41, %v3802_v33 }
0x10aa   : > { %v4624_v18 = vpop.f32.mrf.mxu3 }
0x10ab   : > { %v4638_v14 = vpack.c.bf16 %v4624_v18, %v4624_v18  ;;  %v3803_v18 = vadd.f32 %v7695_v23, %v3325_v20 }
0x10ad   : > { %v4658_v31 = vunpack.c.l.b16 %v4638_v14  ;;  %v4281_v44 = vadd.f32 %v7860_v63, %v3803_v18 }
0x10b2   : > { %v4626_v59 = vpop.f32.mrf.mxu3 }
0x10b3   : > { %v4639_v27 = vpack.c.bf16 %v4626_v59, %v4626_v59 }
0x10b5   : > { %v4659_v19 = vunpack.c.l.b16 %v4639_v27 }
0x10b7   : > { %v4664_v35 = vpack.c.b16 %v4659_v19, %v4658_v31 }
0x10b9   : > { %5611 = vmatmul.msk.bf16.gmra.mxu0 %vm1347_vm0, %v4664_v35  ;;  %5615 = vmatmul.msk.bf16.gmra.mxu1 %vm1347_vm0, %v4664_v35 }
0x10c1   : > { %v4629_v16 = vpop.f32.mrf.mxu3 }
0x10c2   : > { %v4640_v38 = vpack.c.bf16 %v4629_v16, %v4629_v16 }
0x10c4   : > { %v4660_v24 = vunpack.c.l.b16 %v4640_v38 }
0x10c9   : > { %v4631_v49 = vpop.f32.mrf.mxu3 }
0x10ca   : > { %v4641_v15 = vpack.c.bf16 %v4631_v49, %v4631_v49 }
0x10cc   : > { %v4661_v60 = vunpack.c.l.b16 %v4641_v15 }
0x10ce   : > { %v4665_v22 = vpack.c.b16 %v4661_v60, %v4660_v24 }
0x10d0   : > { %5612 = vmatmul.msk.bf16.gmra.mxu0 %vm1347_vm0, %v4665_v22  ;;  %5616 = vmatmul.msk.bf16.gmra.mxu1 %vm1347_vm0, %v4665_v22 }
0x10e6   : > { %v4707_v51 = vpop.f32.mrf.mxu0  ;;  %v4736_v25 = vpop.f32.mrf.mxu1 }
0x10e7   : > { %v4756_v54 = vadd.f32 %v4707_v51, %v4278_v0  ;;  %v4757_v36 = vadd.f32 %v4736_v25, %v4279_v62  ;;  %v8168_v0 = vld [vmem:[#allocation31_spill] sm:$0xff]  ;;  %v8169_v51 = vld [vmem:[#allocation16_spill] sm:$0xff] }
0x10e8   : > { %v2118_v62 = vadd.f32 %v8168_v0, %v8167_v29 }
0x10e9   : > { %v4778_v39 = vadd.f32 %v7985_v11, %v4756_v54  ;;  %v4779_v7 = vadd.f32 %v7987_v21, %v4757_v36 }
0x10eb   : > { %4794 = vst [vmem:[%s7997_s6] sm:$0xff] %v4778_v39  ;;  %v8172_v39 = vld [vmem:[#allocation45_spill] sm:$0xff] }
0x10ec   : > { %4795 = vst [vmem:[%s7997_s6 + $0x8] sm:$0xff] %v4779_v7 }
0x10ee   : > { %v4709_v14 = vpop.f32.mrf.mxu0  ;;  %v4738_v59 = vpop.f32.mrf.mxu1 }
0x10ef   : > { %v4758_v27 = vadd.f32 %v4709_v14, %v4280_v58  ;;  %v4759_v3 = vadd.f32 %v4738_v59, %v4281_v44 }
0x10f1   : > { %v4780_v23 = vadd.f32 %v7985_v11, %v4758_v27  ;;  %v4781_v31 = vadd.f32 %v7987_v21, %v4759_v3 }
0x10f3   : > { %4796 = vst [vmem:[%s7997_s6 + $0x10] sm:$0xff] %v4780_v23 }
0x10f4   : > { %4797 = vst [vmem:[%s7997_s6 + $0x18] sm:$0xff] %v4781_v31 }
0x110c   : > { %v4712_v19 = vpop.f32.mrf.mxu0  ;;  %v4741_v35 = vpop.f32.mrf.mxu1 }
0x110d   : > { %v4760_v41 = vadd.f32 %v4712_v19, %v7869_v28  ;;  %v4761_v16 = vadd.f32 %v4741_v35, %v7872_v42 }
0x110f   : > { %v4782_v63 = vadd.f32 %v7985_v11, %v4760_v41  ;;  %v4783_v38 = vadd.f32 %v7987_v21, %v4761_v16 }
0x1111   : > { %4798 = vst [vmem:[%s7997_s6 + $0x20] sm:$0xff] %v4782_v63 }
0x1112   : > { %4799 = vst [vmem:[%s7997_s6 + $0x28] sm:$0xff] %v4783_v38 }
0x1114   : > { %v4714_v49 = vpop.f32.mrf.mxu0  ;;  %v4743_v15 = vpop.f32.mrf.mxu1 }
0x1115   : > { %v4762_v24 = vadd.f32 %v4714_v49, %v7885_v10  ;;  %v4763_v60 = vadd.f32 %v4743_v15, %v7887_v55 }
0x1117   : > { %v4784_v22 = vadd.f32 %v7985_v11, %v4762_v24  ;;  %v4785_v28 = vadd.f32 %v7987_v21, %v4763_v60 }
0x1119   : > { %4800 = vst [vmem:[%s7997_s6 + $0x30] sm:$0xff] %v4784_v22 }
0x111a   : > { %4801 = vst [vmem:[%s7997_s6 + $0x38] sm:$0xff] %v4785_v28 }
0x1136   : > { %v4717_v42 = vpop.f32.mrf.mxu0  ;;  %v4746_v2 = vpop.f32.mrf.mxu1 }
0x1137   : > { %v4764_v53 = vadd.f32 %v4717_v42, %v7900_v32  ;;  %v4765_v8 = vadd.f32 %v4746_v2, %v7903_v26  ;;  %v8165_v32 = vld [vmem:[#allocation24_spill] sm:$0xff]  ;;  %v8166_v26 = vld [vmem:[#allocation29_spill] sm:$0xff] }
0x1138   : > { %v2089_v46 = vadd.f32 %v8166_v26, %v8165_v32 }
0x1139   : > { %v4786_v47 = vadd.f32 %v7985_v11, %v4764_v53  ;;  %v4787_v10 = vadd.f32 %v7987_v21, %v4765_v8 }
0x113a   : > { %v2512_v25 = vadd.f32 %v8169_v51, %v2089_v46 }
0x113b   : > { %4802 = vst [vmem:[%s7997_s6 + $0x40] sm:$0xff] %v4786_v47 }
0x113c   : > { %4803 = vst [vmem:[%s7997_s6 + $0x48] sm:$0xff] %v4787_v10  ;;  %v2906_v1 = vadd.f32 %v7450_v57, %v2512_v25 }
0x113e   : > { %v4719_v55 = vpop.f32.mrf.mxu0  ;;  %v4748_v12 = vpop.f32.mrf.mxu1  ;;  %v3336_v20 = vadd.f32 %v7675_v30, %v2906_v1 }
0x113f   : > { %v4766_v5 = vadd.f32 %v4719_v55, %v7911_v6  ;;  %v4767_v17 = vadd.f32 %v4748_v12, %v7913_v56  ;;  %v2513_v6 = vadd.f32 %v8170_v40, %v2118_v62 }
0x1140   : > { %v3814_v58 = vadd.f32 %v7850_v34, %v3336_v20 }
0x1141   : > { %v4788_v43 = vadd.f32 %v7985_v11, %v4766_v5  ;;  %v4789_v48 = vadd.f32 %v7987_v21, %v4767_v17  ;;  %v2907_v54 = vadd.f32 %v8171_v13, %v2513_v6 }
0x1142   : > { %v4292_v30 = vadd.f32 %v7967_v50, %v3814_v58 }
0x1143   : > { %4804 = vst [vmem:[%s7997_s6 + $0x50] sm:$0xff] %v4788_v43  ;;  %v3337_v7 = vadd.f32 %v8172_v39, %v2907_v54 }
0x1144   : > { %4805 = vst [vmem:[%s7997_s6 + $0x58] sm:$0xff] %v4789_v48 }
0x1145   : > { %v3815_v57 = vadd.f32 %v7852_v61, %v3337_v7 }
0x114d   : > { %v4722_v45 = vpop.f32.mrf.mxu0  ;;  %v4751_v56 = vpop.f32.mrf.mxu1 }
0x114e   : > { %v4768_v36 = vadd.f32 %v4722_v45, %v7917_v4  ;;  %v4769_v9 = vadd.f32 %v4751_v56, %v7920_v37  ;;  %v4293_v4 = vadd.f32 %v7969_v52, %v3815_v57 }
0x1150   : > { %v4790_v33 = vadd.f32 %v7985_v11, %v4768_v36  ;;  %v4791_v18 = vadd.f32 %v7987_v21, %v4769_v9 }
0x1152   : > { %4806 = vst [vmem:[%s7997_s6 + $0x60] sm:$0xff] %v4790_v33 }
0x1153   : > { %4807 = vst [vmem:[%s7997_s6 + $0x68] sm:$0xff] %v4791_v18 }
0x1155   : > { %v4724_v37 = vpop.f32.mrf.mxu0  ;;  %v4753_v44 = vpop.f32.mrf.mxu1 }
0x1156   : > { %v4770_v34 = vadd.f32 %v4724_v37, %v4292_v30  ;;  %v4771_v61 = vadd.f32 %v4753_v44, %v4293_v4 }
0x1158   : > { %v4792_v14 = vadd.f32 %v7985_v11, %v4770_v34  ;;  %v4793_v59 = vadd.f32 %v7987_v21, %v4771_v61 }
0x115a   : > { %4808 = vst [vmem:[%s7997_s6 + $0x70] sm:$0xff] %v4792_v14 }
0x115b   : > { %4809 = vst [vmem:[%s7997_s6 + $0x78] sm:$0xff] %v4793_v59 }
0x115c   : > { %6268 = shalt.err (!%p6265_p10)
}
0x115d   : > { %s6327_s26 = smov 256   ;;  %s6328_s28 = smov 16  }
0x115e   : > { %5793 = dma.vmem_to_hbm [thread:$0]  (%p6446_p0), %s4825_s22, 2048, %s4827_s7, %s4811_s8, %s6327_s26, %s6327_s26, %s6328_s28  }
0x115f PF: > { %p5820_p11 = scmp.ge.s32.totalorder %s6315_s21, 2  ;;  %s4841_s6 = sand.u32 1, %s6303_s18  }
0x1160   : > { %s4842_s13 = scalar_lea.sflag [#allocation4], %s4841_s6 }
0x1161   : > { %p5810_p12 = pnand %p5820_p11, %p6394_p6 }
0x1163   : > { %p5811_p13 = pneg %p5810_p12 }
0x1165   : > { %6298 = dma.done.wait (%p5811_p13), %s4842_s13, 2048  }
0x1166   : > { %6300 = vsyncadd (%p5811_p13), %s4842_s13, 4294965248  ;;  %p20_p3 = scmp.ge.s32.totalorder %s6433_s30, 6   ;;  %s8173_s18 = smov %s6307_s19 }
0x1167   : > { %s8174_s19 = smov %s6311_s20  ;;  %s8175_s20 = smov %s6442_s9 }
0x1168   : > { %s8176_s21 = smov %s6433_s30  ;;  %22 = sbr.rel (!%p20_p3) target bundleno = 7 (0x7), region = 97 }
0x116d   :  { %4848 = vsyncpa [#allocation3], 1 }
0x116e   :  { %4850 = vsyncpa [#allocation3 + $0x1], 1 }
0x116f   :  { %4851 = vsyncpa [#allocation6], 1 }
0x1170   :  { %4852 = vsyncpa [#allocation9], 1 }
0x1171   :  { %4853 = vsyncpa [#allocation4], 1 }
0x1172   :  { %4855 = vsyncpa [#allocation4 + $0x1], 1 }

</bundles_post_ra>
